<compile_context>
chip_gen: v5e
topology: v5e:2x2
jax: 0.10.0
libtpu: 0.0.40
codegen_flags: <defaults>
</compile_context>

<pallas_src>
import functools

import jax
import jax.numpy as jnp
from jax import lax
from jax.experimental import pallas as pl
from jax.experimental.pallas import tpu as pltpu


# ----------------------------------------------------------------------------
# helpers
# ----------------------------------------------------------------------------

def _round_up(x: int, m: int) -> int:
    return ((x + m - 1) // m) * m


def _mish_f32(x):
    """Mish on f32 inside a kernel: x * tanh(softplus(x)).

    Single-exp rewrite: tanh(softplus(x)) = n/(n+2) with n = e*(e+2), e = exp(x).
    exp argument clamped at 20 (where the factor is exactly 1.0 in f32), so no
    overflow; the divide uses the EUP approximate reciprocal.
    """
    e = jnp.exp(jnp.minimum(x, 20.0))
    n = e * (e + 2.0)
    return x * n * pl.reciprocal(n + 2.0, approx=True)


def _fold_bn(bn, eps=1e-5):
    """Inference-mode BatchNorm folded to per-channel (scale, bias), shape (1, C)."""
    scale = bn["gamma"] * lax.rsqrt(bn["var"] + eps)
    bias = bn["beta"] - bn["mean"] * scale
    return scale.reshape(1, -1), bias.reshape(1, -1)


def _w3x3_to_mat(w_oihw):
    """Torch-layout (Cout, Cin, 3, 3) weights -> (9*Cin, Cout) matmul operand."""
    cout, cin = w_oihw.shape[0], w_oihw.shape[1]
    return jnp.transpose(w_oihw, (2, 3, 1, 0)).reshape(9 * cin, cout)


# TODO(synk): im2col materializes 9x the activation in HBM; a production kernel
# should do the 9 halo-tap matmuls inside the conv kernel (spatial blocking).
def _im2col_3x3(x_nhwc):
    """3x3 / stride-1 / pad-1 conv patches: (N,H,W,C) -> (N*H*W, 9*C)."""
    n, h, w, c = x_nhwc.shape
    xp = jnp.pad(x_nhwc, ((0, 0), (1, 1), (1, 1), (0, 0)))
    taps = [xp[:, dy:dy + h, dx:dx + w, :] for dy in range(3) for dx in range(3)]
    return jnp.stack(taps, axis=3).reshape(n * h * w, 9 * c)


# ----------------------------------------------------------------------------
# kernel 1: matmul (= conv) with fused Mish / BatchNorm-affine epilogue
# ----------------------------------------------------------------------------

def _matmul_affine_kernel(a_ref, b_ref, scale_ref, bias_ref, o_ref, *, apply_mish):
    acc = jnp.dot(a_ref[...], b_ref[...], preferred_element_type=jnp.float32)
    if apply_mish:  # conv_layer order in the torch module is conv -> Mish -> BN
        acc = _mish_f32(acc)
    y = acc * scale_ref[...].astype(jnp.float32) + bias_ref[...].astype(jnp.float32)
    o_ref[...] = y.astype(o_ref.dtype)


def _fused_matmul_affine(a, b, scale, bias, *, apply_mish,
                         target_block_bytes=4 << 20, tile_m_cap=4096):
    """out[M,N] = mish?(a[M,K] @ b[K,N]) * scale[1,N] + bias[1,N] in one kernel.

    Only M is tiled (K, N are channel-sized and stay whole per block). The M tile
    is picked by a byte budget, the grid uses cdiv with a masked partial tail,
    and we keep >=2 grid steps so the parallel axis can shard across 2 TCs.
    """
    m, k = a.shape
    k2, n = b.shape
    assert k == k2, (k, k2)
    itemsize = jnp.dtype(a.dtype).itemsize

    tm = max(8, min(tile_m_cap, target_block_bytes // max(1, k * itemsize)))
    tm = _round_up(min(tm, m), 8)
    if tm >= m and m >= 16:
        tm = _round_up((m + 1) // 2, 8)      # >= 2 grid steps (v7x megacore)
    grid = (pl.cdiv(m, tm),)

    kernel = functools.partial(_matmul_affine_kernel, apply_mish=apply_mish)
    return pl.pallas_call(
        kernel,
        out_shape=jax.ShapeDtypeStruct((m, n), a.dtype),
        grid_spec=pltpu.PrefetchScalarGridSpec(
            num_scalar_prefetch=0,
            grid=grid,
            in_specs=[
                pl.BlockSpec((tm, k), lambda i: (i, 0)),
                pl.BlockSpec((k, n), lambda i: (0, 0)),
                pl.BlockSpec((1, n), lambda i: (0, 0)),
                pl.BlockSpec((1, n), lambda i: (0, 0)),
            ],
            out_specs=pl.BlockSpec((tm, n), lambda i: (i, 0)),
        ),
        compiler_params=pltpu.CompilerParams(
            dimension_semantics=("parallel",)),
    )(a, b, scale, bias)


# ----------------------------------------------------------------------------
# kernel 2: fused SE excite-multiply + residual add + final Mish
# ----------------------------------------------------------------------------

def _se_residual_mish_kernel(x_ref, id_ref, scale_ref, o_ref):
    y = (x_ref[...].astype(jnp.float32) * scale_ref[...].astype(jnp.float32)
         + id_ref[...].astype(jnp.float32))
    o_ref[...] = _mish_f32(y).astype(o_ref.dtype)


def _se_residual_mish(x3, id3, scale3, *, target_block_bytes=2 << 20,
                      tile_rows_cap=8192):
    """out = Mish(x3 * scale3 + id3); x3/id3: (N, H*W, C), scale3: (N, 1, C)."""
    n, rows, c = x3.shape
    itemsize = jnp.dtype(x3.dtype).itemsize
    tr = max(8, min(tile_rows_cap, target_block_bytes // max(1, c * itemsize)))
    tr = _round_up(min(tr, rows), 8)
    grid = (n, pl.cdiv(rows, tr))

    return pl.pallas_call(
        _se_residual_mish_kernel,
        out_shape=jax.ShapeDtypeStruct((n, rows, c), x3.dtype),
        grid_spec=pltpu.PrefetchScalarGridSpec(
            num_scalar_prefetch=0,
            grid=grid,
            in_specs=[
                pl.BlockSpec((1, tr, c), lambda i, j: (i, j, 0)),
                pl.BlockSpec((1, tr, c), lambda i, j: (i, j, 0)),
                pl.BlockSpec((1, 1, c), lambda i, j: (i, 0, 0)),
            ],
            out_specs=pl.BlockSpec((1, tr, c), lambda i, j: (i, j, 0)),
        ),
        compiler_params=pltpu.CompilerParams(
            dimension_semantics=("parallel", "parallel")),
        input_output_aliases={0: 0},     # donate conv-branch buffer to the output
    )(x3, id3, scale3)


# ----------------------------------------------------------------------------
# ResBlock forward (expansion=1, stride=1, sa=False), NCHW in / NCHW out
# ----------------------------------------------------------------------------

def resblock_forward(x_nchw, params):
    n, ci, h, w = x_nchw.shape
    x = jnp.transpose(x_nchw, (0, 2, 3, 1))          # NHWC: channels on lanes

    # conv_layer 1: conv3x3 -> Mish -> BN, fused as one matmul+epilogue kernel.
    s1, b1 = _fold_bn(params["bn1"])
    y1 = _fused_matmul_affine(_im2col_3x3(x), _w3x3_to_mat(params["w1"]),
                              s1, b1, apply_mish=True)
    nh = y1.shape[-1]
    y1 = y1.reshape(n, h, w, nh)

    # conv_layer 2: conv3x3 -> BN (act=False; zero_bn init in the torch module).
    s2, b2 = _fold_bn(params["bn2"])
    y2 = _fused_matmul_affine(_im2col_3x3(y1), _w3x3_to_mat(params["w2"]),
                              s2, b2, apply_mish=False)
    nf = y2.shape[-1]

    # SE squeeze/excite: the squeeze+MLP is O(N*C) and left to plain JAX; the
    # big excite-multiply is fused into the final residual+Mish kernel below.
    pooled = jnp.mean(y2.reshape(n, h * w, nf), axis=1)                   # (N, C)
    hidden = jnp.maximum(pooled @ params["fc1_w"][:, :, 0, 0].T + params["fc1_b"], 0.0)
    se = jax.nn.sigmoid(hidden @ params["fc2_w"][:, :, 0, 0].T + params["fc2_b"])

    # identity branch: idconv (1x1 conv -> BN) when ni != nf, else passthrough.
    if ci != nf:
        sid, bid = _fold_bn(params["bn_id"])
        idb = _fused_matmul_affine(x.reshape(n * h * w, ci),
                                   params["w_id"][:, :, 0, 0].T,
                                   sid, bid, apply_mish=False)
    else:
        idb = x.reshape(n * h * w, ci)

    # final: Mish( SE_scale * conv_branch + identity ), single fused kernel.
    out = _se_residual_mish(y2.reshape(n, h * w, nf),
                            idb.reshape(n, h * w, nf),
                            se.reshape(n, 1, nf))
    return jnp.transpose(out.reshape(n, h, w, nf), (0, 3, 1, 2))


# ----------------------------------------------------------------------------
# pure-JAX reference (independent path: lax.conv + stable softplus/tanh Mish)
# ----------------------------------------------------------------------------

def _mish_ref(x):
    sp = jnp.maximum(x, 0.0) + jnp.log1p(jnp.exp(-jnp.abs(x)))
    return x * jnp.tanh(sp)


def resblock_reference(x_nchw, params):
    x = jnp.transpose(x_nchw, (0, 2, 3, 1))

    def conv_nhwc(inp, w_oihw):
        return lax.conv_general_dilated(
            inp, jnp.transpose(w_oihw, (2, 3, 1, 0)),
            window_strides=(1, 1), padding="SAME",
            dimension_numbers=("NHWC", "HWIO", "NHWC"))

    def bn(inp, p, eps=1e-5):
        s = p["gamma"] * lax.rsqrt(p["var"] + eps)
        return inp * s + (p["beta"] - p["mean"] * s)

    y = bn(_mish_ref(conv_nhwc(x, params["w1"])), params["bn1"])
    y = bn(conv_nhwc(y, params["w2"]), params["bn2"])
    pooled = jnp.mean(y, axis=(1, 2))
    hidden = jnp.maximum(pooled @ params["fc1_w"][:, :, 0, 0].T + params["fc1_b"], 0.0)
    se = jax.nn.sigmoid(hidden @ params["fc2_w"][:, :, 0, 0].T + params["fc2_b"])
    y = y * se[:, None, None, :]
    nf = y.shape[-1]
    if x.shape[-1] != nf:
        idb = bn(conv_nhwc(x, params["w_id"]), params["bn_id"])
    else:
        idb = x
    out = _mish_ref(y + idb)
    return jnp.transpose(out, (0, 3, 1, 2))


# ----------------------------------------------------------------------------
# demo / self-check
# ----------------------------------------------------------------------------

if __name__ == "__main__":
    key = jax.random.PRNGKey(0)
    keys = jax.random.split(key, 12)

    Nb, H, W = 2, 16, 16
    ni, nh = 16, 32          # expansion = 1 -> nf = nh, idconv active (ni != nf)
    nf = nh
    red = 16                 # SE reduction (torch default) -> bottleneck = 2

    def kaiming(k, shape):
        fan_in = shape[1] * shape[2] * shape[3]
        return jax.random.normal(k, shape, jnp.float32) * jnp.sqrt(2.0 / fan_in)

    def bn_params(k, c):
        k1, k2, k3, k4 = jax.random.split(k, 4)
        # Randomized (instead of the torch init values, e.g. zero_bn gamma=0) so
        # every fused path is actually exercised by the numerical check.
        return dict(
            gamma=1.0 + 0.1 * jax.random.normal(k1, (c,), jnp.float32),
            beta=0.1 * jax.random.normal(k2, (c,), jnp.float32),
            mean=0.1 * jax.random.normal(k3, (c,), jnp.float32),
            var=0.5 + jax.random.uniform(k4, (c,), jnp.float32),
        )

    params = dict(
        w1=kaiming(keys[0], (nh, ni, 3, 3)),   bn1=bn_params(keys[1], nh),
        w2=kaiming(keys[2], (nf, nh, 3, 3)),   bn2=bn_params(keys[3], nf),
        w_id=kaiming(keys[4], (nf, ni, 1, 1)), bn_id=bn_params(keys[5], nf),
        fc1_w=kaiming(keys[6], (nf // red, nf, 1, 1)),
        fc1_b=0.1 * jax.random.normal(keys[7], (nf // red,), jnp.float32),
        fc2_w=kaiming(keys[8], (nf, nf // red, 1, 1)),
        fc2_b=0.1 * jax.random.normal(keys[9], (nf,), jnp.float32),
    )
    x = jax.random.normal(keys[10], (Nb, ni, H, W), jnp.float32)

    fwd = jax.jit(resblock_forward)
    y = jax.block_until_ready(fwd(x, params))

    y_ref = jax.block_until_ready(resblock_reference(x, params))

    assert y.shape == (Nb, nf, H, W) and y.dtype == x.dtype
    assert jnp.allclose(y, y_ref, atol=2e-2, rtol=2e-2), \
        float(jnp.max(jnp.abs(y - y_ref)))

    print("KERNEL_OK")
</pallas_src>

<mosaic_0001>
module attributes {stable_mosaic.version = 11 : i64} {
  func.func @_matmul_affine_kernel(%arg0: i32, %arg1: memref<256x144xf32, #tpu.memory_space<vmem>>, %arg2: memref<144x32xf32, #tpu.memory_space<vmem>>, %arg3: memref<1x32xf32, #tpu.memory_space<vmem>>, %arg4: memref<1x32xf32, #tpu.memory_space<vmem>>, %arg5: memref<256x32xf32, #tpu.memory_space<vmem>>) attributes {dimension_semantics = [#tpu.dimension_semantics<parallel>], iteration_bounds = array<i64: 2>, scalar_prefetch = 0 : i64, scratch_operands = 0 : i64, tpu.core_type = #tpu.core_type<tc>, window_params = [{transform_indices = @transform_0, window_bounds = array<i64: 256, 144>}, {pipeline_mode = #tpu.pipeline_mode<synchronous>, transform_indices = @transform_1, window_bounds = array<i64: 144, 32>}, {pipeline_mode = #tpu.pipeline_mode<synchronous>, transform_indices = @transform_2, window_bounds = array<i64: 1, 32>}, {pipeline_mode = #tpu.pipeline_mode<synchronous>, transform_indices = @transform_3, window_bounds = array<i64: 1, 32>}, {transform_indices = @transform_4, window_bounds = array<i64: 256, 32>}]} {
    %c0 = arith.constant 0 : index
    %c0_0 = arith.constant 0 : index
    %0 = vector.load %arg1[%c0, %c0_0] : memref<256x144xf32, #tpu.memory_space<vmem>>, vector<256x144xf32>
    %c0_1 = arith.constant 0 : index
    %c0_2 = arith.constant 0 : index
    %1 = vector.load %arg2[%c0_1, %c0_2] : memref<144x32xf32, #tpu.memory_space<vmem>>, vector<144x32xf32>
    %cst = arith.constant dense<0.000000e+00> : vector<256x32xf32>
    %2 = tpu.matmul %0, %1, %cst {dimension_numbers = #tpu.dot_dimension_numbers<[1], [0], [0], [1], [0, 0, 1, 1], [], []>} : vector<256x144xf32>, vector<144x32xf32>, vector<256x32xf32> -> vector<256x32xf32>
    %cst_3 = arith.constant 2.000000e+01 : f32
    %3 = vector.broadcast %cst_3 : f32 to vector<256x32xf32>
    %4 = arith.minimumf %2, %3 : vector<256x32xf32>
    %5 = math.exp %4 : vector<256x32xf32>
    %cst_4 = arith.constant 2.000000e+00 : f32
    %6 = vector.broadcast %cst_4 : f32 to vector<256x32xf32>
    %7 = arith.addf %5, %6 : vector<256x32xf32>
    %8 = arith.mulf %5, %7 : vector<256x32xf32>
    %9 = arith.mulf %2, %8 : vector<256x32xf32>
    %cst_5 = arith.constant 2.000000e+00 : f32
    %10 = vector.broadcast %cst_5 : f32 to vector<256x32xf32>
    %11 = arith.addf %8, %10 : vector<256x32xf32>
    %12 = tpu.reciprocal %11 {approx = true} : vector<256x32xf32> -> vector<256x32xf32>
    %13 = arith.mulf %9, %12 : vector<256x32xf32>
    %c0_6 = arith.constant 0 : index
    %c0_7 = arith.constant 0 : index
    %14 = vector.load %arg3[%c0_6, %c0_7] : memref<1x32xf32, #tpu.memory_space<vmem>>, vector<1x32xf32>
    %15 = vector.broadcast %14 : vector<1x32xf32> to vector<256x32xf32>
    %16 = arith.mulf %13, %15 : vector<256x32xf32>
    %c0_8 = arith.constant 0 : index
    %c0_9 = arith.constant 0 : index
    %17 = vector.load %arg4[%c0_8, %c0_9] : memref<1x32xf32, #tpu.memory_space<vmem>>, vector<1x32xf32>
    %18 = vector.broadcast %17 : vector<1x32xf32> to vector<256x32xf32>
    %19 = arith.addf %16, %18 : vector<256x32xf32>
    %c0_10 = arith.constant 0 : index
    %c0_11 = arith.constant 0 : index
    %20 = vector.load %arg5[%c0_10, %c0_11] : memref<256x32xf32, #tpu.memory_space<vmem>>, vector<256x32xf32>
    tpu.vector_store %arg5[%c0_10, %c0_11], %19 {strides = array<i32>} : memref<256x32xf32, #tpu.memory_space<vmem>>, vector<256x32xf32>,
    return
  }
  func.func @transform_0(%arg0: i32) -> (i32, i32) {
    %c0_i32 = arith.constant 0 : i32
    %c0_i32_0 = arith.constant 0 : i32
    return %arg0, %c0_i32 : i32, i32
  }
  func.func @transform_1(%arg0: i32) -> (i32, i32) {
    %c0_i32 = arith.constant 0 : i32
    %c0_i32_0 = arith.constant 0 : i32
    %c0_i32_1 = arith.constant 0 : i32
    return %c0_i32, %c0_i32_0 : i32, i32
  }
  func.func @transform_2(%arg0: i32) -> (i32, i32) {
    %c0_i32 = arith.constant 0 : i32
    %c0_i32_0 = arith.constant 0 : i32
    %c0_i32_1 = arith.constant 0 : i32
    return %c0_i32, %c0_i32_0 : i32, i32
  }
  func.func @transform_3(%arg0: i32) -> (i32, i32) {
    %c0_i32 = arith.constant 0 : i32
    %c0_i32_0 = arith.constant 0 : i32
    %c0_i32_1 = arith.constant 0 : i32
    return %c0_i32, %c0_i32_0 : i32, i32
  }
  func.func @transform_4(%arg0: i32) -> (i32, i32) {
    %c0_i32 = arith.constant 0 : i32
    %c0_i32_0 = arith.constant 0 : i32
    return %arg0, %c0_i32 : i32, i32
  }
}

module attributes {stable_mosaic.version = 11 : i64} {
  func.func @_matmul_affine_kernel(%arg0: i32, %arg1: memref<256x288xf32, #tpu.memory_space<vmem>>, %arg2: memref<288x32xf32, #tpu.memory_space<vmem>>, %arg3: memref<1x32xf32, #tpu.memory_space<vmem>>, %arg4: memref<1x32xf32, #tpu.memory_space<vmem>>, %arg5: memref<256x32xf32, #tpu.memory_space<vmem>>) attributes {dimension_semantics = [#tpu.dimension_semantics<parallel>], iteration_bounds = array<i64: 2>, scalar_prefetch = 0 : i64, scratch_operands = 0 : i64, tpu.core_type = #tpu.core_type<tc>, window_params = [{transform_indices = @transform_0, window_bounds = array<i64: 256, 288>}, {pipeline_mode = #tpu.pipeline_mode<synchronous>, transform_indices = @transform_1, window_bounds = array<i64: 288, 32>}, {pipeline_mode = #tpu.pipeline_mode<synchronous>, transform_indices = @transform_2, window_bounds = array<i64: 1, 32>}, {pipeline_mode = #tpu.pipeline_mode<synchronous>, transform_indices = @transform_3, window_bounds = array<i64: 1, 32>}, {transform_indices = @transform_4, window_bounds = array<i64: 256, 32>}]} {
    %c0 = arith.constant 0 : index
    %c0_0 = arith.constant 0 : index
    %0 = vector.load %arg1[%c0, %c0_0] : memref<256x288xf32, #tpu.memory_space<vmem>>, vector<256x288xf32>
    %c0_1 = arith.constant 0 : index
    %c0_2 = arith.constant 0 : index
    %1 = vector.load %arg2[%c0_1, %c0_2] : memref<288x32xf32, #tpu.memory_space<vmem>>, vector<288x32xf32>
    %cst = arith.constant dense<0.000000e+00> : vector<256x32xf32>
    %2 = tpu.matmul %0, %1, %cst {dimension_numbers = #tpu.dot_dimension_numbers<[1], [0], [0], [1], [0, 0, 1, 1], [], []>} : vector<256x288xf32>, vector<288x32xf32>, vector<256x32xf32> -> vector<256x32xf32>
    %c0_3 = arith.constant 0 : index
    %c0_4 = arith.constant 0 : index
    %3 = vector.load %arg3[%c0_3, %c0_4] : memref<1x32xf32, #tpu.memory_space<vmem>>, vector<1x32xf32>
    %4 = vector.broadcast %3 : vector<1x32xf32> to vector<256x32xf32>
    %5 = arith.mulf %2, %4 : vector<256x32xf32>
    %c0_5 = arith.constant 0 : index
    %c0_6 = arith.constant 0 : index
    %6 = vector.load %arg4[%c0_5, %c0_6] : memref<1x32xf32, #tpu.memory_space<vmem>>, vector<1x32xf32>
    %7 = vector.broadcast %6 : vector<1x32xf32> to vector<256x32xf32>
    %8 = arith.addf %5, %7 : vector<256x32xf32>
    %c0_7 = arith.constant 0 : index
    %c0_8 = arith.constant 0 : index
    %9 = vector.load %arg5[%c0_7, %c0_8] : memref<256x32xf32, #tpu.memory_space<vmem>>, vector<256x32xf32>
    tpu.vector_store %arg5[%c0_7, %c0_8], %8 {strides = array<i32>} : memref<256x32xf32, #tpu.memory_space<vmem>>, vector<256x32xf32>,
    return
  }
  func.func @transform_0(%arg0: i32) -> (i32, i32) {
    %c0_i32 = arith.constant 0 : i32
    %c0_i32_0 = arith.constant 0 : i32
    return %arg0, %c0_i32 : i32, i32
  }
  func.func @transform_1(%arg0: i32) -> (i32, i32) {
    %c0_i32 = arith.constant 0 : i32
    %c0_i32_0 = arith.constant 0 : i32
    %c0_i32_1 = arith.constant 0 : i32
    return %c0_i32, %c0_i32_0 : i32, i32
  }
  func.func @transform_2(%arg0: i32) -> (i32, i32) {
    %c0_i32 = arith.constant 0 : i32
    %c0_i32_0 = arith.constant 0 : i32
    %c0_i32_1 = arith.constant 0 : i32
    return %c0_i32, %c0_i32_0 : i32, i32
  }
  func.func @transform_3(%arg0: i32) -> (i32, i32) {
    %c0_i32 = arith.constant 0 : i32
    %c0_i32_0 = arith.constant 0 : i32
    %c0_i32_1 = arith.constant 0 : i32
    return %c0_i32, %c0_i32_0 : i32, i32
  }
  func.func @transform_4(%arg0: i32) -> (i32, i32) {
    %c0_i32 = arith.constant 0 : i32
    %c0_i32_0 = arith.constant 0 : i32
    return %arg0, %c0_i32 : i32, i32
  }
}

module attributes {stable_mosaic.version = 11 : i64} {
  func.func @_matmul_affine_kernel(%arg0: i32, %arg1: memref<256x16xf32, #tpu.memory_space<vmem>>, %arg2: memref<16x32xf32, #tpu.memory_space<vmem>>, %arg3: memref<1x32xf32, #tpu.memory_space<vmem>>, %arg4: memref<1x32xf32, #tpu.memory_space<vmem>>, %arg5: memref<256x32xf32, #tpu.memory_space<vmem>>) attributes {dimension_semantics = [#tpu.dimension_semantics<parallel>], iteration_bounds = array<i64: 2>, scalar_prefetch = 0 : i64, scratch_operands = 0 : i64, tpu.core_type = #tpu.core_type<tc>, window_params = [{transform_indices = @transform_0, window_bounds = array<i64: 256, 16>}, {pipeline_mode = #tpu.pipeline_mode<synchronous>, transform_indices = @transform_1, window_bounds = array<i64: 16, 32>}, {pipeline_mode = #tpu.pipeline_mode<synchronous>, transform_indices = @transform_2, window_bounds = array<i64: 1, 32>}, {pipeline_mode = #tpu.pipeline_mode<synchronous>, transform_indices = @transform_3, window_bounds = array<i64: 1, 32>}, {transform_indices = @transform_4, window_bounds = array<i64: 256, 32>}]} {
    %c0 = arith.constant 0 : index
    %c0_0 = arith.constant 0 : index
    %0 = vector.load %arg1[%c0, %c0_0] : memref<256x16xf32, #tpu.memory_space<vmem>>, vector<256x16xf32>
    %c0_1 = arith.constant 0 : index
    %c0_2 = arith.constant 0 : index
    %1 = vector.load %arg2[%c0_1, %c0_2] : memref<16x32xf32, #tpu.memory_space<vmem>>, vector<16x32xf32>
    %cst = arith.constant dense<0.000000e+00> : vector<256x32xf32>
    %2 = tpu.matmul %0, %1, %cst {dimension_numbers = #tpu.dot_dimension_numbers<[1], [0], [0], [1], [0, 0, 1, 1], [], []>} : vector<256x16xf32>, vector<16x32xf32>, vector<256x32xf32> -> vector<256x32xf32>
    %c0_3 = arith.constant 0 : index
    %c0_4 = arith.constant 0 : index
    %3 = vector.load %arg3[%c0_3, %c0_4] : memref<1x32xf32, #tpu.memory_space<vmem>>, vector<1x32xf32>
    %4 = vector.broadcast %3 : vector<1x32xf32> to vector<256x32xf32>
    %5 = arith.mulf %2, %4 : vector<256x32xf32>
    %c0_5 = arith.constant 0 : index
    %c0_6 = arith.constant 0 : index
    %6 = vector.load %arg4[%c0_5, %c0_6] : memref<1x32xf32, #tpu.memory_space<vmem>>, vector<1x32xf32>
    %7 = vector.broadcast %6 : vector<1x32xf32> to vector<256x32xf32>
    %8 = arith.addf %5, %7 : vector<256x32xf32>
    %c0_7 = arith.constant 0 : index
    %c0_8 = arith.constant 0 : index
    %9 = vector.load %arg5[%c0_7, %c0_8] : memref<256x32xf32, #tpu.memory_space<vmem>>, vector<256x32xf32>
    tpu.vector_store %arg5[%c0_7, %c0_8], %8 {strides = array<i32>} : memref<256x32xf32, #tpu.memory_space<vmem>>, vector<256x32xf32>,
    return
  }
  func.func @transform_0(%arg0: i32) -> (i32, i32) {
    %c0_i32 = arith.constant 0 : i32
    %c0_i32_0 = arith.constant 0 : i32
    return %arg0, %c0_i32 : i32, i32
  }
  func.func @transform_1(%arg0: i32) -> (i32, i32) {
    %c0_i32 = arith.constant 0 : i32
    %c0_i32_0 = arith.constant 0 : i32
    %c0_i32_1 = arith.constant 0 : i32
    return %c0_i32, %c0_i32_0 : i32, i32
  }
  func.func @transform_2(%arg0: i32) -> (i32, i32) {
    %c0_i32 = arith.constant 0 : i32
    %c0_i32_0 = arith.constant 0 : i32
    %c0_i32_1 = arith.constant 0 : i32
    return %c0_i32, %c0_i32_0 : i32, i32
  }
  func.func @transform_3(%arg0: i32) -> (i32, i32) {
    %c0_i32 = arith.constant 0 : i32
    %c0_i32_0 = arith.constant 0 : i32
    %c0_i32_1 = arith.constant 0 : i32
    return %c0_i32, %c0_i32_0 : i32, i32
  }
  func.func @transform_4(%arg0: i32) -> (i32, i32) {
    %c0_i32 = arith.constant 0 : i32
    %c0_i32_0 = arith.constant 0 : i32
    return %arg0, %c0_i32 : i32, i32
  }
}

module attributes {stable_mosaic.version = 11 : i64} {
  func.func @_se_residual_mish_kernel(%arg0: i32, %arg1: i32, %arg2: memref<1x256x32xf32, #tpu.memory_space<vmem>>, %arg3: memref<1x256x32xf32, #tpu.memory_space<vmem>>, %arg4: memref<1x1x32xf32, #tpu.memory_space<vmem>>, %arg5: memref<1x256x32xf32, #tpu.memory_space<vmem>>) attributes {dimension_semantics = [#tpu.dimension_semantics<parallel>, #tpu.dimension_semantics<parallel>], iteration_bounds = array<i64: 2, 1>, scalar_prefetch = 0 : i64, scratch_operands = 0 : i64, tpu.core_type = #tpu.core_type<tc>, window_params = [{transform_indices = @transform_0, window_bounds = array<i64: 1, 256, 32>}, {transform_indices = @transform_1, window_bounds = array<i64: 1, 256, 32>}, {transform_indices = @transform_2, window_bounds = array<i64: 1, 1, 32>}, {transform_indices = @transform_3, window_bounds = array<i64: 1, 256, 32>}]} {
    %c0 = arith.constant 0 : index
    %c0_0 = arith.constant 0 : index
    %c0_1 = arith.constant 0 : index
    %0 = vector.load %arg2[%c0, %c0_0, %c0_1] : memref<1x256x32xf32, #tpu.memory_space<vmem>>, vector<1x256x32xf32>
    %c0_2 = arith.constant 0 : index
    %c0_3 = arith.constant 0 : index
    %c0_4 = arith.constant 0 : index
    %1 = vector.load %arg4[%c0_2, %c0_3, %c0_4] : memref<1x1x32xf32, #tpu.memory_space<vmem>>, vector<1x1x32xf32>
    %2 = vector.broadcast %1 : vector<1x1x32xf32> to vector<1x256x32xf32>
    %3 = arith.mulf %0, %2 : vector<1x256x32xf32>
    %c0_5 = arith.constant 0 : index
    %c0_6 = arith.constant 0 : index
    %c0_7 = arith.constant 0 : index
    %4 = vector.load %arg3[%c0_5, %c0_6, %c0_7] : memref<1x256x32xf32, #tpu.memory_space<vmem>>, vector<1x256x32xf32>
    %5 = arith.addf %3, %4 : vector<1x256x32xf32>
    %cst = arith.constant 2.000000e+01 : f32
    %6 = vector.broadcast %cst : f32 to vector<1x256x32xf32>
    %7 = arith.minimumf %5, %6 : vector<1x256x32xf32>
    %8 = math.exp %7 : vector<1x256x32xf32>
    %cst_8 = arith.constant 2.000000e+00 : f32
    %9 = vector.broadcast %cst_8 : f32 to vector<1x256x32xf32>
    %10 = arith.addf %8, %9 : vector<1x256x32xf32>
    %11 = arith.mulf %8, %10 : vector<1x256x32xf32>
    %12 = arith.mulf %5, %11 : vector<1x256x32xf32>
    %cst_9 = arith.constant 2.000000e+00 : f32
    %13 = vector.broadcast %cst_9 : f32 to vector<1x256x32xf32>
    %14 = arith.addf %11, %13 : vector<1x256x32xf32>
    %15 = tpu.reciprocal %14 {approx = true} : vector<1x256x32xf32> -> vector<1x256x32xf32>
    %16 = arith.mulf %12, %15 : vector<1x256x32xf32>
    %c0_10 = arith.constant 0 : index
    %c0_11 = arith.constant 0 : index
    %c0_12 = arith.constant 0 : index
    %17 = vector.load %arg5[%c0_10, %c0_11, %c0_12] : memref<1x256x32xf32, #tpu.memory_space<vmem>>, vector<1x256x32xf32>
    tpu.vector_store %arg5[%c0_10, %c0_11, %c0_12], %16 {strides = array<i32>} : memref<1x256x32xf32, #tpu.memory_space<vmem>>, vector<1x256x32xf32>,
    return
  }
  func.func @transform_0(%arg0: i32, %arg1: i32) -> (i32, i32, i32) {
    %c0_i32 = arith.constant 0 : i32
    %c0_i32_0 = arith.constant 0 : i32
    return %arg0, %arg1, %c0_i32 : i32, i32, i32
  }
  func.func @transform_1(%arg0: i32, %arg1: i32) -> (i32, i32, i32) {
    %c0_i32 = arith.constant 0 : i32
    %c0_i32_0 = arith.constant 0 : i32
    return %arg0, %arg1, %c0_i32 : i32, i32, i32
  }
  func.func @transform_2(%arg0: i32, %arg1: i32) -> (i32, i32, i32) {
    %c0_i32 = arith.constant 0 : i32
    %c0_i32_0 = arith.constant 0 : i32
    %c0_i32_1 = arith.constant 0 : i32
    return %arg0, %c0_i32, %c0_i32_0 : i32, i32, i32
  }
  func.func @transform_3(%arg0: i32, %arg1: i32) -> (i32, i32, i32) {
    %c0_i32 = arith.constant 0 : i32
    %c0_i32_0 = arith.constant 0 : i32
    return %arg0, %arg1, %c0_i32 : i32, i32, i32
  }
}

</mosaic_0001>

<bundles_post_ra>
// kernel: resblock_forward.4
= control target key start
LH: loop header
LB: loop body
LE: loop exit
PB: predicated region body
PF: predicated region fallthrough
CT: control target
= control target key end

     0   :  { %s1308_s15 = smov 0   ;;  %s1811_s0 = inlined_call_operand.vmem [shape: f32[512,144], index: 0, kind: input, shape index: {}]   ;;  %s1812_s1 = inlined_call_operand.vmem [shape: f32[144,32], index: 1, kind: input, shape index: {}]   ;;  %s1813_s2 = inlined_call_operand.vmem [shape: f32[1,32], index: 2, kind: input, shape index: {}]   ;;  %s1814_s3 = inlined_call_operand.vmem [shape: f32[1,32], index: 3, kind: input, shape index: {}]   ;;  %s1815_s4 = inlined_call_operand.vmem [shape: f32[512,32], index: 4, kind: output, shape index: {}]  }
   0x1 LB: > { %s1058_s16 = sadd.s32 4294967295, %s1281_s15   ;;  %p1062_p0 = scmp.ge.s32.totalorder %s1281_s15, 1  ;;  %s1281_s15 = sphi %s1308_s15, %s14_s15  }
   0x2   : > { %p164_p1 = scmp.lt.s32.totalorder %s1281_s15, 3 }
   0x4   : > { %p165_p2 = pnand %p1062_p0, %p164_p1 }
   0x5   : > { %s1063_s21 = sshll.u32 (!%p165_p2), %s1058_s16, 5 }
   0x6   : > { %168 = sbr.rel (%p165_p2) target bundleno = 329 (0x149), region = 36  ;;  %p192_p3 = scmp.lt.s32.totalorder (!%p165_p2), %s1063_s21, 63 }
   0xb   : > { %v283_v0 = vld [vmem:[%s1812_s1 + $0x78] sm:$0xff]  ;;  %v282_v1 = vld [vmem:[%s1812_s1 + $0x70] sm:$0xff]  ;;  %v1325_v2 = vld [vmem:[%s1812_s1 + $0x88] sm:$0xff]  ;;  %s1817_s21 = smov (!%p192_p3, %s1063_s21), 63  ;;  %vm286_vm0 = vcmask 130048   ;;  %vm969_vm1 = vcmask 261120  }
   0xc   : > { %383 = vmatpush.msra.mxu0 %v283_v0  ;;  %1103 = vmatpush.msra.mxu2 %v283_v0  ;;  %v1330_v3 = vld [vmem:[%s1812_s1 + $0x80] sm:$0xff]  ;;  %v281_v4 = vld [vmem:[%s1812_s1 + $0x68] sm:$0xff]  ;;  %s1102_s30 = sshll.u32 %s1817_s21, 4  ;;  %v279_v6 = vld [vmem:[%s1812_s1 + $0x58] sm:$0xff]  ;;  %s1067_s10 = sshll.u32 %s1817_s21, 3 }
   0xd   : > { %1104 = vmatpush.msra.mxu3 %v283_v0  ;;  %510 = vmatpush.msra.mxu1 %v1325_v2  ;;  %v280_v5 = vld [vmem:[%s1812_s1 + $0x60] sm:$0xff]  ;;  %s1346_s7 = scalar_lea.vmem %s1811_s0, %s1102_s30  ;;  %v278_v8 = vld [vmem:[%s1812_s1 + $0x50] sm:$0xff]  ;;  %v277_v9 = vld [vmem:[%s1812_s1 + $0x48] sm:$0xff]  ;;  %s1510_s16 = scalar_lea.vmem %s1815_s4, %s1067_s10 }
   0xe   : > { %384 = vmatpush.msra.mxu0 %v282_v1  ;;  %1105 = vmatpush.msra.mxu2 %v282_v1  ;;  %v205_v7 = vld [vmem:[%s1346_s7 + $0x8] sm:$0xff]  ;;  %v276_v10 = vld [vmem:[%s1812_s1 + $0x40] sm:$0xff]  ;;  %v207_v11 = vld [vmem:[%s1346_s7 + $0x18] sm:$0xff] }
   0xf   : > { %1106 = vmatpush.msra.mxu3 %v282_v1  ;;  %511 = vmatpush.msra.mxu1 %v1330_v3  ;;  %v275_v12 = vld [vmem:[%s1812_s1 + $0x38] sm:$0xff]  ;;  %v274_v13 = vld [vmem:[%s1812_s1 + $0x30] sm:$0xff]  ;;  %v273_v14 = vld [vmem:[%s1812_s1 + $0x28] sm:$0xff] }
  0x10   : > { %385 = vmatpush.msra.mxu0 %v281_v4  ;;  %1107 = vmatpush.msra.mxu2 %v281_v4  ;;  %v272_v15 = vld [vmem:[%s1812_s1 + $0x20] sm:$0xff]  ;;  %v209_v16 = vld [vmem:[%s1346_s7 + $0x28] sm:$0xff]  ;;  %v271_v17 = vld [vmem:[%s1812_s1 + $0x18] sm:$0xff] }
  0x11   : > { %1108 = vmatpush.msra.mxu3 %v281_v4  ;;  %1068 = vmatmul.msk.f32.vlgmr.msra.gmra.mxu1 %vm286_vm0, %v205_v7  ;;  %v270_v18 = vld [vmem:[%s1812_s1 + $0x10] sm:$0xff]  ;;  %v269_v19 = vld [vmem:[%s1812_s1 + $0x8] sm:$0xff]  ;;  %v268_v20 = vld [vmem:[%s1812_s1] sm:$0xff] }
  0x12   : > { %386 = vmatpush.msra.mxu0 %v280_v5  ;;  %1109 = vmatpush.msra.mxu2 %v280_v5  ;;  %v204_v21 = vld [vmem:[%s1346_s7] sm:$0xff]  ;;  %v234_v22 = vld [vmem:[%s1346_s7 + $0xf0] sm:$0xff]  ;;  %v211_v24 = vld [vmem:[%s1346_s7 + $0x38] sm:$0xff] }
  0x13   : > { %1110 = vmatpush.msra.mxu3 %v280_v5  ;;  %v266_v23 = vld [vmem:[%s1346_s7 + $0x1f0] sm:$0xff]  ;;  %v236_v26 = vld [vmem:[%s1346_s7 + $0x100] sm:$0xff]  ;;  %v241_v27 = vld [vmem:[%s1346_s7 + $0x128] sm:$0xff] }
  0x14   : > { %387 = vmatpush.msra.mxu0 %v279_v6  ;;  %1111 = vmatpush.msra.mxu2 %v279_v6  ;;  %v206_v25 = vld [vmem:[%s1346_s7 + $0x10] sm:$0xff]  ;;  %v213_v28 = vld [vmem:[%s1346_s7 + $0x48] sm:$0xff]  ;;  %v208_v29 = vld [vmem:[%s1346_s7 + $0x20] sm:$0xff] }
  0x15   : > { %1112 = vmatpush.msra.mxu3 %v279_v6  ;;  %v238_v30 = vld [vmem:[%s1346_s7 + $0x110] sm:$0xff]  ;;  %v243_v31 = vld [vmem:[%s1346_s7 + $0x138] sm:$0xff]  ;;  %v240_v34 = vld [vmem:[%s1346_s7 + $0x120] sm:$0xff] }
  0x16   : > { %388 = vmatpush.msra.mxu0 %v278_v8  ;;  %1113 = vmatpush.msra.mxu2 %v278_v8  ;;  %v215_v32 = vld [vmem:[%s1346_s7 + $0x58] sm:$0xff]  ;;  %v210_v33 = vld [vmem:[%s1346_s7 + $0x30] sm:$0xff]  ;;  %v245_v35 = vld [vmem:[%s1346_s7 + $0x148] sm:$0xff] }
  0x17   : > { %1114 = vmatpush.msra.mxu3 %v278_v8  ;;  %v217_v36 = vld [vmem:[%s1346_s7 + $0x68] sm:$0xff]  ;;  %v212_v37 = vld [vmem:[%s1346_s7 + $0x40] sm:$0xff]  ;;  %v242_v38 = vld [vmem:[%s1346_s7 + $0x130] sm:$0xff] }
  0x18   : > { %389 = vmatpush.msra.mxu0 %v277_v9  ;;  %1115 = vmatpush.msra.mxu2 %v277_v9  ;;  %v247_v39 = vld [vmem:[%s1346_s7 + $0x158] sm:$0xff]  ;;  %v214_v41 = vld [vmem:[%s1346_s7 + $0x50] sm:$0xff]  ;;  %v244_v42 = vld [vmem:[%s1346_s7 + $0x140] sm:$0xff] }
  0x19   : > { %1116 = vmatpush.msra.mxu3 %v277_v9  ;;  %1069 = vmatmul.msk.f32.gmra.mxu1 %vm286_vm0, %v207_v11  ;;  %v219_v40 = vld [vmem:[%s1346_s7 + $0x78] sm:$0xff]  ;;  %v249_v43 = vld [vmem:[%s1346_s7 + $0x168] sm:$0xff]  ;;  %v216_v45 = vld [vmem:[%s1346_s7 + $0x60] sm:$0xff] }
  0x1a   : > { %390 = vmatpush.msra.mxu0 %v276_v10  ;;  %1117 = vmatpush.msra.mxu2 %v276_v10  ;;  %v221_v44 = vld [vmem:[%s1346_s7 + $0x88] sm:$0xff]  ;;  %v246_v46 = vld [vmem:[%s1346_s7 + $0x150] sm:$0xff]  ;;  %v251_v47 = vld [vmem:[%s1346_s7 + $0x178] sm:$0xff] }
  0x1b   : > { %1118 = vmatpush.msra.mxu3 %v276_v10  ;;  %v223_v48 = vld [vmem:[%s1346_s7 + $0x98] sm:$0xff]  ;;  %v218_v49 = vld [vmem:[%s1346_s7 + $0x70] sm:$0xff]  ;;  %v248_v50 = vld [vmem:[%s1346_s7 + $0x160] sm:$0xff] }
  0x1c   : > { %391 = vmatpush.msra.mxu0 %v275_v12  ;;  %1119 = vmatpush.msra.mxu2 %v275_v12  ;;  %v253_v51 = vld [vmem:[%s1346_s7 + $0x188] sm:$0xff]  ;;  %v220_v53 = vld [vmem:[%s1346_s7 + $0x80] sm:$0xff]  ;;  %v250_v54 = vld [vmem:[%s1346_s7 + $0x170] sm:$0xff] }
  0x1d   : > { %1120 = vmatpush.msra.mxu3 %v275_v12  ;;  %v225_v52 = vld [vmem:[%s1346_s7 + $0xa8] sm:$0xff]  ;;  %v255_v55 = vld [vmem:[%s1346_s7 + $0x198] sm:$0xff]  ;;  %v222_v57 = vld [vmem:[%s1346_s7 + $0x90] sm:$0xff] }
  0x1e   : > { %392 = vmatpush.msra.mxu0 %v274_v13  ;;  %1121 = vmatpush.msra.mxu2 %v274_v13  ;;  %v227_v56 = vld [vmem:[%s1346_s7 + $0xb8] sm:$0xff]  ;;  %v252_v58 = vld [vmem:[%s1346_s7 + $0x180] sm:$0xff]  ;;  %v257_v59 = vld [vmem:[%s1346_s7 + $0x1a8] sm:$0xff] }
  0x1f   : > { %1122 = vmatpush.msra.mxu3 %v274_v13  ;;  %v229_v60 = vld [vmem:[%s1346_s7 + $0xc8] sm:$0xff]  ;;  %v224_v61 = vld [vmem:[%s1346_s7 + $0xa0] sm:$0xff]  ;;  %v254_v62 = vld [vmem:[%s1346_s7 + $0x190] sm:$0xff] }
  0x20   : > { %393 = vmatpush.msra.mxu0 %v273_v14  ;;  %1123 = vmatpush.msra.mxu2 %v273_v14  ;;  %v259_v63 = vld [vmem:[%s1346_s7 + $0x1b8] sm:$0xff]  ;;  %v226_v1 = vld [vmem:[%s1346_s7 + $0xb0] sm:$0xff]  ;;  %v233_v4 = vld [vmem:[%s1346_s7 + $0xe8] sm:$0xff] }
  0x21   : > { %1124 = vmatpush.msra.mxu3 %v273_v14  ;;  %1070 = vmatmul.msk.f32.gmra.mxu1 %vm286_vm0, %v209_v16  ;;  %v231_v0 = vld [vmem:[%s1346_s7 + $0xd8] sm:$0xff]  ;;  %v228_v5 = vld [vmem:[%s1346_s7 + $0xc0] sm:$0xff]  ;;  %v258_v6 = vld [vmem:[%s1346_s7 + $0x1b0] sm:$0xff] }
  0x22   : > { %394 = vmatpush.msra.mxu0 %v272_v15  ;;  %1125 = vmatpush.msra.mxu2 %v272_v15  ;;  %v263_v7 = vld [vmem:[%s1346_s7 + $0x1d8] sm:$0xff]  ;;  %v230_v10 = vld [vmem:[%s1346_s7 + $0xd0] sm:$0xff]  ;;  %v260_v11 = vld [vmem:[%s1346_s7 + $0x1c0] sm:$0xff] }
  0x23   : > { %1126 = vmatpush.msra.mxu3 %v272_v15  ;;  %v235_v8 = vld [vmem:[%s1346_s7 + $0xf8] sm:$0xff]  ;;  %v265_v12 = vld [vmem:[%s1346_s7 + $0x1e8] sm:$0xff]  ;;  %v232_v15 = vld [vmem:[%s1346_s7 + $0xe0] sm:$0xff] }
  0x24   : > { %395 = vmatpush.msra.mxu0 %v271_v17  ;;  %1127 = vmatpush.msra.mxu2 %v271_v17  ;;  %v237_v13 = vld [vmem:[%s1346_s7 + $0x108] sm:$0xff]  ;;  %v262_v16 = vld [vmem:[%s1346_s7 + $0x1d0] sm:$0xff] }
  0x25   : > { %1128 = vmatpush.msra.mxu3 %v271_v17  ;;  %v267_v17 = vld [vmem:[%s1346_s7 + $0x1f8] sm:$0xff] }
  0x26   : > { %396 = vmatpush.msra.mxu0 %v270_v18  ;;  %1129 = vmatpush.msra.mxu2 %v270_v18 }
  0x27   : > { %1130 = vmatpush.msra.mxu3 %v270_v18  ;;  %v239_v18 = vld [vmem:[%s1346_s7 + $0x118] sm:$0xff] }
  0x28   : > { %397 = vmatpush.msra.mxu0 %v269_v19  ;;  %1131 = vmatpush.msra.mxu2 %v269_v19 }
  0x29   : > { %1132 = vmatpush.msra.mxu3 %v269_v19  ;;  %1071 = vmatmul.msk.f32.gmra.mxu1 %vm286_vm0, %v211_v24 }
  0x2a   : > { %398 = vmatpush.msra.mxu0 %v268_v20  ;;  %1133 = vmatpush.msra.mxu2 %v268_v20 }
  0x2b   : > { %1134 = vmatpush.msra.mxu3 %v268_v20  ;;  %399 = vmatmul.f32.vlgmr.msra.gmra.mxu0 %v204_v21  ;;  %v264_v20 = vld [vmem:[%s1346_s7 + $0x1e0] sm:$0xff] }
  0x2c   : > { %444 = vmatmul.f32.vlgmr.msra.gmra.mxu2 %v234_v22  ;;  %492 = vmatmul.f32.vlgmr.msra.gmra.mxu3 %v266_v23 }
  0x2d   : > { %1135 = vmatpush.msrb.mxu3 %v1325_v2  ;;  %v256_v2 = vld [vmem:[%s1346_s7 + $0x1a0] sm:$0xff] }
  0x2f   : > { %1136 = vmatpush.msrb.mxu3 %v1330_v3  ;;  %v261_v3 = vld [vmem:[%s1346_s7 + $0x1c8] sm:$0xff] }
  0x31   : > { %1072 = vmatmul.msk.f32.gmra.mxu1 %vm286_vm0, %v213_v28 }
  0x33   : > { %402 = vmatmul.f32.gmra.mxu0 %v206_v25 }
  0x34   : > { %447 = vmatmul.f32.gmra.mxu2 %v236_v26  ;;  %1086 = vmatmul.msk.f32.vlgmr.msrb.gmra.mxu3 %vm286_vm0, %v241_v27 }
  0x39   : > { %1073 = vmatmul.msk.f32.gmra.mxu1 %vm286_vm0, %v215_v32 }
  0x3b   : > { %405 = vmatmul.f32.gmra.mxu0 %v208_v29 }
  0x3c   : > { %450 = vmatmul.f32.gmra.mxu2 %v238_v30  ;;  %1087 = vmatmul.msk.f32.gmra.mxu3 %vm286_vm0, %v243_v31 }
  0x41   : > { %1074 = vmatmul.msk.f32.gmra.mxu1 %vm286_vm0, %v217_v36 }
  0x43   : > { %408 = vmatmul.f32.gmra.mxu0 %v210_v33 }
  0x44   : > { %453 = vmatmul.f32.gmra.mxu2 %v240_v34  ;;  %1088 = vmatmul.msk.f32.gmra.mxu3 %vm286_vm0, %v245_v35 }
  0x49   : > { %1075 = vmatmul.msk.f32.gmra.mxu1 %vm286_vm0, %v219_v40 }
  0x4b   : > { %411 = vmatmul.f32.gmra.mxu0 %v212_v37 }
  0x4c   : > { %456 = vmatmul.f32.gmra.mxu2 %v242_v38  ;;  %1089 = vmatmul.msk.f32.gmra.mxu3 %vm286_vm0, %v247_v39 }
  0x51   : > { %1076 = vmatmul.msk.f32.gmra.mxu1 %vm286_vm0, %v221_v44 }
  0x53   : > { %414 = vmatmul.f32.gmra.mxu0 %v214_v41 }
  0x54   : > { %459 = vmatmul.f32.gmra.mxu2 %v244_v42  ;;  %1090 = vmatmul.msk.f32.gmra.mxu3 %vm286_vm0, %v249_v43 }
  0x59   : > { %1077 = vmatmul.msk.f32.gmra.mxu1 %vm286_vm0, %v223_v48 }
  0x5b   : > { %417 = vmatmul.f32.gmra.mxu0 %v216_v45 }
  0x5c   : > { %462 = vmatmul.f32.gmra.mxu2 %v246_v46  ;;  %1091 = vmatmul.msk.f32.gmra.mxu3 %vm286_vm0, %v251_v47 }
  0x61   : > { %1078 = vmatmul.msk.f32.gmra.mxu1 %vm286_vm0, %v225_v52 }
  0x63   : > { %420 = vmatmul.f32.gmra.mxu0 %v218_v49 }
  0x64   : > { %465 = vmatmul.f32.gmra.mxu2 %v248_v50  ;;  %1092 = vmatmul.msk.f32.gmra.mxu3 %vm286_vm0, %v253_v51  ;;  %v1493_v51 = vld [vmem:[%s1813_s2] ss:$0 sm:$0xff] }
  0x69   : > { %1079 = vmatmul.msk.f32.gmra.mxu1 %vm286_vm0, %v227_v56 }
  0x6b   : > { %423 = vmatmul.f32.gmra.mxu0 %v220_v53 }
  0x6c   : > { %468 = vmatmul.f32.gmra.mxu2 %v250_v54  ;;  %1093 = vmatmul.msk.f32.gmra.mxu3 %vm286_vm0, %v255_v55 }
  0x71   : > { %1080 = vmatmul.msk.f32.gmra.mxu1 %vm286_vm0, %v229_v60 }
  0x73   : > { %426 = vmatmul.f32.gmra.mxu0 %v222_v57  ;;  %v1503_v57 = vld [vmem:[%s1814_s3] ss:$0 sm:$0xff] }
  0x74   : > { %471 = vmatmul.f32.gmra.mxu2 %v252_v58  ;;  %1094 = vmatmul.msk.f32.gmra.mxu3 %vm286_vm0, %v257_v59 }
  0x79   : > { %1081 = vmatmul.msk.f32.gmra.mxu1 %vm286_vm0, %v231_v0 }
  0x7b   : > { %429 = vmatmul.f32.gmra.mxu0 %v224_v61 }
  0x7c   : > { %474 = vmatmul.f32.gmra.mxu2 %v254_v62  ;;  %1095 = vmatmul.msk.f32.gmra.mxu3 %vm286_vm0, %v259_v63 }
  0x81   : > { %1082 = vmatmul.msk.f32.gmra.mxu1 %vm286_vm0, %v233_v4 }
  0x83   : > { %432 = vmatmul.f32.gmra.mxu0 %v226_v1 }
  0x84   : > { %477 = vmatmul.f32.gmra.mxu2 %v256_v2  ;;  %1096 = vmatmul.msk.f32.gmra.mxu3 %vm286_vm0, %v261_v3 }
  0x89   : > { %1083 = vmatmul.msk.f32.gmra.mxu1 %vm286_vm0, %v235_v8 }
  0x8b   : > { %435 = vmatmul.f32.gmra.mxu0 %v228_v5 }
  0x8c   : > { %480 = vmatmul.f32.gmra.mxu2 %v258_v6  ;;  %1097 = vmatmul.msk.f32.gmra.mxu3 %vm286_vm0, %v263_v7 }
  0x8e   : > { %v513_v9 = vpop.f32.mrf.mxu1 }
  0x91   : > { %1084 = vmatmul.msk.f32.gmra.mxu1 %vm286_vm0, %v237_v13 }
  0x93   : > { %438 = vmatmul.f32.gmra.mxu0 %v230_v10 }
  0x94   : > { %483 = vmatmul.f32.gmra.mxu2 %v260_v11  ;;  %1098 = vmatmul.msk.f32.gmra.mxu3 %vm286_vm0, %v265_v12 }
  0x96   : > { %v516_v14 = vpop.f32.mrf.mxu1 }
  0x99   : > { %1085 = vmatmul.msk.f32.gmra.mxu1 %vm286_vm0, %v239_v18 }
  0x9b   : > { %441 = vmatmul.f32.gmra.mxu0 %v232_v15 }
  0x9c   : > { %486 = vmatmul.f32.gmra.mxu2 %v262_v16  ;;  %1099 = vmatmul.msk.f32.gmra.mxu3 %vm286_vm0, %v267_v17 }
  0x9e   : > { %v519_v19 = vpop.f32.mrf.mxu1 }
  0xa4   : > { %489 = vmatmul.f32.gmra.mxu2 %v264_v20 }
  0xa6   : > { %v522_v23 = vpop.f32.mrf.mxu1 }
  0xa8   : > { %v400_v21 = vpop.f32.mrf.mxu0 }
  0xa9   : > { %v514_v22 = vadd.f32 %v513_v9, %v400_v21 }
  0xab   : > { %v609_v24 = vmin.f32 %v514_v22, 20.0 }
  0xad   : > { %v641_v25 = vmul.f32 1.442695, %v609_v24 }
  0xae   : > { %v525_v30 = vpop.f32.mrf.mxu1 }
  0xaf   : > { %1147 = vpow2.f32 %v641_v25  ;;  %v1482_v26 = vpop.f32.mrf.mxu2  ;;  %v1484_v27 = vpop.f32.mrf.mxu3 }
  0xb0   : > { %v403_v28 = vpop.f32.mrf.mxu0 }
  0xb1   : > { %v517_v29 = vadd.f32 %v516_v14, %v403_v28 }
  0xb3   : > { %v610_v31 = vmin.f32 %v517_v29, 20.0 }
  0xb5   : > { %v1148_v32 = vpop.eup %1147  ;;  %v643_v33 = vmul.f32 1.442695, %v610_v31 }
  0xb6   : > { %v705_v34 = vadd.f32 2.0, %v1148_v32  ;;  %v528_v41 = vpop.f32.mrf.mxu1 }
  0xb7   : > { %1149 = vpow2.f32 %v643_v33  ;;  %v1486_v35 = vpop.f32.mrf.mxu2  ;;  %v567_v36 = vpop.f32.mrf.mxu3 }
  0xb8   : > { %v737_v37 = vmul.f32 %v1148_v32, %v705_v34  ;;  %v406_v38 = vpop.f32.mrf.mxu0 }
  0xb9   : > { %v520_v39 = vadd.f32 %v519_v19, %v406_v38 }
  0xba   : > { %v801_v40 = vadd.f32 2.0, %v737_v37  ;;  %v769_v50 = vmul.f32 %v737_v37, %v514_v22 }
  0xbb   : > { %v611_v42 = vmin.f32 %v520_v39, 20.0 }
  0xbc   : > { %1151 = vrcp.f32 %v801_v40 }
  0xbd   : > { %v1150_v43 = vpop.eup %1149  ;;  %v645_v44 = vmul.f32 1.442695, %v611_v42 }
  0xbe   : > { %v706_v45 = vadd.f32 2.0, %v1150_v43  ;;  %v1497_v55 = vpop.f32.mrf.mxu1 }
  0xbf   : > { %1153 = vpow2.f32 %v645_v44  ;;  %v1488_v46 = vpop.f32.mrf.mxu2  ;;  %v570_v47 = vpop.f32.mrf.mxu3 }
  0xc0   : > { %v738_v48 = vmul.f32 %v1150_v43, %v706_v45  ;;  %v409_v49 = vpop.f32.mrf.mxu0 }
  0xc1   : > { %v1495_v52 = vadd.f32 %v522_v23, %v409_v49 }
  0xc2   : > { %v1152_v53 = vpop.eup %1151  ;;  %v802_v54 = vadd.f32 2.0, %v738_v48  ;;  %v770_v5 = vmul.f32 %v738_v48, %v517_v29 }
  0xc3   : > { %v865_v56 = vmul.f32 %v1152_v53, %v769_v50  ;;  %v612_v58 = vmin.f32 %v1495_v52, 20.0 }
  0xc4   : > { %1155 = vrcp.f32 %v802_v54 }
  0xc5   : > { %v1154_v59 = vpop.eup %1153  ;;  %v901_v60 = vmul.f32 %v1493_v51, %v865_v56  ;;  %v647_v61 = vmul.f32 1.442695, %v612_v58 }
  0xc6   : > { %v707_v62 = vadd.f32 2.0, %v1154_v59  ;;  %v1520_v10 = vpop.f32.mrf.mxu1 }
  0xc7   : > { %v937_v63 = vadd.f32 %v1503_v57, %v901_v60  ;;  %1157 = vpow2.f32 %v647_v61  ;;  %v454_v0 = vpop.f32.mrf.mxu2  ;;  %v573_v1 = vpop.f32.mrf.mxu3 }
  0xc8   : > { %v739_v2 = vmul.f32 %v1154_v59, %v707_v62  ;;  %v1513_v3 = vadd.f32 %v567_v36, %v454_v0  ;;  %v412_v4 = vpop.f32.mrf.mxu0 }
  0xc9   : > { %970 = vst.msk [vmem:[%s1510_s16] sm:$0xff] %vm969_vm1, %v937_v63  ;;  %v1517_v6 = vadd.f32 %v525_v30, %v412_v4 }
  0xca   : > { %v1156_v7 = vpop.eup %1155  ;;  %v803_v8 = vadd.f32 2.0, %v739_v2  ;;  %v627_v9 = vmin.f32 %v1513_v3, 20.0  ;;  %v771_v24 = vmul.f32 %v739_v2, %v520_v39 }
  0xcb   : > { %v866_v11 = vmul.f32 %v1156_v7, %v770_v5  ;;  %v613_v12 = vmin.f32 %v1517_v6, 20.0 }
  0xcc   : > { %1159 = vrcp.f32 %v803_v8  ;;  %v677_v13 = vmul.f32 1.442695, %v627_v9 }
  0xcd   : > { %v1158_v14 = vpop.eup %1157  ;;  %v902_v15 = vmul.f32 %v1493_v51, %v866_v11  ;;  %v649_v16 = vmul.f32 1.442695, %v613_v12 }
  0xce   : > { %v708_v17 = vadd.f32 2.0, %v1158_v14  ;;  %1161 = vpow2.f32 %v677_v13  ;;  %v1532_v31 = vpop.f32.mrf.mxu1 }
  0xcf   : > { %v938_v18 = vadd.f32 %v1503_v57, %v902_v15  ;;  %1163 = vpow2.f32 %v649_v16  ;;  %v457_v19 = vpop.f32.mrf.mxu2  ;;  %v576_v20 = vpop.f32.mrf.mxu3 }
  0xd0   : > { %v740_v21 = vmul.f32 %v1158_v14, %v708_v17  ;;  %v1525_v22 = vadd.f32 %v570_v47, %v457_v19  ;;  %v415_v23 = vpop.f32.mrf.mxu0 }
  0xd1   : > { %971 = vst.msk [vmem:[%s1510_s16 + $0x8] sm:$0xff] %vm969_vm1, %v938_v18  ;;  %v1529_v25 = vadd.f32 %v528_v41, %v415_v23 }
  0xd2   : > { %v1160_v28 = vpop.eup %1159  ;;  %v804_v29 = vadd.f32 2.0, %v740_v21  ;;  %v628_v30 = vmin.f32 %v1525_v22, 20.0  ;;  %v772_v50 = vmul.f32 %v740_v21, %v1495_v52 }
  0xd3   : > { %v867_v32 = vmul.f32 %v1160_v28, %v771_v24  ;;  %v614_v33 = vmin.f32 %v1529_v25, 20.0 }
  0xd4   : > { %v1162_v34 = vpop.eup %1161  ;;  %1165 = vrcp.f32 %v804_v29  ;;  %v679_v36 = vmul.f32 1.442695, %v628_v30 }
  0xd5   : > { %v1164_v37 = vpop.eup %1163  ;;  %v903_v38 = vmul.f32 %v1493_v51, %v867_v32  ;;  %v723_v40 = vadd.f32 2.0, %v1162_v34  ;;  %v651_v39 = vmul.f32 1.442695, %v614_v33 }
  0xd6   : > { %v709_v41 = vadd.f32 2.0, %v1164_v37  ;;  %1167 = vpow2.f32 %v679_v36  ;;  %v1548_v60 = vpop.f32.mrf.mxu1 }
  0xd7   : > { %v939_v42 = vadd.f32 %v1503_v57, %v903_v38  ;;  %v755_v43 = vmul.f32 %v1162_v34, %v723_v40  ;;  %1169 = vpow2.f32 %v651_v39  ;;  %v460_v44 = vpop.f32.mrf.mxu2  ;;  %v1537_v45 = vpop.f32.mrf.mxu3 }
  0xd8   : > { %v741_v47 = vmul.f32 %v1164_v37, %v709_v41  ;;  %v1539_v48 = vadd.f32 %v573_v1, %v460_v44  ;;  %v418_v49 = vpop.f32.mrf.mxu0 }
  0xd9   : > { %972 = vst.msk [vmem:[%s1510_s16 + $0x10] sm:$0xff] %vm969_vm1, %v939_v42  ;;  %v819_v53 = vadd.f32 2.0, %v755_v43  ;;  %v1545_v54 = vadd.f32 %v1497_v55, %v418_v49  ;;  %v787_v11 = vmul.f32 %v755_v43, %v1513_v3 }
  0xda   : > { %v1166_v56 = vpop.eup %1165  ;;  %v805_v58 = vadd.f32 2.0, %v741_v47  ;;  %v629_v59 = vmin.f32 %v1539_v48, 20.0  ;;  %v773_v16 = vmul.f32 %v741_v47, %v1517_v6 }
  0xdb   : > { %v868_v61 = vmul.f32 %v1166_v56, %v772_v50  ;;  %1171 = vrcp.f32 %v819_v53  ;;  %v615_v62 = vmin.f32 %v1545_v54, 20.0 }
  0xdc   : > { %v1168_v63 = vpop.eup %1167  ;;  %1173 = vrcp.f32 %v805_v58  ;;  %v681_v0 = vmul.f32 1.442695, %v629_v59 }
  0xdd   : > { %v1170_v1 = vpop.eup %1169  ;;  %v904_v52 = vmul.f32 %v1493_v51, %v868_v61  ;;  %v724_v2 = vadd.f32 2.0, %v1168_v63  ;;  %v653_v55 = vmul.f32 1.442695, %v615_v62 }
  0xde   : > { %v710_v4 = vadd.f32 2.0, %v1170_v1  ;;  %1175 = vpow2.f32 %v681_v0  ;;  %v1565_v28 = vpop.f32.mrf.mxu1 }
  0xdf   : > { %v940_v5 = vadd.f32 %v1503_v57, %v904_v52  ;;  %v756_v7 = vmul.f32 %v1168_v63, %v724_v2  ;;  %1177 = vpow2.f32 %v653_v55  ;;  %v463_v8 = vpop.f32.mrf.mxu2  ;;  %v1553_v9 = vpop.f32.mrf.mxu3 }
  0xe0   : > { %v742_v12 = vmul.f32 %v1170_v1, %v710_v4  ;;  %v1556_v13 = vadd.f32 %v576_v20, %v463_v8  ;;  %v421_v14 = vpop.f32.mrf.mxu0 }
  0xe1   : > { %v1172_v15 = vpop.eup %1171  ;;  %973 = vst.msk [vmem:[%s1510_s16 + $0x18] sm:$0xff] %vm969_vm1, %v940_v5  ;;  %v820_v17 = vadd.f32 2.0, %v756_v7  ;;  %v1562_v18 = vadd.f32 %v1520_v10, %v421_v14  ;;  %v788_v42 = vmul.f32 %v756_v7, %v1525_v22 }
  0xe2   : > { %v1174_v19 = vpop.eup %1173  ;;  %v883_v21 = vmul.f32 %v1172_v15, %v787_v11  ;;  %v806_v23 = vadd.f32 2.0, %v742_v12  ;;  %v630_v24 = vmin.f32 %v1556_v13, 20.0  ;;  %v774_v50 = vmul.f32 %v742_v12, %v1529_v25 }
  0xe3   : > { %v869_v3 = vmul.f32 %v1174_v19, %v773_v16  ;;  %1179 = vrcp.f32 %v820_v17  ;;  %v616_v20 = vmin.f32 %v1562_v18, 20.0 }
  0xe4   : > { %v1176_v29 = vpop.eup %1175  ;;  %v919_v30 = vmul.f32 %v1493_v51, %v883_v21  ;;  %1181 = vrcp.f32 %v806_v23  ;;  %v683_v6 = vmul.f32 1.442695, %v630_v24 }
  0xe5   : > { %v1178_v32 = vpop.eup %1177  ;;  %v905_v10 = vmul.f32 %v1493_v51, %v869_v3  ;;  %v725_v33 = vadd.f32 2.0, %v1176_v29  ;;  %v655_v34 = vmul.f32 1.442695, %v616_v20 }
  0xe6   : > { %v955_v36 = vadd.f32 %v1503_v57, %v919_v30  ;;  %v711_v37 = vadd.f32 2.0, %v1178_v32  ;;  %1183 = vpow2.f32 %v683_v6  ;;  %v1587_v22 = vpop.f32.mrf.mxu1 }
  0xe7   : > { %v941_v38 = vadd.f32 %v1503_v57, %v905_v10  ;;  %v757_v40 = vmul.f32 %v1176_v29, %v725_v33  ;;  %1185 = vpow2.f32 %v655_v34  ;;  %v466_v39 = vpop.f32.mrf.mxu2  ;;  %v1572_v41 = vpop.f32.mrf.mxu3 }
  0xe8   : > { %988 = vst.msk [vmem:[%s1510_s16 + $0x90] sm:$0xff] %vm969_vm1, %v955_v36  ;;  %v743_v43 = vmul.f32 %v1178_v32, %v711_v37  ;;  %v1578_v44 = vadd.f32 %v1537_v45, %v466_v39  ;;  %v424_v47 = vpop.f32.mrf.mxu0 }
  0xe9   : > { %v1180_v49 = vpop.eup %1179  ;;  %974 = vst.msk [vmem:[%s1510_s16 + $0x20] sm:$0xff] %vm969_vm1, %v941_v38  ;;  %v821_v53 = vadd.f32 2.0, %v757_v40  ;;  %v1584_v56 = vadd.f32 %v1532_v31, %v424_v47  ;;  %v789_v14 = vmul.f32 %v757_v40, %v1539_v48 }
  0xea   : > { %v1182_v58 = vpop.eup %1181  ;;  %v884_v59 = vmul.f32 %v1180_v49, %v788_v42  ;;  %v807_v61 = vadd.f32 2.0, %v743_v43  ;;  %v631_v62 = vmin.f32 %v1578_v44, 20.0  ;;  %v775_v21 = vmul.f32 %v743_v43, %v1545_v54 }
  0xeb   : > { %v870_v63 = vmul.f32 %v1182_v58, %v774_v50  ;;  %1187 = vrcp.f32 %v821_v53  ;;  %v617_v45 = vmin.f32 %v1584_v56, 20.0 }
  0xec   : > { %v1184_v0 = vpop.eup %1183  ;;  %v920_v1 = vmul.f32 %v1493_v51, %v884_v59  ;;  %1189 = vrcp.f32 %v807_v61  ;;  %v685_v25 = vmul.f32 1.442695, %v631_v62 }
  0xed   : > { %v1186_v52 = vpop.eup %1185  ;;  %v906_v31 = vmul.f32 %v1493_v51, %v870_v63  ;;  %v726_v2 = vadd.f32 2.0, %v1184_v0  ;;  %v657_v55 = vmul.f32 1.442695, %v617_v45 }
  0xee   : > { %v956_v4 = vadd.f32 %v1503_v57, %v920_v1  ;;  %v712_v5 = vadd.f32 2.0, %v1186_v52  ;;  %1191 = vpow2.f32 %v685_v25  ;;  %v1609_v48 = vpop.f32.mrf.mxu1 }
  0xef   : > { %v942_v7 = vadd.f32 %v1503_v57, %v906_v31  ;;  %v758_v8 = vmul.f32 %v1184_v0, %v726_v2  ;;  %1193 = vpow2.f32 %v657_v55  ;;  %v469_v11 = vpop.f32.mrf.mxu2  ;;  %v1594_v12 = vpop.f32.mrf.mxu3 }
  0xf0   : > { %989 = vst.msk [vmem:[%s1510_s16 + $0x98] sm:$0xff] %vm969_vm1, %v956_v4  ;;  %v744_v15 = vmul.f32 %v1186_v52, %v712_v5  ;;  %v1600_v16 = vadd.f32 %v1553_v9, %v469_v11  ;;  %v427_v17 = vpop.f32.mrf.mxu0 }
  0xf1   : > { %v1188_v19 = vpop.eup %1187  ;;  %975 = vst.msk [vmem:[%s1510_s16 + $0x28] sm:$0xff] %vm969_vm1, %v942_v7  ;;  %v822_v23 = vadd.f32 2.0, %v758_v8  ;;  %v1606_v24 = vadd.f32 %v1548_v60, %v427_v17  ;;  %v790_v47 = vmul.f32 %v758_v8, %v1556_v13 }
  0xf2   : > { %v1190_v3 = vpop.eup %1189  ;;  %v885_v20 = vmul.f32 %v1188_v19, %v789_v14  ;;  %v808_v29 = vadd.f32 2.0, %v744_v15  ;;  %v632_v30 = vmin.f32 %v1600_v16, 20.0  ;;  %v776_v59 = vmul.f32 %v744_v15, %v1562_v18 }
  0xf3   : > { %v871_v6 = vmul.f32 %v1190_v3, %v775_v21  ;;  %1195 = vrcp.f32 %v822_v23  ;;  %v618_v9 = vmin.f32 %v1606_v24, 20.0 }
  0xf4   : > { %v1192_v32 = vpop.eup %1191  ;;  %v921_v10 = vmul.f32 %v1493_v51, %v885_v20  ;;  %1197 = vrcp.f32 %v808_v29  ;;  %v687_v54 = vmul.f32 1.442695, %v632_v30 }
  0xf5   : > { %v1194_v33 = vpop.eup %1193  ;;  %v907_v60 = vmul.f32 %v1493_v51, %v871_v6  ;;  %v727_v34 = vadd.f32 2.0, %v1192_v32  ;;  %v659_v36 = vmul.f32 1.442695, %v618_v9 }
  0xf6   : > { %v957_v37 = vadd.f32 %v1503_v57, %v921_v10  ;;  %v713_v38 = vadd.f32 2.0, %v1194_v33  ;;  %1199 = vpow2.f32 %v687_v54  ;;  %v1631_v13 = vpop.f32.mrf.mxu1 }
  0xf7   : > { %v943_v40 = vadd.f32 %v1503_v57, %v907_v60  ;;  %v759_v39 = vmul.f32 %v1192_v32, %v727_v34  ;;  %1201 = vpow2.f32 %v659_v36  ;;  %v472_v42 = vpop.f32.mrf.mxu2  ;;  %v1616_v43 = vpop.f32.mrf.mxu3 }
  0xf8   : > { %990 = vst.msk [vmem:[%s1510_s16 + $0xa0] sm:$0xff] %vm969_vm1, %v957_v37  ;;  %v745_v49 = vmul.f32 %v1194_v33, %v713_v38  ;;  %v1622_v50 = vadd.f32 %v1572_v41, %v472_v42  ;;  %v430_v53 = vpop.f32.mrf.mxu0 }
  0xf9   : > { %v1196_v58 = vpop.eup %1195  ;;  %976 = vst.msk [vmem:[%s1510_s16 + $0x30] sm:$0xff] %vm969_vm1, %v943_v40  ;;  %v823_v61 = vadd.f32 2.0, %v759_v39  ;;  %v1628_v62 = vadd.f32 %v1565_v28, %v430_v53  ;;  %v791_v17 = vmul.f32 %v759_v39, %v1578_v44 }
  0xfa   : > { %v1198_v63 = vpop.eup %1197  ;;  %v886_v45 = vmul.f32 %v1196_v58, %v790_v47  ;;  %v809_v0 = vadd.f32 2.0, %v745_v49  ;;  %v633_v1 = vmin.f32 %v1622_v50, 20.0  ;;  %v777_v20 = vmul.f32 %v745_v49, %v1584_v56 }
  0xfb   : > { %v872_v25 = vmul.f32 %v1198_v63, %v776_v59  ;;  %1203 = vrcp.f32 %v823_v61  ;;  %v619_v41 = vmin.f32 %v1628_v62, 20.0 }
  0xfc   : > { %v1200_v52 = vpop.eup %1199  ;;  %v922_v31 = vmul.f32 %v1493_v51, %v886_v45  ;;  %1205 = vrcp.f32 %v809_v0  ;;  %v689_v18 = vmul.f32 1.442695, %v633_v1 }
  0xfd   : > { %v1202_v2 = vpop.eup %1201  ;;  %v908_v28 = vmul.f32 %v1493_v51, %v872_v25  ;;  %v728_v55 = vadd.f32 2.0, %v1200_v52  ;;  %v661_v4 = vmul.f32 1.442695, %v619_v41 }
  0xfe   : > { %v958_v5 = vadd.f32 %v1503_v57, %v922_v31  ;;  %v714_v7 = vadd.f32 2.0, %v1202_v2  ;;  %1207 = vpow2.f32 %v689_v18  ;;  %v1653_v44 = vpop.f32.mrf.mxu1 }
  0xff   : > { %v944_v8 = vadd.f32 %v1503_v57, %v908_v28  ;;  %v760_v11 = vmul.f32 %v1200_v52, %v728_v55  ;;  %1209 = vpow2.f32 %v661_v4  ;;  %v475_v14 = vpop.f32.mrf.mxu2  ;;  %v1638_v15 = vpop.f32.mrf.mxu3 }
 0x100   : > { %991 = vst.msk [vmem:[%s1510_s16 + $0xa8] sm:$0xff] %vm969_vm1, %v958_v5  ;;  %v746_v19 = vmul.f32 %v1202_v2, %v714_v7  ;;  %v1644_v21 = vadd.f32 %v1594_v12, %v475_v14  ;;  %v433_v23 = vpop.f32.mrf.mxu0 }
 0x101   : > { %v1204_v3 = vpop.eup %1203  ;;  %977 = vst.msk [vmem:[%s1510_s16 + $0x38] sm:$0xff] %vm969_vm1, %v944_v8  ;;  %v824_v29 = vadd.f32 2.0, %v760_v11  ;;  %v1650_v30 = vadd.f32 %v1587_v22, %v433_v23  ;;  %v792_v53 = vmul.f32 %v760_v11, %v1600_v16 }
 0x102   : > { %v1206_v6 = vpop.eup %1205  ;;  %v887_v9 = vmul.f32 %v1204_v3, %v791_v17  ;;  %v810_v32 = vadd.f32 2.0, %v746_v19  ;;  %v634_v10 = vmin.f32 %v1644_v21, 20.0  ;;  %v778_v45 = vmul.f32 %v746_v19, %v1606_v24 }
 0x103   : > { %v873_v54 = vmul.f32 %v1206_v6, %v777_v20  ;;  %1211 = vrcp.f32 %v824_v29  ;;  %v620_v12 = vmin.f32 %v1650_v30, 20.0 }
 0x104   : > { %v1208_v33 = vpop.eup %1207  ;;  %v923_v60 = vmul.f32 %v1493_v51, %v887_v9  ;;  %1213 = vrcp.f32 %v810_v32  ;;  %v691_v56 = vmul.f32 1.442695, %v634_v10 }
 0x105   : > { %v1210_v34 = vpop.eup %1209  ;;  %v909_v22 = vmul.f32 %v1493_v51, %v873_v54  ;;  %v729_v36 = vadd.f32 2.0, %v1208_v33  ;;  %v663_v37 = vmul.f32 1.442695, %v620_v12 }
 0x106   : > { %v959_v38 = vadd.f32 %v1503_v57, %v923_v60  ;;  %v715_v40 = vadd.f32 2.0, %v1210_v34  ;;  %1215 = vpow2.f32 %v691_v56  ;;  %v558_v16 = vpop.f32.mrf.mxu1 }
 0x107   : > { %v945_v39 = vadd.f32 %v1503_v57, %v909_v22  ;;  %v761_v42 = vmul.f32 %v1208_v33, %v729_v36  ;;  %1217 = vpow2.f32 %v663_v37  ;;  %v478_v47 = vpop.f32.mrf.mxu2  ;;  %v1660_v49 = vpop.f32.mrf.mxu3  ;;  %v1677_v2 = vadd.f32 %v558_v16, %v1482_v26 }
 0x108   : > { %992 = vst.msk [vmem:[%s1510_s16 + $0xb0] sm:$0xff] %vm969_vm1, %v959_v38  ;;  %v747_v58 = vmul.f32 %v1210_v34, %v715_v40  ;;  %v1666_v59 = vadd.f32 %v1616_v43, %v478_v47  ;;  %v436_v61 = vpop.f32.mrf.mxu0 }
 0x109   : > { %v1212_v63 = vpop.eup %1211  ;;  %978 = vst.msk [vmem:[%s1510_s16 + $0x40] sm:$0xff] %vm969_vm1, %v945_v39  ;;  %v825_v0 = vadd.f32 2.0, %v761_v42  ;;  %v1672_v1 = vadd.f32 %v1609_v48, %v436_v61  ;;  %v624_v8 = vmin.f32 %v1677_v2, 20.0  ;;  %v793_v20 = vmul.f32 %v761_v42, %v1622_v50 }
 0x10a   : > { %v1214_v25 = vpop.eup %1213  ;;  %v888_v41 = vmul.f32 %v1212_v63, %v792_v53  ;;  %v811_v52 = vadd.f32 2.0, %v747_v58  ;;  %v635_v31 = vmin.f32 %v1666_v59, 20.0  ;;  %v779_v10 = vmul.f32 %v747_v58, %v1628_v62 }
 0x10b   : > { %v874_v18 = vmul.f32 %v1214_v25, %v778_v45  ;;  %1219 = vrcp.f32 %v825_v0  ;;  %v621_v43 = vmin.f32 %v1672_v1, 20.0  ;;  %v671_v19 = vmul.f32 1.442695, %v624_v8 }
 0x10c   : > { %v1216_v28 = vpop.eup %1215  ;;  %v924_v24 = vmul.f32 %v1493_v51, %v888_v41  ;;  %1221 = vrcp.f32 %v811_v52  ;;  %v693_v48 = vmul.f32 1.442695, %v635_v31 }
 0x10d   : > { %v1218_v55 = vpop.eup %1217  ;;  %v910_v4 = vmul.f32 %v1493_v51, %v874_v18  ;;  %v730_v5 = vadd.f32 2.0, %v1216_v28  ;;  %v665_v7 = vmul.f32 1.442695, %v621_v43 }
 0x10e   : > { %v960_v11 = vadd.f32 %v1503_v57, %v924_v24  ;;  %v716_v14 = vadd.f32 2.0, %v1218_v55  ;;  %1223 = vpow2.f32 %v693_v48  ;;  %v561_v34 = vpop.f32.mrf.mxu1 }
 0x10f   : > { %v946_v26 = vadd.f32 %v1503_v57, %v910_v4  ;;  %v762_v17 = vmul.f32 %v1216_v28, %v730_v5  ;;  %1225 = vpow2.f32 %v665_v7  ;;  %v481_v23 = vpop.f32.mrf.mxu2  ;;  %v1684_v3 = vpop.f32.mrf.mxu3  ;;  %v1701_v36 = vadd.f32 %v561_v34, %v1486_v35 }
 0x110   : > { %993 = vst.msk [vmem:[%s1510_s16 + $0xb8] sm:$0xff] %vm969_vm1, %v960_v11  ;;  %v748_v29 = vmul.f32 %v1218_v55, %v716_v14  ;;  %v1690_v6 = vadd.f32 %v1638_v15, %v481_v23  ;;  %v439_v9 = vpop.f32.mrf.mxu0  ;;  %1227 = vpow2.f32 %v671_v19 }
 0x111   : > { %v1220_v32 = vpop.eup %1219  ;;  %979 = vst.msk [vmem:[%s1510_s16 + $0x48] sm:$0xff] %vm969_vm1, %v946_v26  ;;  %v826_v54 = vadd.f32 2.0, %v762_v17  ;;  %v1696_v12 = vadd.f32 %v1631_v13, %v439_v9  ;;  %v625_v47 = vmin.f32 %v1701_v36, 20.0  ;;  %v794_v41 = vmul.f32 %v762_v17, %v1644_v21 }
 0x112   : > { %v1222_v33 = vpop.eup %1221  ;;  %v889_v60 = vmul.f32 %v1220_v32, %v793_v20  ;;  %v812_v56 = vadd.f32 2.0, %v748_v29  ;;  %v636_v50 = vmin.f32 %v1690_v6, 20.0  ;;  %v780_v28 = vmul.f32 %v748_v29, %v1650_v30 }
 0x113   : > { %v875_v22 = vmul.f32 %v1222_v33, %v779_v10  ;;  %1229 = vrcp.f32 %v826_v54  ;;  %v622_v15 = vmin.f32 %v1696_v12, 20.0  ;;  %v673_v45 = vmul.f32 1.442695, %v625_v47 }
 0x114   : > { %v1224_v37 = vpop.eup %1223  ;;  %v925_v62 = vmul.f32 %v1493_v51, %v889_v60  ;;  %1231 = vrcp.f32 %v812_v56  ;;  %v695_v38 = vmul.f32 1.442695, %v636_v50 }
 0x115   : > { %v1226_v13 = vpop.eup %1225  ;;  %v911_v40 = vmul.f32 %v1493_v51, %v875_v22  ;;  %v731_v39 = vadd.f32 2.0, %v1224_v37  ;;  %v667_v42 = vmul.f32 1.442695, %v622_v15 }
 0x116   : > { %v961_v53 = vadd.f32 %v1503_v57, %v925_v62  ;;  %v717_v58 = vadd.f32 2.0, %v1226_v13  ;;  %1233 = vpow2.f32 %v695_v38  ;;  %v1228_v35 = vpop.eup %1227  ;;  %v564_v11 = vpop.f32.mrf.mxu1 }
 0x117   : > { %v947_v61 = vadd.f32 %v1503_v57, %v911_v40  ;;  %v763_v63 = vmul.f32 %v1224_v37, %v731_v39  ;;  %1235 = vpow2.f32 %v667_v42  ;;  %v484_v0 = vpop.f32.mrf.mxu2  ;;  %v1708_v25 = vpop.f32.mrf.mxu3  ;;  %v720_v31 = vadd.f32 2.0, %v1228_v35 }
 0x118   : > { %994 = vst.msk [vmem:[%s1510_s16 + $0xc0] sm:$0xff] %vm969_vm1, %v961_v53  ;;  %v749_v52 = vmul.f32 %v1226_v13, %v717_v58  ;;  %v1714_v16 = vadd.f32 %v1660_v49, %v484_v0  ;;  %v442_v18 = vpop.f32.mrf.mxu0  ;;  %1237 = vpow2.f32 %v673_v45  ;;  %v1728_v32 = vadd.f32 %v564_v11, %v1488_v46 }
 0x119   : > { %v1230_v43 = vpop.eup %1229  ;;  %980 = vst.msk [vmem:[%s1510_s16 + $0x50] sm:$0xff] %vm969_vm1, %v947_v61  ;;  %v827_v24 = vadd.f32 2.0, %v763_v63  ;;  %v1720_v48 = vadd.f32 %v1653_v44, %v442_v18  ;;  %v752_v21 = vmul.f32 %v1228_v35, %v720_v31  ;;  %v795_v33 = vmul.f32 %v763_v63, %v1666_v59 }
 0x11a   : > { %v1232_v55 = vpop.eup %1231  ;;  %v890_v4 = vmul.f32 %v1230_v43, %v794_v41  ;;  %v813_v5 = vadd.f32 2.0, %v749_v52  ;;  %v637_v49 = vmin.f32 %v1714_v16, 20.0  ;;  %v626_v15 = vmin.f32 %v1728_v32, 20.0 }
 0x11b   : > { %v876_v7 = vmul.f32 %v1232_v55, %v780_v28  ;;  %1239 = vrcp.f32 %v827_v24  ;;  %v623_v8 = vmin.f32 %v1720_v48, 20.0  ;;  %v816_v30 = vadd.f32 2.0, %v752_v21 }
 0x11c   : > { %v1234_v14 = vpop.eup %1233  ;;  %v926_v26 = vmul.f32 %v1493_v51, %v890_v4  ;;  %1241 = vrcp.f32 %v813_v5  ;;  %v697_v23 = vmul.f32 1.442695, %v637_v49  ;;  %v781_v46 = vmul.f32 %v749_v52, %v1672_v1 }
 0x11d   : > { %v1236_v17 = vpop.eup %1235  ;;  %v912_v44 = vmul.f32 %v1493_v51, %v876_v7  ;;  %v732_v19 = vadd.f32 2.0, %v1234_v14  ;;  %v669_v20 = vmul.f32 1.442695, %v623_v8  ;;  %1243 = vrcp.f32 %v816_v30 }
 0x11e   : > { %v962_v29 = vadd.f32 %v1503_v57, %v926_v26  ;;  %v718_v9 = vadd.f32 2.0, %v1236_v17  ;;  %v1238_v10 = vpop.eup %1237  ;;  %1245 = vpow2.f32 %v697_v23  ;;  %v784_v62 = vmul.f32 %v752_v21, %v1677_v2 }
 0x11f   : > { %v948_v54 = vadd.f32 %v1503_v57, %v912_v44  ;;  %v764_v60 = vmul.f32 %v1234_v14, %v732_v19  ;;  %v487_v56 = vpop.f32.mrf.mxu2  ;;  %v606_v50 = vpop.f32.mrf.mxu3  ;;  %v721_v22 = vadd.f32 2.0, %v1238_v10  ;;  %1247 = vpow2.f32 %v669_v20 }
 0x120   : > { %995 = vst.msk [vmem:[%s1510_s16 + $0xc8] sm:$0xff] %vm969_vm1, %v962_v29  ;;  %v750_v34 = vmul.f32 %v1236_v17, %v718_v9  ;;  %v1740_v59 = vadd.f32 %v1684_v3, %v487_v56  ;;  %v1743_v47 = vadd.f32 %v606_v50, %v1484_v27  ;;  %v675_v58 = vmul.f32 1.442695, %v626_v15 }
 0x121   : > { %v1240_v37 = vpop.eup %1239  ;;  %981 = vst.msk [vmem:[%s1510_s16 + $0x58] sm:$0xff] %vm969_vm1, %v948_v54  ;;  %v828_v38 = vadd.f32 2.0, %v764_v60  ;;  %v753_v42 = vmul.f32 %v1238_v10, %v721_v22  ;;  %v796_v55 = vmul.f32 %v764_v60, %v1690_v6 }
 0x122   : > { %v1242_v13 = vpop.eup %1241  ;;  %v891_v40 = vmul.f32 %v1240_v37, %v795_v33  ;;  %v814_v39 = vadd.f32 2.0, %v750_v34  ;;  %v638_v35 = vmin.f32 %v1740_v59, 20.0  ;;  %v640_v31 = vmin.f32 %v1743_v47, 20.0 }
 0x123   : > { %v877_v53 = vmul.f32 %v1242_v13, %v781_v46  ;;  %1249 = vrcp.f32 %v828_v38  ;;  %v1244_v61 = vpop.eup %1243  ;;  %v817_v2 = vadd.f32 2.0, %v753_v42  ;;  %v782_v8 = vmul.f32 %v750_v34, %v1696_v12 }
 0x124   : > { %v927_v1 = vmul.f32 %v1493_v51, %v891_v40  ;;  %1251 = vrcp.f32 %v814_v39  ;;  %v1246_v3 = vpop.eup %1245  ;;  %v880_v45 = vmul.f32 %v1244_v61, %v784_v62  ;;  %v699_v0 = vmul.f32 1.442695, %v638_v35 }
 0x125   : > { %v913_v63 = vmul.f32 %v1493_v51, %v877_v53  ;;  %1253 = vpow2.f32 %v675_v58  ;;  %v1248_v41 = vpop.eup %1247  ;;  %v733_v52 = vadd.f32 2.0, %v1246_v3  ;;  %v703_v5 = vmul.f32 1.442695, %v640_v31 }
 0x126   : > { %v963_v27 = vadd.f32 %v1503_v57, %v927_v1  ;;  %1255 = vrcp.f32 %v817_v2  ;;  %v916_v43 = vmul.f32 %v1493_v51, %v880_v45  ;;  %v719_v28 = vadd.f32 2.0, %v1248_v41 }
 0x127   : > { %v949_v18 = vadd.f32 %v1503_v57, %v913_v63  ;;  %1257 = vpow2.f32 %v699_v0  ;;  %v490_v24 = vpop.f32.mrf.mxu2  ;;  %v765_v4 = vmul.f32 %v1246_v3, %v733_v52  ;;  %v785_v44 = vmul.f32 %v753_v42, %v1701_v36 }
 0x128   : > { %996 = vst.msk [vmem:[%s1510_s16 + $0xd0] sm:$0xff] %vm969_vm1, %v963_v27  ;;  %v1756_v21 = vadd.f32 %v1708_v25, %v490_v24  ;;  %v952_v49 = vadd.f32 %v1503_v57, %v916_v43  ;;  %v751_v11 = vmul.f32 %v1248_v41, %v719_v28  ;;  %1259 = vpow2.f32 %v703_v5 }
 0x129   : > { %v1250_v7 = vpop.eup %1249  ;;  %982 = vst.msk [vmem:[%s1510_s16 + $0x60] sm:$0xff] %vm969_vm1, %v949_v18  ;;  %v829_v30 = vadd.f32 2.0, %v765_v4  ;;  %v797_v46 = vmul.f32 %v765_v4, %v1714_v16 }
 0x12a   : > { %v1252_v14 = vpop.eup %1251  ;;  %v892_v26 = vmul.f32 %v1250_v7, %v796_v55  ;;  %985 = vst.msk [vmem:[%s1510_s16 + $0x78] sm:$0xff] %vm969_vm1, %v952_v49  ;;  %v815_v25 = vadd.f32 2.0, %v751_v11  ;;  %v639_v19 = vmin.f32 %v1756_v21, 20.0  ;;  %v783_v13 = vmul.f32 %v751_v11, %v1720_v48 }
 0x12b   : > { %v1254_v17 = vpop.eup %1253  ;;  %v878_v6 = vmul.f32 %v1252_v14, %v782_v8  ;;  %1261 = vrcp.f32 %v829_v30 }
 0x12c   : > { %v1256_v23 = vpop.eup %1255  ;;  %v928_v20 = vmul.f32 %v1493_v51, %v892_v26  ;;  %v722_v12 = vadd.f32 2.0, %v1254_v17  ;;  %1263 = vrcp.f32 %v815_v25  ;;  %v701_v54 = vmul.f32 1.442695, %v639_v19 }
 0x12d   : > { %v1258_v29 = vpop.eup %1257  ;;  %v914_v9 = vmul.f32 %v1493_v51, %v878_v6  ;;  %v881_v10 = vmul.f32 %v1256_v23, %v785_v44 }
 0x12e   : > { %v964_v33 = vadd.f32 %v1503_v57, %v928_v20  ;;  %v754_v60 = vmul.f32 %v1254_v17, %v722_v12  ;;  %v734_v36 = vadd.f32 2.0, %v1258_v29  ;;  %1265 = vpow2.f32 %v701_v54  ;;  %v1260_v34 = vpop.eup %1259 }
 0x12f   : > { %v950_v56 = vadd.f32 %v1503_v57, %v914_v9  ;;  %v917_v50 = vmul.f32 %v1493_v51, %v881_v10  ;;  %v736_v62 = vadd.f32 2.0, %v1260_v34 }
 0x130   : > { %997 = vst.msk [vmem:[%s1510_s16 + $0xd8] sm:$0xff] %vm969_vm1, %v964_v33  ;;  %v818_v22 = vadd.f32 2.0, %v754_v60  ;;  %v766_v15 = vmul.f32 %v1258_v29, %v734_v36  ;;  %v786_v3 = vmul.f32 %v754_v60, %v1728_v32 }
 0x131   : > { %983 = vst.msk [vmem:[%s1510_s16 + $0x68] sm:$0xff] %vm969_vm1, %v950_v56  ;;  %v953_v37 = vadd.f32 %v1503_v57, %v917_v50  ;;  %v1262_v38 = vpop.eup %1261  ;;  %v768_v53 = vmul.f32 %v1260_v34, %v736_v62 }
 0x132   : > { %1267 = vrcp.f32 %v818_v22  ;;  %v830_v40 = vadd.f32 2.0, %v766_v15  ;;  %v1264_v39 = vpop.eup %1263  ;;  %v893_v42 = vmul.f32 %v1262_v38, %v797_v46  ;;  %v798_v27 = vmul.f32 %v766_v15, %v1740_v59 }
 0x133   : > { %986 = vst.msk [vmem:[%s1510_s16 + $0x80] sm:$0xff] %vm969_vm1, %v953_v37  ;;  %v879_v58 = vmul.f32 %v1264_v39, %v783_v13  ;;  %v832_v1 = vadd.f32 2.0, %v768_v53  ;;  %v800_v43 = vmul.f32 %v768_v53, %v1743_v47 }
 0x134   : > { %1269 = vrcp.f32 %v830_v40  ;;  %v1266_v35 = vpop.eup %1265  ;;  %v929_v61 = vmul.f32 %v1493_v51, %v893_v42 }
 0x135   : > { %v915_v16 = vmul.f32 %v1493_v51, %v879_v58  ;;  %v735_v2 = vadd.f32 2.0, %v1266_v35  ;;  %1271 = vrcp.f32 %v832_v1 }
 0x136   : > { %v965_v48 = vadd.f32 %v1503_v57, %v929_v61 }
 0x137   : > { %v951_v45 = vadd.f32 %v1503_v57, %v915_v16  ;;  %v767_v0 = vmul.f32 %v1266_v35, %v735_v2 }
 0x138   : > { %v1268_v63 = vpop.eup %1267  ;;  %998 = vst.msk [vmem:[%s1510_s16 + $0xe0] sm:$0xff] %vm969_vm1, %v965_v48 }
 0x139   : > { %v882_v41 = vmul.f32 %v1268_v63, %v786_v3  ;;  %984 = vst.msk [vmem:[%s1510_s16 + $0x70] sm:$0xff] %vm969_vm1, %v951_v45  ;;  %v831_v31 = vadd.f32 2.0, %v767_v0  ;;  %v799_v7 = vmul.f32 %v767_v0, %v1756_v21 }
 0x13a   : > { %v1270_v52 = vpop.eup %1269 }
 0x13b   : > { %v918_v18 = vmul.f32 %v1493_v51, %v882_v41  ;;  %v894_v32 = vmul.f32 %v1270_v52, %v798_v27  ;;  %1273 = vrcp.f32 %v831_v31  ;;  %v1272_v28 = vpop.eup %1271 }
 0x13c   : > { %v896_v4 = vmul.f32 %v1272_v28, %v800_v43 }
 0x13d   : > { %v954_v24 = vadd.f32 %v1503_v57, %v918_v18  ;;  %v930_v55 = vmul.f32 %v1493_v51, %v894_v32 }
 0x13e   : > { %v932_v5 = vmul.f32 %v1493_v51, %v896_v4 }
 0x13f   : > { %987 = vst.msk [vmem:[%s1510_s16 + $0x88] sm:$0xff] %vm969_vm1, %v954_v24  ;;  %v966_v59 = vadd.f32 %v1503_v57, %v930_v55 }
 0x140   : > { %v968_v47 = vadd.f32 %v1503_v57, %v932_v5 }
 0x141   : > { %999 = vst.msk [vmem:[%s1510_s16 + $0xe8] sm:$0xff] %vm969_vm1, %v966_v59  ;;  %v1274_v49 = vpop.eup %1273 }
 0x142   : > { %v895_v8 = vmul.f32 %v1274_v49, %v799_v7  ;;  %1001 = vst.msk [vmem:[%s1510_s16 + $0xf8] sm:$0xff] %vm969_vm1, %v968_v47 }
 0x144   : > { %v931_v11 = vmul.f32 %v1493_v51, %v895_v8 }
 0x146   : > { %v967_v14 = vadd.f32 %v1503_v57, %v931_v11 }
 0x148   : > { %1000 = vst.msk [vmem:[%s1510_s16 + $0xf0] sm:$0xff] %vm969_vm1, %v967_v14 }
 0x149 PF: > { %s14_s15 = sadd.s32 1, %s1281_s15  }
 0x14a   : > { %p11_p4 = scmp.ge.s32.totalorder %s14_s15, 4  }
 0x14c   :  { %13 = sbr.rel (!%p11_p4) target bundleno = 1 (0x1), region = 66 }

// kernel: resblock_forward.5
= control target key start
LH: loop header
LB: loop body
LE: loop exit
PB: predicated region body
PF: predicated region fallthrough
CT: control target
= control target key end

     0   :  { %s1055_s15 = smov 0   ;;  %s1558_s0 = inlined_call_operand.vmem [shape: f32[512,288], index: 0, kind: input, shape index: {}]   ;;  %s1559_s1 = inlined_call_operand.vmem [shape: f32[288,32], index: 1, kind: input, shape index: {}]   ;;  %s1560_s2 = inlined_call_operand.vmem [shape: f32[1,32], index: 2, kind: input, shape index: {}]   ;;  %s1561_s3 = inlined_call_operand.vmem [shape: f32[1,32], index: 3, kind: input, shape index: {}]   ;;  %s1562_s4 = inlined_call_operand.vmem [shape: f32[512,32], index: 4, kind: output, shape index: {}]  }
   0x1 LB: > { %s932_s16 = sadd.s32 4294967295, %s1028_s15   ;;  %p936_p0 = scmp.ge.s32.totalorder %s1028_s15, 1  ;;  %s1028_s15 = sphi %s1055_s15, %s14_s15  }
   0x2   : > { %p164_p1 = scmp.lt.s32.totalorder %s1028_s15, 3 }
   0x4   : > { %p165_p2 = pnand %p936_p0, %p164_p1 }
   0x5   : > { %s937_s23 = sshll.u32 (!%p165_p2), %s932_s16, 5 }
   0x6   : > { %168 = sbr.rel (%p165_p2) target bundleno = 369 (0x171), region = 36  ;;  %p192_p3 = scmp.lt.s32.totalorder (!%p165_p2), %s937_s23, 63 }
   0xb   : > { %v315_v0 = vld [vmem:[%s1559_s1 + $0x78] sm:$0xff]  ;;  %v314_v3 = vld [vmem:[%s1559_s1 + $0x70] sm:$0xff]  ;;  %v313_v6 = vld [vmem:[%s1559_s1 + $0x68] sm:$0xff]  ;;  %s1564_s23 = smov (!%p192_p3, %s937_s23), 63  ;;  %vm336_vm0 = vcmask 261120  }
   0xc   : > { %v1069_v1 = vld [vmem:[%s1559_s1 + $0xf8] sm:$0xff]  ;;  %433 = vmatpush.msra.mxu0 %v315_v0  ;;  %975 = vmatpush.msra.mxu3 %v315_v0  ;;  %v1082_v4 = vld [vmem:[%s1559_s1 + $0xf0] sm:$0xff]  ;;  %v1097_v7 = vld [vmem:[%s1559_s1 + $0xe8] sm:$0xff]  ;;  %s1011_s17 = smul.u32 24, %s1564_s23  ;;  %s940_s26 = sshll.u32 %s1564_s23, 3 }
   0xd   : > { %v1074_v2 = vld [vmem:[%s1559_s1 + $0x118] sm:$0xff]  ;;  %v1087_v5 = vld [vmem:[%s1559_s1 + $0x110] sm:$0xff]  ;;  %546 = vmatpush.msra.mxu1 %v1069_v1  ;;  %v1102_v8 = vld [vmem:[%s1559_s1 + $0x108] sm:$0xff]  ;;  %s1354_s5 = scalar_lea.vmem %s1562_s4, %s940_s26 }
   0xe   : > { %671 = vmatpush.msra.mxu2 %v1074_v2  ;;  %434 = vmatpush.msra.mxu0 %v314_v3  ;;  %v312_v9 = vld [vmem:[%s1559_s1 + $0x60] sm:$0xff]  ;;  %v311_v12 = vld [vmem:[%s1559_s1 + $0x58] sm:$0xff]  ;;  %s1135_s25 = scalar_lea.vmem %s1558_s0, %s1011_s17  ;;  %v310_v15 = vld [vmem:[%s1559_s1 + $0x50] sm:$0xff] }
   0xf   : > { %976 = vmatpush.msra.mxu3 %v314_v3  ;;  %547 = vmatpush.msra.mxu1 %v1082_v4  ;;  %v1114_v10 = vld [vmem:[%s1559_s1 + $0xe0] sm:$0xff]  ;;  %v1130_v13 = vld [vmem:[%s1559_s1 + $0xd8] sm:$0xff]  ;;  %v206_v14 = vld [vmem:[%s1135_s25 + $0x10] sm:$0xff] }
  0x10   : > { %672 = vmatpush.msra.mxu2 %v1087_v5  ;;  %435 = vmatpush.msra.mxu0 %v313_v6  ;;  %v1119_v11 = vld [vmem:[%s1559_s1 + $0x100] sm:$0xff]  ;;  %v1146_v16 = vld [vmem:[%s1559_s1 + $0xd0] sm:$0xff]  ;;  %v309_v17 = vld [vmem:[%s1559_s1 + $0x48] sm:$0xff] }
  0x11   : > { %977 = vmatpush.msra.mxu3 %v313_v6  ;;  %548 = vmatpush.msra.mxu1 %v1097_v7  ;;  %v1156_v18 = vld [vmem:[%s1559_s1 + $0xc8] sm:$0xff]  ;;  %v308_v19 = vld [vmem:[%s1559_s1 + $0x40] sm:$0xff]  ;;  %v307_v21 = vld [vmem:[%s1559_s1 + $0x38] sm:$0xff] }
  0x12   : > { %673 = vmatpush.msra.mxu2 %v1102_v8  ;;  %436 = vmatpush.msra.mxu0 %v312_v9  ;;  %v1165_v20 = vld [vmem:[%s1559_s1 + $0xc0] sm:$0xff]  ;;  %v1174_v22 = vld [vmem:[%s1559_s1 + $0xb8] sm:$0xff]  ;;  %v209_v23 = vld [vmem:[%s1135_s25 + $0x28] sm:$0xff] }
  0x13   : > { %978 = vmatpush.msra.mxu3 %v312_v9  ;;  %549 = vmatpush.msra.mxu1 %v1114_v10  ;;  %v306_v24 = vld [vmem:[%s1559_s1 + $0x30] sm:$0xff]  ;;  %v305_v26 = vld [vmem:[%s1559_s1 + $0x28] sm:$0xff]  ;;  %v304_v28 = vld [vmem:[%s1559_s1 + $0x20] sm:$0xff] }
  0x14   : > { %674 = vmatpush.msra.mxu2 %v1119_v11  ;;  %437 = vmatpush.msra.mxu0 %v311_v12  ;;  %v1184_v25 = vld [vmem:[%s1559_s1 + $0xb0] sm:$0xff]  ;;  %v1194_v27 = vld [vmem:[%s1559_s1 + $0xa8] sm:$0xff]  ;;  %v1203_v29 = vld [vmem:[%s1559_s1 + $0xa0] sm:$0xff] }
  0x15   : > { %979 = vmatpush.msra.mxu3 %v311_v12  ;;  %550 = vmatpush.msra.mxu1 %v1130_v13  ;;  %v303_v30 = vld [vmem:[%s1559_s1 + $0x18] sm:$0xff]  ;;  %v212_v32 = vld [vmem:[%s1135_s25 + $0x40] sm:$0xff]  ;;  %v302_v33 = vld [vmem:[%s1559_s1 + $0x10] sm:$0xff] }
  0x16   : > { %941 = vmatmul.msk.f32.vlgmr.msra.gmra.mxu2 %vm336_vm0, %v206_v14  ;;  %438 = vmatpush.msra.mxu0 %v310_v15  ;;  %v1212_v31 = vld [vmem:[%s1559_s1 + $0x98] sm:$0xff]  ;;  %v318_v34 = vld [vmem:[%s1559_s1 + $0x90] sm:$0xff]  ;;  %v301_v35 = vld [vmem:[%s1559_s1 + $0x8] sm:$0xff] }
  0x17   : > { %980 = vmatpush.msra.mxu3 %v310_v15  ;;  %551 = vmatpush.msra.mxu1 %v1146_v16  ;;  %v317_v36 = vld [vmem:[%s1559_s1 + $0x88] sm:$0xff]  ;;  %v300_v37 = vld [vmem:[%s1559_s1] sm:$0xff]  ;;  %v215_v42 = vld [vmem:[%s1135_s25 + $0x58] sm:$0xff] }
  0x18   : > { %439 = vmatpush.msra.mxu0 %v309_v17  ;;  %v316_v38 = vld [vmem:[%s1559_s1 + $0x80] sm:$0xff]  ;;  %v205_v41 = vld [vmem:[%s1135_s25 + $0x8] sm:$0xff]  ;;  %v207_v43 = vld [vmem:[%s1135_s25 + $0x18] sm:$0xff] }
  0x19   : > { %981 = vmatpush.msra.mxu3 %v309_v17  ;;  %552 = vmatpush.msra.mxu1 %v1156_v18  ;;  %v204_v39 = vld [vmem:[%s1135_s25] sm:$0xff]  ;;  %v279_v44 = vld [vmem:[%s1135_s25 + $0x258] sm:$0xff]  ;;  %v218_v46 = vld [vmem:[%s1135_s25 + $0x70] sm:$0xff] }
  0x1a   : > { %440 = vmatpush.msra.mxu0 %v308_v19  ;;  %v276_v40 = vld [vmem:[%s1135_s25 + $0x240] sm:$0xff]  ;;  %v210_v47 = vld [vmem:[%s1135_s25 + $0x30] sm:$0xff]  ;;  %v211_v49 = vld [vmem:[%s1135_s25 + $0x38] sm:$0xff] }
  0x1b   : > { %982 = vmatpush.msra.mxu3 %v308_v19  ;;  %553 = vmatpush.msra.mxu1 %v1165_v20  ;;  %v208_v45 = vld [vmem:[%s1135_s25 + $0x20] sm:$0xff]  ;;  %v282_v48 = vld [vmem:[%s1135_s25 + $0x270] sm:$0xff]  ;;  %v221_v50 = vld [vmem:[%s1135_s25 + $0x88] sm:$0xff] }
  0x1c   : > { %441 = vmatpush.msra.mxu0 %v307_v21  ;;  %v213_v51 = vld [vmem:[%s1135_s25 + $0x48] sm:$0xff]  ;;  %v214_v53 = vld [vmem:[%s1135_s25 + $0x50] sm:$0xff]  ;;  %v224_v54 = vld [vmem:[%s1135_s25 + $0xa0] sm:$0xff] }
  0x1d   : > { %983 = vmatpush.msra.mxu3 %v307_v21  ;;  %554 = vmatpush.msra.mxu1 %v1174_v22  ;;  %v285_v52 = vld [vmem:[%s1135_s25 + $0x288] sm:$0xff]  ;;  %v216_v55 = vld [vmem:[%s1135_s25 + $0x60] sm:$0xff]  ;;  %v227_v58 = vld [vmem:[%s1135_s25 + $0xb8] sm:$0xff] }
  0x1e   : > { %942 = vmatmul.msk.f32.gmra.mxu2 %vm336_vm0, %v209_v23  ;;  %442 = vmatpush.msra.mxu0 %v306_v24  ;;  %v288_v56 = vld [vmem:[%s1135_s25 + $0x2a0] sm:$0xff]  ;;  %v217_v57 = vld [vmem:[%s1135_s25 + $0x68] sm:$0xff]  ;;  %v219_v59 = vld [vmem:[%s1135_s25 + $0x78] sm:$0xff] }
  0x1f   : > { %984 = vmatpush.msra.mxu3 %v306_v24  ;;  %555 = vmatpush.msra.mxu1 %v1184_v25  ;;  %v291_v60 = vld [vmem:[%s1135_s25 + $0x2b8] sm:$0xff]  ;;  %v220_v61 = vld [vmem:[%s1135_s25 + $0x80] sm:$0xff]  ;;  %v230_v62 = vld [vmem:[%s1135_s25 + $0xd0] sm:$0xff] }
  0x20   : > { %443 = vmatpush.msra.mxu0 %v305_v26  ;;  %v222_v63 = vld [vmem:[%s1135_s25 + $0x90] sm:$0xff]  ;;  %v225_v3 = vld [vmem:[%s1135_s25 + $0xa8] sm:$0xff]  ;;  %v236_v6 = vld [vmem:[%s1135_s25 + $0x100] sm:$0xff] }
  0x21   : > { %985 = vmatpush.msra.mxu3 %v305_v26  ;;  %556 = vmatpush.msra.mxu1 %v1194_v27  ;;  %v294_v0 = vld [vmem:[%s1135_s25 + $0x2d0] sm:$0xff]  ;;  %v277_v9 = vld [vmem:[%s1135_s25 + $0x248] sm:$0xff]  ;;  %v232_v12 = vld [vmem:[%s1135_s25 + $0xe0] sm:$0xff] }
  0x22   : > { %444 = vmatpush.msra.mxu0 %v304_v28  ;;  %v242_v14 = vld [vmem:[%s1135_s25 + $0x130] sm:$0xff]  ;;  %v283_v17 = vld [vmem:[%s1135_s25 + $0x278] sm:$0xff]  ;;  %v237_v19 = vld [vmem:[%s1135_s25 + $0x108] sm:$0xff] }
  0x23   : > { %986 = vmatpush.msra.mxu3 %v304_v28  ;;  %557 = vmatpush.msra.mxu1 %v1203_v29  ;;  %v234_v15 = vld [vmem:[%s1135_s25 + $0xf0] sm:$0xff]  ;;  %v240_v23 = vld [vmem:[%s1135_s25 + $0x120] sm:$0xff]  ;;  %v241_v24 = vld [vmem:[%s1135_s25 + $0x128] sm:$0xff] }
  0x24   : > { %445 = vmatpush.msra.mxu0 %v303_v30  ;;  %v286_v21 = vld [vmem:[%s1135_s25 + $0x290] sm:$0xff]  ;;  %v251_v26 = vld [vmem:[%s1135_s25 + $0x178] sm:$0xff]  ;;  %v244_v28 = vld [vmem:[%s1135_s25 + $0x140] sm:$0xff] }
  0x25   : > { %987 = vmatpush.msra.mxu3 %v303_v30  ;;  %558 = vmatpush.msra.mxu1 %v1212_v31  ;;  %v254_v30 = vld [vmem:[%s1135_s25 + $0x190] sm:$0xff] }
  0x26   : > { %943 = vmatmul.msk.f32.gmra.mxu2 %vm336_vm0, %v212_v32  ;;  %446 = vmatpush.msra.mxu0 %v302_v33  ;;  %v246_v32 = vld [vmem:[%s1135_s25 + $0x150] sm:$0xff] }
  0x27   : > { %988 = vmatpush.msra.mxu3 %v302_v33  ;;  %559 = vmatpush.msra.mxu1 %v318_v34  ;;  %v247_v33 = vld [vmem:[%s1135_s25 + $0x158] sm:$0xff] }
  0x28   : > { %447 = vmatpush.msra.mxu0 %v301_v35 }
  0x29   : > { %989 = vmatpush.msra.mxu3 %v301_v35  ;;  %560 = vmatpush.msra.mxu1 %v317_v36  ;;  %v257_v35 = vld [vmem:[%s1135_s25 + $0x1a8] sm:$0xff] }
  0x2a   : > { %448 = vmatpush.msra.mxu0 %v300_v37 }
  0x2b   : > { %990 = vmatpush.msra.mxu3 %v300_v37  ;;  %561 = vmatpush.msra.mxu1 %v316_v38  ;;  %v249_v37 = vld [vmem:[%s1135_s25 + $0x168] sm:$0xff] }
  0x2c   : > { %449 = vmatmul.f32.vlgmr.msra.gmra.mxu0 %v204_v39  ;;  %521 = vmatmul.f32.vlgmr.msra.gmra.mxu3 %v276_v40  ;;  %v298_v39 = vld [vmem:[%s1135_s25 + $0x2f0] sm:$0xff]  ;;  %v260_v40 = vld [vmem:[%s1135_s25 + $0x1c0] sm:$0xff] }
  0x2d   : > { %562 = vmatmul.f32.vlgmr.msra.gmra.mxu1 %v205_v41  ;;  %991 = vmatpush.msrb.mxu3 %v1069_v1  ;;  %v223_v1 = vld [vmem:[%s1135_s25 + $0x98] sm:$0xff] }
  0x2e   : > { %944 = vmatmul.msk.f32.gmra.mxu2 %vm336_vm0, %v215_v42 }
  0x2f   : > { %992 = vmatpush.msrb.mxu3 %v1082_v4  ;;  %v297_v4 = vld [vmem:[%s1135_s25 + $0x2e8] sm:$0xff] }
  0x31   : > { %993 = vmatpush.msrb.mxu3 %v1097_v7  ;;  %v228_v7 = vld [vmem:[%s1135_s25 + $0xc0] sm:$0xff] }
  0x33   : > { %994 = vmatpush.msrb.mxu3 %v1114_v10  ;;  %v239_v10 = vld [vmem:[%s1135_s25 + $0x118] sm:$0xff] }
  0x34   : > { %452 = vmatmul.f32.gmra.mxu0 %v207_v43  ;;  %524 = vmatmul.f32.gmra.mxu3 %v279_v44  ;;  %v252_v43 = vld [vmem:[%s1135_s25 + $0x180] sm:$0xff] }
  0x35   : > { %565 = vmatmul.f32.gmra.mxu1 %v208_v45  ;;  %995 = vmatpush.msrb.mxu3 %v1130_v13  ;;  %v280_v13 = vld [vmem:[%s1135_s25 + $0x260] sm:$0xff]  ;;  %v253_v45 = vld [vmem:[%s1135_s25 + $0x188] sm:$0xff] }
  0x36   : > { %945 = vmatmul.msk.f32.gmra.mxu2 %vm336_vm0, %v218_v46  ;;  %v287_v46 = vld [vmem:[%s1135_s25 + $0x298] sm:$0xff] }
  0x37   : > { %996 = vmatpush.msrb.mxu3 %v1146_v16  ;;  %v235_v16 = vld [vmem:[%s1135_s25 + $0xf8] sm:$0xff] }
  0x39   : > { %997 = vmatpush.msrb.mxu3 %v1156_v18  ;;  %v245_v18 = vld [vmem:[%s1135_s25 + $0x148] sm:$0xff] }
  0x3b   : > { %998 = vmatpush.msrb.mxu3 %v1165_v20  ;;  %v238_v20 = vld [vmem:[%s1135_s25 + $0x110] sm:$0xff] }
  0x3c   : > { %455 = vmatmul.f32.gmra.mxu0 %v210_v47  ;;  %527 = vmatmul.f32.gmra.mxu3 %v282_v48  ;;  %v1339_v48 = vld [vmem:[%s1560_s2] ss:$0 sm:$0xff] }
  0x3d   : > { %568 = vmatmul.f32.gmra.mxu1 %v211_v49  ;;  %999 = vmatpush.msrb.mxu3 %v1174_v22  ;;  %v248_v22 = vld [vmem:[%s1135_s25 + $0x160] sm:$0xff]  ;;  %v263_v49 = vld [vmem:[%s1135_s25 + $0x1d8] sm:$0xff] }
  0x3e   : > { %946 = vmatmul.msk.f32.gmra.mxu2 %vm336_vm0, %v221_v50 }
  0x3f   : > { %1000 = vmatpush.msrb.mxu3 %v1184_v25  ;;  %v289_v25 = vld [vmem:[%s1135_s25 + $0x2a8] sm:$0xff] }
  0x41   : > { %1001 = vmatpush.msrb.mxu3 %v1194_v27  ;;  %v243_v27 = vld [vmem:[%s1135_s25 + $0x138] sm:$0xff] }
  0x43   : > { %1002 = vmatpush.msrb.mxu3 %v1203_v29  ;;  %v292_v29 = vld [vmem:[%s1135_s25 + $0x2c0] sm:$0xff] }
  0x44   : > { %458 = vmatmul.f32.gmra.mxu0 %v213_v51  ;;  %530 = vmatmul.f32.gmra.mxu3 %v285_v52  ;;  %v1346_v51 = vld [vmem:[%s1561_s3] ss:$0 sm:$0xff] }
  0x45   : > { %571 = vmatmul.f32.gmra.mxu1 %v214_v53  ;;  %1003 = vmatpush.msrb.mxu3 %v1212_v31 }
  0x46   : > { %947 = vmatmul.msk.f32.gmra.mxu2 %vm336_vm0, %v224_v54 }
  0x47   : > { %1004 = vmatpush.msrb.mxu3 %v318_v34  ;;  %v295_v34 = vld [vmem:[%s1135_s25 + $0x2d8] sm:$0xff] }
  0x49   : > { %1005 = vmatpush.msrb.mxu3 %v317_v36 }
  0x4b   : > { %1006 = vmatpush.msrb.mxu3 %v316_v38  ;;  %v250_v38 = vld [vmem:[%s1135_s25 + $0x170] sm:$0xff] }
  0x4c   : > { %461 = vmatmul.f32.gmra.mxu0 %v216_v55  ;;  %533 = vmatmul.f32.gmra.mxu3 %v288_v56 }
  0x4d   : > { %574 = vmatmul.f32.gmra.mxu1 %v217_v57  ;;  %1007 = vmatpush.msra.mxu3 %v1074_v2  ;;  %v233_v2 = vld [vmem:[%s1135_s25 + $0xe8] sm:$0xff]  ;;  %v255_v57 = vld [vmem:[%s1135_s25 + $0x198] sm:$0xff] }
  0x4e   : > { %948 = vmatmul.msk.f32.gmra.mxu2 %vm336_vm0, %v227_v58 }
  0x4f   : > { %1008 = vmatpush.msra.mxu3 %v1087_v5  ;;  %v226_v5 = vld [vmem:[%s1135_s25 + $0xb0] sm:$0xff] }
  0x51   : > { %1009 = vmatpush.msra.mxu3 %v1102_v8  ;;  %v229_v8 = vld [vmem:[%s1135_s25 + $0xc8] sm:$0xff] }
  0x53   : > { %1010 = vmatpush.msra.mxu3 %v1119_v11  ;;  %v231_v11 = vld [vmem:[%s1135_s25 + $0xd8] sm:$0xff] }
  0x54   : > { %464 = vmatmul.f32.gmra.mxu0 %v219_v59  ;;  %536 = vmatmul.f32.gmra.mxu3 %v291_v60  ;;  %v256_v59 = vld [vmem:[%s1135_s25 + $0x1a0] sm:$0xff]  ;;  %v290_v60 = vld [vmem:[%s1135_s25 + $0x2b0] sm:$0xff] }
  0x55   : > { %577 = vmatmul.f32.gmra.mxu1 %v220_v61 }
  0x56   : > { %949 = vmatmul.msk.f32.gmra.mxu2 %vm336_vm0, %v230_v62  ;;  %v266_v62 = vld [vmem:[%s1135_s25 + $0x1f0] sm:$0xff] }
  0x5c   : > { %467 = vmatmul.f32.gmra.mxu0 %v222_v63  ;;  %539 = vmatmul.f32.gmra.mxu3 %v294_v0 }
  0x5d   : > { %580 = vmatmul.f32.gmra.mxu1 %v223_v1 }
  0x5e   : > { %950 = vmatmul.msk.f32.gmra.mxu2 %vm336_vm0, %v233_v2 }
  0x64   : > { %470 = vmatmul.f32.gmra.mxu0 %v225_v3  ;;  %542 = vmatmul.f32.gmra.mxu3 %v297_v4 }
  0x65   : > { %583 = vmatmul.f32.gmra.mxu1 %v226_v5  ;;  %v258_v5 = vld [vmem:[%s1135_s25 + $0x1b0] sm:$0xff] }
  0x66   : > { %951 = vmatmul.msk.f32.gmra.mxu2 %vm336_vm0, %v236_v6 }
  0x6c   : > { %473 = vmatmul.f32.gmra.mxu0 %v228_v7  ;;  %634 = vmatmul.f32.vlgmr.msrb.gmra.mxu3 %v277_v9  ;;  %v259_v7 = vld [vmem:[%s1135_s25 + $0x1b8] sm:$0xff] }
  0x6d   : > { %586 = vmatmul.f32.gmra.mxu1 %v229_v8  ;;  %v293_v8 = vld [vmem:[%s1135_s25 + $0x2c8] sm:$0xff] }
  0x6e   : > { %952 = vmatmul.msk.f32.gmra.mxu2 %vm336_vm0, %v239_v10  ;;  %v269_v10 = vld [vmem:[%s1135_s25 + $0x208] sm:$0xff] }
  0x74   : > { %476 = vmatmul.f32.gmra.mxu0 %v231_v11  ;;  %637 = vmatmul.f32.gmra.mxu3 %v280_v13 }
  0x75   : > { %589 = vmatmul.f32.gmra.mxu1 %v232_v12 }
  0x76   : > { %953 = vmatmul.msk.f32.gmra.mxu2 %vm336_vm0, %v242_v14 }
  0x7c   : > { %479 = vmatmul.f32.gmra.mxu0 %v234_v15  ;;  %640 = vmatmul.f32.gmra.mxu3 %v283_v17  ;;  %v261_v17 = vld [vmem:[%s1135_s25 + $0x1c8] sm:$0xff] }
  0x7d   : > { %592 = vmatmul.f32.gmra.mxu1 %v235_v16 }
  0x7e   : > { %954 = vmatmul.msk.f32.gmra.mxu2 %vm336_vm0, %v245_v18 }
  0x84   : > { %482 = vmatmul.f32.gmra.mxu0 %v237_v19  ;;  %643 = vmatmul.f32.gmra.mxu3 %v286_v21  ;;  %v262_v19 = vld [vmem:[%s1135_s25 + $0x1d0] sm:$0xff] }
  0x85   : > { %595 = vmatmul.f32.gmra.mxu1 %v238_v20  ;;  %v296_v20 = vld [vmem:[%s1135_s25 + $0x2e0] sm:$0xff] }
  0x86   : > { %955 = vmatmul.msk.f32.gmra.mxu2 %vm336_vm0, %v248_v22  ;;  %v272_v22 = vld [vmem:[%s1135_s25 + $0x220] sm:$0xff] }
  0x8c   : > { %485 = vmatmul.f32.gmra.mxu0 %v240_v23  ;;  %646 = vmatmul.f32.gmra.mxu3 %v289_v25 }
  0x8d   : > { %598 = vmatmul.f32.gmra.mxu1 %v241_v24 }
  0x8e   : > { %956 = vmatmul.msk.f32.gmra.mxu2 %vm336_vm0, %v251_v26 }
  0x94   : > { %488 = vmatmul.f32.gmra.mxu0 %v243_v27  ;;  %649 = vmatmul.f32.gmra.mxu3 %v292_v29  ;;  %v264_v29 = vld [vmem:[%s1135_s25 + $0x1e0] sm:$0xff] }
  0x95   : > { %601 = vmatmul.f32.gmra.mxu1 %v244_v28 }
  0x96   : > { %957 = vmatmul.msk.f32.gmra.mxu2 %vm336_vm0, %v254_v30 }
  0x99   : > { %v676_v31 = vpop.f32.mrf.mxu2 }
  0x9c   : > { %491 = vmatmul.f32.gmra.mxu0 %v246_v32  ;;  %652 = vmatmul.f32.gmra.mxu3 %v295_v34  ;;  %v299_v32 = vld [vmem:[%s1135_s25 + $0x2f8] sm:$0xff] }
  0x9d   : > { %604 = vmatmul.f32.gmra.mxu1 %v247_v33  ;;  %v275_v34 = vld [vmem:[%s1135_s25 + $0x238] sm:$0xff] }
  0x9e   : > { %958 = vmatmul.msk.f32.gmra.mxu2 %vm336_vm0, %v257_v35 }
  0xa1   : > { %v679_v36 = vpop.f32.mrf.mxu2 }
  0xa4   : > { %494 = vmatmul.f32.gmra.mxu0 %v249_v37  ;;  %655 = vmatmul.f32.gmra.mxu3 %v298_v39 }
  0xa5   : > { %607 = vmatmul.f32.gmra.mxu1 %v250_v38 }
  0xa6   : > { %959 = vmatmul.msk.f32.gmra.mxu2 %vm336_vm0, %v260_v40 }
  0xa9   : > { %v682_v41 = vpop.f32.mrf.mxu2  ;;  %v450_v42 = vpop.f32.mrf.mxu0 }
  0xaa   : > { %v563_v44 = vpop.f32.mrf.mxu1 }
  0xab   : > { %v564_v47 = vadd.f32 %v563_v44, %v450_v42 }
  0xac   : > { %497 = vmatmul.f32.gmra.mxu0 %v252_v43  ;;  %968 = vmatmul.msk.f32.vlgmr.msra.gmra.mxu3 %vm336_vm0, %v287_v46  ;;  %v268_v43 = vld [vmem:[%s1135_s25 + $0x200] sm:$0xff] }
  0xad   : > { %v677_v50 = vadd.f32 %v676_v31, %v564_v47  ;;  %610 = vmatmul.f32.gmra.mxu1 %v253_v45  ;;  %v265_v31 = vld [vmem:[%s1135_s25 + $0x1e8] sm:$0xff]  ;;  %v278_v45 = vld [vmem:[%s1135_s25 + $0x250] sm:$0xff] }
  0xae   : > { %960 = vmatmul.msk.f32.gmra.mxu2 %vm336_vm0, %v263_v49 }
  0xaf   : > { %v776_v52 = vmul.f32 %v1339_v48, %v677_v50  ;;  %v1356_v53 = vpop.f32.mrf.mxu3 }
  0xb1   : > { %v812_v54 = vadd.f32 %v1346_v51, %v776_v52  ;;  %v685_v55 = vpop.f32.mrf.mxu2  ;;  %v453_v56 = vpop.f32.mrf.mxu0 }
  0xb2   : > { %v566_v58 = vpop.f32.mrf.mxu1 }
  0xb3   : > { %844 = vst.msk [vmem:[%s1354_s5] sm:$0xff] %vm336_vm0, %v812_v54  ;;  %v567_v61 = vadd.f32 %v566_v58, %v453_v56 }
  0xb4   : > { %500 = vmatmul.f32.gmra.mxu0 %v255_v57  ;;  %969 = vmatmul.msk.f32.gmra.mxu3 %vm336_vm0, %v290_v60  ;;  %v271_v57 = vld [vmem:[%s1135_s25 + $0x218] sm:$0xff] }
  0xb5   : > { %v680_v63 = vadd.f32 %v679_v36, %v567_v61  ;;  %613 = vmatmul.f32.gmra.mxu1 %v256_v59  ;;  %v281_v59 = vld [vmem:[%s1135_s25 + $0x268] sm:$0xff] }
  0xb6   : > { %961 = vmatmul.msk.f32.gmra.mxu2 %vm336_vm0, %v266_v62 }
  0xb7   : > { %v777_v0 = vmul.f32 %v1339_v48, %v680_v63  ;;  %v1368_v1 = vpop.f32.mrf.mxu3 }
  0xb9   : > { %v813_v2 = vadd.f32 %v1346_v51, %v777_v0  ;;  %v688_v3 = vpop.f32.mrf.mxu2  ;;  %v456_v4 = vpop.f32.mrf.mxu0 }
  0xba   : > { %v569_v6 = vpop.f32.mrf.mxu1 }
  0xbb   : > { %845 = vst.msk [vmem:[%s1354_s5 + $0x8] sm:$0xff] %vm336_vm0, %v813_v2  ;;  %v570_v9 = vadd.f32 %v569_v6, %v456_v4 }
  0xbc   : > { %503 = vmatmul.f32.gmra.mxu0 %v258_v5  ;;  %970 = vmatmul.msk.f32.gmra.mxu3 %vm336_vm0, %v293_v8  ;;  %v274_v5 = vld [vmem:[%s1135_s25 + $0x230] sm:$0xff] }
  0xbd   : > { %v683_v11 = vadd.f32 %v682_v41, %v570_v9  ;;  %616 = vmatmul.f32.gmra.mxu1 %v259_v7  ;;  %v267_v41 = vld [vmem:[%s1135_s25 + $0x1f8] sm:$0xff]  ;;  %v284_v7 = vld [vmem:[%s1135_s25 + $0x280] sm:$0xff] }
  0xbe   : > { %962 = vmatmul.msk.f32.gmra.mxu2 %vm336_vm0, %v269_v10 }
  0xbf   : > { %v778_v12 = vmul.f32 %v1339_v48, %v683_v11  ;;  %v1380_v13 = vpop.f32.mrf.mxu3 }
  0xc1   : > { %v814_v14 = vadd.f32 %v1346_v51, %v778_v12  ;;  %v691_v15 = vpop.f32.mrf.mxu2  ;;  %v459_v16 = vpop.f32.mrf.mxu0 }
  0xc2   : > { %v572_v18 = vpop.f32.mrf.mxu1 }
  0xc3   : > { %846 = vst.msk [vmem:[%s1354_s5 + $0x10] sm:$0xff] %vm336_vm0, %v814_v14  ;;  %v573_v21 = vadd.f32 %v572_v18, %v459_v16 }
  0xc4   : > { %506 = vmatmul.f32.gmra.mxu0 %v261_v17  ;;  %971 = vmatmul.msk.f32.gmra.mxu3 %vm336_vm0, %v296_v20 }
  0xc5   : > { %v686_v23 = vadd.f32 %v685_v55, %v573_v21  ;;  %619 = vmatmul.f32.gmra.mxu1 %v262_v19  ;;  %v270_v55 = vld [vmem:[%s1135_s25 + $0x210] sm:$0xff] }
  0xc6   : > { %963 = vmatmul.msk.f32.gmra.mxu2 %vm336_vm0, %v272_v22 }
  0xc7   : > { %v779_v24 = vmul.f32 %v1339_v48, %v686_v23  ;;  %v1392_v25 = vpop.f32.mrf.mxu3 }
  0xc9   : > { %v815_v26 = vadd.f32 %v1346_v51, %v779_v24  ;;  %v694_v27 = vpop.f32.mrf.mxu2  ;;  %v462_v28 = vpop.f32.mrf.mxu0 }
  0xca   : > { %v575_v30 = vpop.f32.mrf.mxu1 }
  0xcb   : > { %847 = vst.msk [vmem:[%s1354_s5 + $0x18] sm:$0xff] %vm336_vm0, %v815_v26  ;;  %v576_v33 = vadd.f32 %v575_v30, %v462_v28 }
  0xcc   : > { %509 = vmatmul.f32.gmra.mxu0 %v264_v29  ;;  %972 = vmatmul.msk.f32.gmra.mxu3 %vm336_vm0, %v299_v32 }
  0xcd   : > { %v689_v35 = vadd.f32 %v688_v3, %v576_v33  ;;  %622 = vmatmul.f32.gmra.mxu1 %v265_v31  ;;  %v273_v3 = vld [vmem:[%s1135_s25 + $0x228] sm:$0xff] }
  0xce   : > { %964 = vmatmul.msk.f32.gmra.mxu2 %vm336_vm0, %v275_v34 }
  0xcf   : > { %v780_v36 = vmul.f32 %v1339_v48, %v689_v35  ;;  %v1404_v37 = vpop.f32.mrf.mxu3 }
  0xd1   : > { %v816_v38 = vadd.f32 %v1346_v51, %v780_v36  ;;  %v697_v39 = vpop.f32.mrf.mxu2  ;;  %v465_v40 = vpop.f32.mrf.mxu0 }
  0xd2   : > { %v578_v42 = vpop.f32.mrf.mxu1 }
  0xd3   : > { %848 = vst.msk [vmem:[%s1354_s5 + $0x20] sm:$0xff] %vm336_vm0, %v816_v38  ;;  %v579_v44 = vadd.f32 %v578_v42, %v465_v40 }
  0xd4   : > { %512 = vmatmul.f32.gmra.mxu0 %v267_v41 }
  0xd5   : > { %v692_v46 = vadd.f32 %v691_v15, %v579_v44  ;;  %625 = vmatmul.f32.gmra.mxu1 %v268_v43 }
  0xd6   : > { %965 = vmatmul.msk.f32.gmra.mxu2 %vm336_vm0, %v278_v45 }
  0xd7   : > { %v781_v47 = vmul.f32 %v1339_v48, %v692_v46  ;;  %v1414_v49 = vpop.f32.mrf.mxu3 }
  0xd9   : > { %v817_v50 = vadd.f32 %v1346_v51, %v781_v47  ;;  %v700_v52 = vpop.f32.mrf.mxu2  ;;  %v468_v54 = vpop.f32.mrf.mxu0 }
  0xda   : > { %v581_v56 = vpop.f32.mrf.mxu1 }
  0xdb   : > { %849 = vst.msk [vmem:[%s1354_s5 + $0x28] sm:$0xff] %vm336_vm0, %v817_v50  ;;  %v582_v58 = vadd.f32 %v581_v56, %v468_v54 }
  0xdc   : > { %515 = vmatmul.f32.gmra.mxu0 %v270_v55 }
  0xdd   : > { %v695_v60 = vadd.f32 %v694_v27, %v582_v58  ;;  %628 = vmatmul.f32.gmra.mxu1 %v271_v57 }
  0xde   : > { %966 = vmatmul.msk.f32.gmra.mxu2 %vm336_vm0, %v281_v59 }
  0xdf   : > { %v782_v61 = vmul.f32 %v1339_v48, %v695_v60  ;;  %v1424_v62 = vpop.f32.mrf.mxu3 }
  0xe1   : > { %v818_v63 = vadd.f32 %v1346_v51, %v782_v61  ;;  %v703_v0 = vpop.f32.mrf.mxu2  ;;  %v471_v2 = vpop.f32.mrf.mxu0 }
  0xe2   : > { %v584_v4 = vpop.f32.mrf.mxu1 }
  0xe3   : > { %850 = vst.msk [vmem:[%s1354_s5 + $0x30] sm:$0xff] %vm336_vm0, %v818_v63  ;;  %v585_v6 = vadd.f32 %v584_v4, %v471_v2 }
  0xe4   : > { %518 = vmatmul.f32.gmra.mxu0 %v273_v3 }
  0xe5   : > { %v698_v8 = vadd.f32 %v697_v39, %v585_v6  ;;  %631 = vmatmul.f32.gmra.mxu1 %v274_v5 }
  0xe6   : > { %967 = vmatmul.msk.f32.gmra.mxu2 %vm336_vm0, %v284_v7 }
  0xe7   : > { %v783_v9 = vmul.f32 %v1339_v48, %v698_v8  ;;  %v1434_v10 = vpop.f32.mrf.mxu3 }
  0xe9   : > { %v819_v11 = vadd.f32 %v1346_v51, %v783_v9  ;;  %v706_v12 = vpop.f32.mrf.mxu2  ;;  %v474_v14 = vpop.f32.mrf.mxu0 }
  0xea   : > { %v587_v15 = vpop.f32.mrf.mxu1 }
  0xeb   : > { %851 = vst.msk [vmem:[%s1354_s5 + $0x38] sm:$0xff] %vm336_vm0, %v819_v11  ;;  %v588_v16 = vadd.f32 %v587_v15, %v474_v14 }
  0xed   : > { %v701_v17 = vadd.f32 %v700_v52, %v588_v16 }
  0xef   : > { %v784_v18 = vmul.f32 %v1339_v48, %v701_v17  ;;  %v635_v19 = vpop.f32.mrf.mxu3 }
  0xf0   : > { %v1442_v21 = vadd.f32 %v635_v19, %v1356_v53 }
  0xf1   : > { %v820_v20 = vadd.f32 %v1346_v51, %v784_v18  ;;  %v709_v22 = vpop.f32.mrf.mxu2  ;;  %v477_v23 = vpop.f32.mrf.mxu0 }
  0xf2   : > { %v590_v24 = vpop.f32.mrf.mxu1 }
  0xf3   : > { %852 = vst.msk [vmem:[%s1354_s5 + $0x40] sm:$0xff] %vm336_vm0, %v820_v20  ;;  %v591_v26 = vadd.f32 %v590_v24, %v477_v23 }
  0xf5   : > { %v704_v27 = vadd.f32 %v703_v0, %v591_v26 }
  0xf7   : > { %v785_v28 = vmul.f32 %v1339_v48, %v704_v27  ;;  %v638_v29 = vpop.f32.mrf.mxu3 }
  0xf8   : > { %v1449_v31 = vadd.f32 %v638_v29, %v1368_v1 }
  0xf9   : > { %v821_v30 = vadd.f32 %v1346_v51, %v785_v28  ;;  %v712_v32 = vpop.f32.mrf.mxu2  ;;  %v480_v33 = vpop.f32.mrf.mxu0 }
  0xfa   : > { %v593_v53 = vpop.f32.mrf.mxu1 }
  0xfb   : > { %853 = vst.msk [vmem:[%s1354_s5 + $0x48] sm:$0xff] %vm336_vm0, %v821_v30  ;;  %v594_v34 = vadd.f32 %v593_v53, %v480_v33 }
  0xfd   : > { %v707_v35 = vadd.f32 %v706_v12, %v594_v34 }
  0xff   : > { %v786_v36 = vmul.f32 %v1339_v48, %v707_v35  ;;  %v641_v38 = vpop.f32.mrf.mxu3 }
 0x100   : > { %v1456_v40 = vadd.f32 %v641_v38, %v1380_v13 }
 0x101   : > { %v822_v39 = vadd.f32 %v1346_v51, %v786_v36  ;;  %v715_v41 = vpop.f32.mrf.mxu2  ;;  %v483_v42 = vpop.f32.mrf.mxu0 }
 0x102   : > { %v596_v1 = vpop.f32.mrf.mxu1 }
 0x103   : > { %854 = vst.msk [vmem:[%s1354_s5 + $0x50] sm:$0xff] %vm336_vm0, %v822_v39  ;;  %v597_v43 = vadd.f32 %v596_v1, %v483_v42 }
 0x105   : > { %v710_v44 = vadd.f32 %v709_v22, %v597_v43 }
 0x107   : > { %v787_v45 = vmul.f32 %v1339_v48, %v710_v44  ;;  %v644_v46 = vpop.f32.mrf.mxu3 }
 0x108   : > { %v645_v30 = vadd.f32 %v644_v46, %v1392_v25 }
 0x109   : > { %v823_v47 = vadd.f32 %v1346_v51, %v787_v45  ;;  %v718_v50 = vpop.f32.mrf.mxu2  ;;  %v486_v52 = vpop.f32.mrf.mxu0 }
 0x10a   : > { %v599_v54 = vpop.f32.mrf.mxu1 }
 0x10b   : > { %855 = vst.msk [vmem:[%s1354_s5 + $0x58] sm:$0xff] %vm336_vm0, %v823_v47  ;;  %v600_v13 = vadd.f32 %v599_v54, %v486_v52 }
 0x10d   : > { %v713_v55 = vadd.f32 %v712_v32, %v600_v13 }
 0x10f   : > { %v788_v56 = vmul.f32 %v1339_v48, %v713_v55  ;;  %v647_v57 = vpop.f32.mrf.mxu3 }
 0x110   : > { %v648_v25 = vadd.f32 %v647_v57, %v1404_v37 }
 0x111   : > { %v824_v58 = vadd.f32 %v1346_v51, %v788_v56  ;;  %v721_v59 = vpop.f32.mrf.mxu2  ;;  %v489_v60 = vpop.f32.mrf.mxu0 }
 0x112   : > { %v602_v61 = vpop.f32.mrf.mxu1 }
 0x113   : > { %856 = vst.msk [vmem:[%s1354_s5 + $0x60] sm:$0xff] %vm336_vm0, %v824_v58  ;;  %v603_v63 = vadd.f32 %v602_v61, %v489_v60 }
 0x115   : > { %v716_v0 = vadd.f32 %v715_v41, %v603_v63 }
 0x117   : > { %v789_v2 = vmul.f32 %v1339_v48, %v716_v0  ;;  %v650_v3 = vpop.f32.mrf.mxu3 }
 0x118   : > { %v651_v56 = vadd.f32 %v650_v3, %v1414_v49 }
 0x119   : > { %v825_v4 = vadd.f32 %v1346_v51, %v789_v2  ;;  %v724_v5 = vpop.f32.mrf.mxu2  ;;  %v492_v6 = vpop.f32.mrf.mxu0 }
 0x11a   : > { %v605_v7 = vpop.f32.mrf.mxu1 }
 0x11b   : > { %857 = vst.msk [vmem:[%s1354_s5 + $0x68] sm:$0xff] %vm336_vm0, %v825_v4  ;;  %v606_v8 = vadd.f32 %v605_v7, %v492_v6 }
 0x11d   : > { %v719_v9 = vadd.f32 %v718_v50, %v606_v8 }
 0x11f   : > { %v790_v11 = vmul.f32 %v1339_v48, %v719_v9  ;;  %v653_v12 = vpop.f32.mrf.mxu3 }
 0x120   : > { %v654_v3 = vadd.f32 %v653_v12, %v1424_v62 }
 0x121   : > { %v826_v14 = vadd.f32 %v1346_v51, %v790_v11  ;;  %v727_v15 = vpop.f32.mrf.mxu2  ;;  %v495_v16 = vpop.f32.mrf.mxu0 }
 0x122   : > { %v608_v17 = vpop.f32.mrf.mxu1 }
 0x123   : > { %858 = vst.msk [vmem:[%s1354_s5 + $0x70] sm:$0xff] %vm336_vm0, %v826_v14  ;;  %v609_v18 = vadd.f32 %v608_v17, %v495_v16 }
 0x125   : > { %v722_v19 = vadd.f32 %v721_v59, %v609_v18 }
 0x127   : > { %v791_v20 = vmul.f32 %v1339_v48, %v722_v19  ;;  %v1477_v22 = vpop.f32.mrf.mxu3 }
 0x128   : > { %v657_v12 = vadd.f32 %v1477_v22, %v1434_v10 }
 0x129   : > { %v827_v23 = vadd.f32 %v1346_v51, %v791_v20  ;;  %v730_v24 = vpop.f32.mrf.mxu2  ;;  %v498_v26 = vpop.f32.mrf.mxu0 }
 0x12a   : > { %v611_v27 = vpop.f32.mrf.mxu1 }
 0x12b   : > { %859 = vst.msk [vmem:[%s1354_s5 + $0x78] sm:$0xff] %vm336_vm0, %v827_v23  ;;  %v612_v28 = vadd.f32 %v611_v27, %v498_v26 }
 0x12d   : > { %v725_v29 = vadd.f32 %v724_v5, %v612_v28 }
 0x12f   : > { %v792_v32 = vmul.f32 %v1339_v48, %v725_v29  ;;  %v757_v33 = vpop.f32.mrf.mxu3 }
 0x130   : > { %v758_v34 = vadd.f32 %v757_v33, %v645_v30 }
 0x131   : > { %v828_v53 = vadd.f32 %v1346_v51, %v792_v32  ;;  %v733_v35 = vpop.f32.mrf.mxu2  ;;  %v501_v36 = vpop.f32.mrf.mxu0 }
 0x132   : > { %v614_v38 = vpop.f32.mrf.mxu1  ;;  %v803_v39 = vmul.f32 %v1339_v48, %v758_v34 }
 0x133   : > { %860 = vst.msk [vmem:[%s1354_s5 + $0x80] sm:$0xff] %vm336_vm0, %v828_v53  ;;  %v615_v41 = vadd.f32 %v614_v38, %v501_v36 }
 0x134   : > { %v839_v42 = vadd.f32 %v1346_v51, %v803_v39 }
 0x135   : > { %v728_v1 = vadd.f32 %v727_v15, %v615_v41 }
 0x136   : > { %871 = vst.msk [vmem:[%s1354_s5 + $0xd8] sm:$0xff] %vm336_vm0, %v839_v42 }
 0x137   : > { %v793_v43 = vmul.f32 %v1339_v48, %v728_v1  ;;  %v760_v44 = vpop.f32.mrf.mxu3 }
 0x138   : > { %v761_v46 = vadd.f32 %v760_v44, %v648_v25 }
 0x139   : > { %v829_v45 = vadd.f32 %v1346_v51, %v793_v43  ;;  %v736_v47 = vpop.f32.mrf.mxu2  ;;  %v504_v50 = vpop.f32.mrf.mxu0 }
 0x13a   : > { %v617_v52 = vpop.f32.mrf.mxu1  ;;  %v804_v54 = vmul.f32 %v1339_v48, %v761_v46 }
 0x13b   : > { %861 = vst.msk [vmem:[%s1354_s5 + $0x88] sm:$0xff] %vm336_vm0, %v829_v45  ;;  %v618_v13 = vadd.f32 %v617_v52, %v504_v50 }
 0x13c   : > { %v840_v55 = vadd.f32 %v1346_v51, %v804_v54 }
 0x13d   : > { %v731_v37 = vadd.f32 %v730_v24, %v618_v13 }
 0x13e   : > { %872 = vst.msk [vmem:[%s1354_s5 + $0xe0] sm:$0xff] %vm336_vm0, %v840_v55 }
 0x13f   : > { %v794_v57 = vmul.f32 %v1339_v48, %v731_v37  ;;  %v763_v58 = vpop.f32.mrf.mxu3 }
 0x140   : > { %v764_v60 = vadd.f32 %v763_v58, %v651_v56 }
 0x141   : > { %v830_v59 = vadd.f32 %v1346_v51, %v794_v57  ;;  %v739_v61 = vpop.f32.mrf.mxu2  ;;  %v507_v63 = vpop.f32.mrf.mxu0 }
 0x142   : > { %v620_v0 = vpop.f32.mrf.mxu1  ;;  %v805_v2 = vmul.f32 %v1339_v48, %v764_v60 }
 0x143   : > { %862 = vst.msk [vmem:[%s1354_s5 + $0x90] sm:$0xff] %vm336_vm0, %v830_v59  ;;  %v621_v4 = vadd.f32 %v620_v0, %v507_v63 }
 0x144   : > { %v841_v5 = vadd.f32 %v1346_v51, %v805_v2 }
 0x145   : > { %v734_v49 = vadd.f32 %v733_v35, %v621_v4 }
 0x146   : > { %873 = vst.msk [vmem:[%s1354_s5 + $0xe8] sm:$0xff] %vm336_vm0, %v841_v5 }
 0x147   : > { %v795_v6 = vmul.f32 %v1339_v48, %v734_v49  ;;  %v766_v7 = vpop.f32.mrf.mxu3 }
 0x148   : > { %v767_v9 = vadd.f32 %v766_v7, %v654_v3 }
 0x149   : > { %v831_v8 = vadd.f32 %v1346_v51, %v795_v6  ;;  %v742_v11 = vpop.f32.mrf.mxu2  ;;  %v510_v14 = vpop.f32.mrf.mxu0 }
 0x14a   : > { %v623_v15 = vpop.f32.mrf.mxu1  ;;  %v806_v16 = vmul.f32 %v1339_v48, %v767_v9 }
 0x14b   : > { %863 = vst.msk [vmem:[%s1354_s5 + $0x98] sm:$0xff] %vm336_vm0, %v831_v8  ;;  %v624_v17 = vadd.f32 %v623_v15, %v510_v14 }
 0x14c   : > { %v842_v18 = vadd.f32 %v1346_v51, %v806_v16 }
 0x14d   : > { %v737_v62 = vadd.f32 %v736_v47, %v624_v17 }
 0x14e   : > { %874 = vst.msk [vmem:[%s1354_s5 + $0xf0] sm:$0xff] %vm336_vm0, %v842_v18 }
 0x14f   : > { %v796_v19 = vmul.f32 %v1339_v48, %v737_v62  ;;  %v769_v20 = vpop.f32.mrf.mxu3 }
 0x150   : > { %v770_v24 = vadd.f32 %v769_v20, %v657_v12 }
 0x151   : > { %v832_v23 = vadd.f32 %v1346_v51, %v796_v19  ;;  %v745_v26 = vpop.f32.mrf.mxu2  ;;  %v513_v27 = vpop.f32.mrf.mxu0 }
 0x152   : > { %v626_v28 = vpop.f32.mrf.mxu1  ;;  %v807_v29 = vmul.f32 %v1339_v48, %v770_v24 }
 0x153   : > { %864 = vst.msk [vmem:[%s1354_s5 + $0xa0] sm:$0xff] %vm336_vm0, %v832_v23  ;;  %v627_v30 = vadd.f32 %v626_v28, %v513_v27 }
 0x154   : > { %v843_v10 = vadd.f32 %v1346_v51, %v807_v29 }
 0x155   : > { %v740_v22 = vadd.f32 %v739_v61, %v627_v30 }
 0x156   : > { %875 = vst.msk [vmem:[%s1354_s5 + $0xf8] sm:$0xff] %vm336_vm0, %v843_v10 }
 0x157   : > { %v797_v32 = vmul.f32 %v1339_v48, %v740_v22 }
 0x159   : > { %v833_v33 = vadd.f32 %v1346_v51, %v797_v32  ;;  %v748_v53 = vpop.f32.mrf.mxu2  ;;  %v516_v34 = vpop.f32.mrf.mxu0 }
 0x15a   : > { %v749_v35 = vadd.f32 %v748_v53, %v1442_v21  ;;  %v629_v36 = vpop.f32.mrf.mxu1 }
 0x15b   : > { %865 = vst.msk [vmem:[%s1354_s5 + $0xa8] sm:$0xff] %vm336_vm0, %v833_v33  ;;  %v630_v38 = vadd.f32 %v629_v36, %v516_v34 }
 0x15c   : > { %v800_v39 = vmul.f32 %v1339_v48, %v749_v35 }
 0x15d   : > { %v743_v41 = vadd.f32 %v742_v11, %v630_v38 }
 0x15e   : > { %v836_v42 = vadd.f32 %v1346_v51, %v800_v39 }
 0x15f   : > { %v798_v1 = vmul.f32 %v1339_v48, %v743_v41 }
 0x160   : > { %868 = vst.msk [vmem:[%s1354_s5 + $0xc0] sm:$0xff] %vm336_vm0, %v836_v42 }
 0x161   : > { %v834_v25 = vadd.f32 %v1346_v51, %v798_v1  ;;  %v751_v43 = vpop.f32.mrf.mxu2  ;;  %v519_v44 = vpop.f32.mrf.mxu0 }
 0x162   : > { %v752_v21 = vadd.f32 %v751_v43, %v1449_v31  ;;  %v632_v45 = vpop.f32.mrf.mxu1 }
 0x163   : > { %866 = vst.msk [vmem:[%s1354_s5 + $0xb0] sm:$0xff] %vm336_vm0, %v834_v25  ;;  %v633_v46 = vadd.f32 %v632_v45, %v519_v44 }
 0x164   : > { %v801_v47 = vmul.f32 %v1339_v48, %v752_v21 }
 0x165   : > { %v746_v50 = vadd.f32 %v745_v26, %v633_v46 }
 0x166   : > { %v837_v52 = vadd.f32 %v1346_v51, %v801_v47 }
 0x167   : > { %v799_v54 = vmul.f32 %v1339_v48, %v746_v50 }
 0x168   : > { %869 = vst.msk [vmem:[%s1354_s5 + $0xc8] sm:$0xff] %vm336_vm0, %v837_v52 }
 0x169   : > { %v835_v13 = vadd.f32 %v1346_v51, %v799_v54  ;;  %v754_v55 = vpop.f32.mrf.mxu2 }
 0x16a   : > { %v755_v37 = vadd.f32 %v754_v55, %v1456_v40 }
 0x16b   : > { %867 = vst.msk [vmem:[%s1354_s5 + $0xb8] sm:$0xff] %vm336_vm0, %v835_v13 }
 0x16c   : > { %v802_v31 = vmul.f32 %v1339_v48, %v755_v37 }
 0x16e   : > { %v838_v56 = vadd.f32 %v1346_v51, %v802_v31 }
 0x170   : > { %870 = vst.msk [vmem:[%s1354_s5 + $0xd0] sm:$0xff] %vm336_vm0, %v838_v56 }
 0x171 PF: > { %s14_s15 = sadd.s32 1, %s1028_s15  }
 0x172   : > { %p11_p4 = scmp.ge.s32.totalorder %s14_s15, 4  }
 0x174   :  { %13 = sbr.rel (!%p11_p4) target bundleno = 1 (0x1), region = 66 }

// kernel: resblock_forward.6
= control target key start
LH: loop header
LB: loop body
LE: loop exit
PB: predicated region body
PF: predicated region fallthrough
CT: control target
= control target key end

     0   :  { %s698_s15 = smov 0   ;;  %s934_s0 = inlined_call_operand.vmem [shape: f32[512,16], index: 0, kind: input, shape index: {}]   ;;  %s935_s1 = inlined_call_operand.vmem [shape: f32[16,32], index: 1, kind: input, shape index: {}]   ;;  %s936_s2 = inlined_call_operand.vmem [shape: f32[1,32], index: 2, kind: input, shape index: {}]   ;;  %s937_s3 = inlined_call_operand.vmem [shape: f32[1,32], index: 3, kind: input, shape index: {}]   ;;  %s938_s4 = inlined_call_operand.vmem [shape: f32[512,32], index: 4, kind: output, shape index: {}]  }
   0x1 LB: > { %s606_s16 = sadd.s32 4294967295, %s671_s15   ;;  %p610_p0 = scmp.ge.s32.totalorder %s671_s15, 1  ;;  %s671_s15 = sphi %s698_s15, %s14_s15  }
   0x2   : > { %p163_p1 = scmp.lt.s32.totalorder %s671_s15, 3 }
   0x4   : > { %p164_p2 = pnand %p610_p0, %p163_p1 }
   0x5   : > { %s611_s21 = sshll.u32 (!%p164_p2), %s606_s16, 5 }
   0x6   : > { %167 = sbr.rel (%p164_p2) target bundleno = 210 (0xd2), region = 36  ;;  %p190_p3 = scmp.lt.s32.totalorder (!%p164_p2), %s611_s21, 63 }
   0xb   : > { %v234_v0 = vld [vmem:[%s935_s1 + $0x8] sm:$0xff]  ;;  %v233_v1 = vld [vmem:[%s935_s1] sm:$0xff]  ;;  %s940_s21 = smov (!%p190_p3, %s611_s21), 63  ;;  %vm235_vm0 = vcmask 130048   ;;  %vm517_vm1 = vcmask 261120  }
   0xc   : > { %650 = vmatpush.msra.mxu2 %v234_v0  ;;  %651 = vmatpush.msra.mxu3 %v234_v0  ;;  %s612_s22 = sshll.u32 %s940_s21, 3  ;;  %v789_v34 = vld [vmem:[%s936_s2] ss:$0 sm:$0xff] }
   0xd   : > { %346 = vmatpush.msra.mxu0 %v234_v0  ;;  %649 = vmatpush.msra.mxu1 %v234_v0  ;;  %s720_s25 = scalar_lea.vmem %s934_s0, %s612_s22  ;;  %v794_v35 = vld [vmem:[%s937_s3] ss:$0 sm:$0xff]  ;;  %s803_s6 = scalar_lea.vmem %s938_s4, %s612_s22 }
   0xe   : > { %653 = vmatpush.msra.mxu2 %v233_v1  ;;  %654 = vmatpush.msra.mxu3 %v233_v1  ;;  %v217_v2 = vld [vmem:[%s720_s25 + $0x80] sm:$0xff]  ;;  %v218_v6 = vld [vmem:[%s720_s25 + $0x88] sm:$0xff]  ;;  %v219_v10 = vld [vmem:[%s720_s25 + $0x90] sm:$0xff] }
   0xf   : > { %347 = vmatpush.msra.mxu0 %v233_v1  ;;  %652 = vmatpush.msra.mxu1 %v233_v1  ;;  %v225_v3 = vld [vmem:[%s720_s25 + $0xc0] sm:$0xff]  ;;  %v226_v7 = vld [vmem:[%s720_s25 + $0xc8] sm:$0xff]  ;;  %v227_v11 = vld [vmem:[%s720_s25 + $0xd0] sm:$0xff] }
  0x10   : > { %v201_v4 = vld [vmem:[%s720_s25] sm:$0xff]  ;;  %631 = vmatmul.msk.f32.vlgmr.msra.gmra.mxu2 %vm235_vm0, %v217_v2  ;;  %639 = vmatmul.msk.f32.vlgmr.msra.gmra.mxu3 %vm235_vm0, %v225_v3  ;;  %v202_v8 = vld [vmem:[%s720_s25 + $0x8] sm:$0xff]  ;;  %v203_v12 = vld [vmem:[%s720_s25 + $0x10] sm:$0xff] }
  0x11   : > { %v209_v5 = vld [vmem:[%s720_s25 + $0x40] sm:$0xff]  ;;  %615 = vmatmul.msk.f32.vlgmr.msra.gmra.mxu0 %vm235_vm0, %v201_v4  ;;  %v210_v9 = vld [vmem:[%s720_s25 + $0x48] sm:$0xff]  ;;  %v211_v13 = vld [vmem:[%s720_s25 + $0x50] sm:$0xff] }
  0x12   : > { %623 = vmatmul.msk.f32.vlgmr.msra.gmra.mxu1 %vm235_vm0, %v209_v5  ;;  %v220_v14 = vld [vmem:[%s720_s25 + $0x98] sm:$0xff]  ;;  %v221_v18 = vld [vmem:[%s720_s25 + $0xa0] sm:$0xff]  ;;  %v222_v22 = vld [vmem:[%s720_s25 + $0xa8] sm:$0xff] }
  0x13   : > { %v228_v15 = vld [vmem:[%s720_s25 + $0xd8] sm:$0xff]  ;;  %v229_v19 = vld [vmem:[%s720_s25 + $0xe0] sm:$0xff]  ;;  %v230_v23 = vld [vmem:[%s720_s25 + $0xe8] sm:$0xff] }
  0x14   : > { %v204_v16 = vld [vmem:[%s720_s25 + $0x18] sm:$0xff]  ;;  %v205_v20 = vld [vmem:[%s720_s25 + $0x20] sm:$0xff]  ;;  %v206_v24 = vld [vmem:[%s720_s25 + $0x28] sm:$0xff] }
  0x15   : > { %v212_v17 = vld [vmem:[%s720_s25 + $0x58] sm:$0xff]  ;;  %v213_v21 = vld [vmem:[%s720_s25 + $0x60] sm:$0xff]  ;;  %v214_v25 = vld [vmem:[%s720_s25 + $0x68] sm:$0xff] }
  0x16   : > { %v223_v26 = vld [vmem:[%s720_s25 + $0xb0] sm:$0xff]  ;;  %v224_v30 = vld [vmem:[%s720_s25 + $0xb8] sm:$0xff] }
  0x17   : > { %v231_v27 = vld [vmem:[%s720_s25 + $0xf0] sm:$0xff]  ;;  %v232_v31 = vld [vmem:[%s720_s25 + $0xf8] sm:$0xff] }
  0x18   : > { %632 = vmatmul.msk.f32.gmra.mxu2 %vm235_vm0, %v218_v6  ;;  %640 = vmatmul.msk.f32.gmra.mxu3 %vm235_vm0, %v226_v7  ;;  %v207_v28 = vld [vmem:[%s720_s25 + $0x30] sm:$0xff]  ;;  %v208_v32 = vld [vmem:[%s720_s25 + $0x38] sm:$0xff] }
  0x19   : > { %616 = vmatmul.msk.f32.gmra.mxu0 %vm235_vm0, %v202_v8  ;;  %v215_v29 = vld [vmem:[%s720_s25 + $0x70] sm:$0xff]  ;;  %v216_v33 = vld [vmem:[%s720_s25 + $0x78] sm:$0xff] }
  0x1a   : > { %624 = vmatmul.msk.f32.gmra.mxu1 %vm235_vm0, %v210_v9 }
  0x20   : > { %633 = vmatmul.msk.f32.gmra.mxu2 %vm235_vm0, %v219_v10  ;;  %641 = vmatmul.msk.f32.gmra.mxu3 %vm235_vm0, %v227_v11 }
  0x21   : > { %617 = vmatmul.msk.f32.gmra.mxu0 %vm235_vm0, %v203_v12 }
  0x22   : > { %625 = vmatmul.msk.f32.gmra.mxu1 %vm235_vm0, %v211_v13 }
  0x28   : > { %634 = vmatmul.msk.f32.gmra.mxu2 %vm235_vm0, %v220_v14  ;;  %642 = vmatmul.msk.f32.gmra.mxu3 %vm235_vm0, %v228_v15 }
  0x29   : > { %618 = vmatmul.msk.f32.gmra.mxu0 %vm235_vm0, %v204_v16 }
  0x2a   : > { %626 = vmatmul.msk.f32.gmra.mxu1 %vm235_vm0, %v212_v17 }
  0x30   : > { %635 = vmatmul.msk.f32.gmra.mxu2 %vm235_vm0, %v221_v18  ;;  %643 = vmatmul.msk.f32.gmra.mxu3 %vm235_vm0, %v229_v19 }
  0x31   : > { %619 = vmatmul.msk.f32.gmra.mxu0 %vm235_vm0, %v205_v20 }
  0x32   : > { %627 = vmatmul.msk.f32.gmra.mxu1 %vm235_vm0, %v213_v21 }
  0x38   : > { %636 = vmatmul.msk.f32.gmra.mxu2 %vm235_vm0, %v222_v22  ;;  %644 = vmatmul.msk.f32.gmra.mxu3 %vm235_vm0, %v230_v23 }
  0x39   : > { %620 = vmatmul.msk.f32.gmra.mxu0 %vm235_vm0, %v206_v24 }
  0x3a   : > { %628 = vmatmul.msk.f32.gmra.mxu1 %vm235_vm0, %v214_v25 }
  0x40   : > { %637 = vmatmul.msk.f32.gmra.mxu2 %vm235_vm0, %v223_v26  ;;  %645 = vmatmul.msk.f32.gmra.mxu3 %vm235_vm0, %v231_v27 }
  0x41   : > { %621 = vmatmul.msk.f32.gmra.mxu0 %vm235_vm0, %v207_v28 }
  0x42   : > { %629 = vmatmul.msk.f32.gmra.mxu1 %vm235_vm0, %v215_v29 }
  0x48   : > { %638 = vmatmul.msk.f32.gmra.mxu2 %vm235_vm0, %v224_v30  ;;  %646 = vmatmul.msk.f32.gmra.mxu3 %vm235_vm0, %v232_v31 }
  0x49   : > { %622 = vmatmul.msk.f32.gmra.mxu0 %vm235_vm0, %v208_v32 }
  0x4a   : > { %630 = vmatmul.msk.f32.gmra.mxu1 %vm235_vm0, %v216_v33 }
  0x8e   : > { %v349_v36 = vpop.f32.mrf.mxu0 }
  0x8f   : > { %v373_v37 = vpop.f32.mrf.mxu1  ;;  %v449_v38 = vmul.f32 %v789_v34, %v349_v36 }
  0x90   : > { %v457_v39 = vmul.f32 %v789_v34, %v373_v37 }
  0x91   : > { %v485_v40 = vadd.f32 %v794_v35, %v449_v38 }
  0x92   : > { %v493_v41 = vadd.f32 %v794_v35, %v457_v39 }
  0x93   : > { %518 = vst.msk [vmem:[%s803_s6] sm:$0xff] %vm517_vm1, %v485_v40  ;;  %v397_v42 = vpop.f32.mrf.mxu2  ;;  %v421_v43 = vpop.f32.mrf.mxu3 }
  0x94   : > { %526 = vst.msk [vmem:[%s803_s6 + $0x40] sm:$0xff] %vm517_vm1, %v493_v41  ;;  %v465_v44 = vmul.f32 %v789_v34, %v397_v42  ;;  %v473_v45 = vmul.f32 %v789_v34, %v421_v43 }
  0x96   : > { %v501_v46 = vadd.f32 %v794_v35, %v465_v44  ;;  %v509_v47 = vadd.f32 %v794_v35, %v473_v45  ;;  %v352_v48 = vpop.f32.mrf.mxu0 }
  0x97   : > { %v376_v49 = vpop.f32.mrf.mxu1  ;;  %v450_v50 = vmul.f32 %v789_v34, %v352_v48 }
  0x98   : > { %v458_v51 = vmul.f32 %v789_v34, %v376_v49  ;;  %534 = vst.msk [vmem:[%s803_s6 + $0x80] sm:$0xff] %vm517_vm1, %v501_v46 }
  0x99   : > { %542 = vst.msk [vmem:[%s803_s6 + $0xc0] sm:$0xff] %vm517_vm1, %v509_v47  ;;  %v486_v52 = vadd.f32 %v794_v35, %v450_v50 }
  0x9a   : > { %v494_v53 = vadd.f32 %v794_v35, %v458_v51 }
  0x9b   : > { %519 = vst.msk [vmem:[%s803_s6 + $0x8] sm:$0xff] %vm517_vm1, %v486_v52  ;;  %v400_v54 = vpop.f32.mrf.mxu2  ;;  %v424_v55 = vpop.f32.mrf.mxu3 }
  0x9c   : > { %527 = vst.msk [vmem:[%s803_s6 + $0x48] sm:$0xff] %vm517_vm1, %v494_v53  ;;  %v466_v56 = vmul.f32 %v789_v34, %v400_v54  ;;  %v474_v57 = vmul.f32 %v789_v34, %v424_v55 }
  0x9e   : > { %v502_v58 = vadd.f32 %v794_v35, %v466_v56  ;;  %v510_v59 = vadd.f32 %v794_v35, %v474_v57  ;;  %v355_v60 = vpop.f32.mrf.mxu0 }
  0x9f   : > { %v379_v61 = vpop.f32.mrf.mxu1  ;;  %v451_v62 = vmul.f32 %v789_v34, %v355_v60 }
  0xa0   : > { %v459_v63 = vmul.f32 %v789_v34, %v379_v61  ;;  %535 = vst.msk [vmem:[%s803_s6 + $0x88] sm:$0xff] %vm517_vm1, %v502_v58 }
  0xa1   : > { %543 = vst.msk [vmem:[%s803_s6 + $0xc8] sm:$0xff] %vm517_vm1, %v510_v59  ;;  %v487_v0 = vadd.f32 %v794_v35, %v451_v62 }
  0xa2   : > { %v495_v1 = vadd.f32 %v794_v35, %v459_v63 }
  0xa3   : > { %520 = vst.msk [vmem:[%s803_s6 + $0x10] sm:$0xff] %vm517_vm1, %v487_v0  ;;  %v403_v2 = vpop.f32.mrf.mxu2  ;;  %v427_v3 = vpop.f32.mrf.mxu3 }
  0xa4   : > { %528 = vst.msk [vmem:[%s803_s6 + $0x50] sm:$0xff] %vm517_vm1, %v495_v1  ;;  %v467_v4 = vmul.f32 %v789_v34, %v403_v2  ;;  %v475_v5 = vmul.f32 %v789_v34, %v427_v3 }
  0xa6   : > { %v503_v6 = vadd.f32 %v794_v35, %v467_v4  ;;  %v511_v7 = vadd.f32 %v794_v35, %v475_v5  ;;  %v358_v8 = vpop.f32.mrf.mxu0 }
  0xa7   : > { %v382_v9 = vpop.f32.mrf.mxu1  ;;  %v452_v10 = vmul.f32 %v789_v34, %v358_v8 }
  0xa8   : > { %v460_v11 = vmul.f32 %v789_v34, %v382_v9  ;;  %536 = vst.msk [vmem:[%s803_s6 + $0x90] sm:$0xff] %vm517_vm1, %v503_v6 }
  0xa9   : > { %544 = vst.msk [vmem:[%s803_s6 + $0xd0] sm:$0xff] %vm517_vm1, %v511_v7  ;;  %v488_v12 = vadd.f32 %v794_v35, %v452_v10 }
  0xaa   : > { %v496_v13 = vadd.f32 %v794_v35, %v460_v11 }
  0xab   : > { %521 = vst.msk [vmem:[%s803_s6 + $0x18] sm:$0xff] %vm517_vm1, %v488_v12  ;;  %v406_v14 = vpop.f32.mrf.mxu2  ;;  %v430_v15 = vpop.f32.mrf.mxu3 }
  0xac   : > { %529 = vst.msk [vmem:[%s803_s6 + $0x58] sm:$0xff] %vm517_vm1, %v496_v13  ;;  %v468_v16 = vmul.f32 %v789_v34, %v406_v14  ;;  %v476_v17 = vmul.f32 %v789_v34, %v430_v15 }
  0xae   : > { %v504_v18 = vadd.f32 %v794_v35, %v468_v16  ;;  %v512_v19 = vadd.f32 %v794_v35, %v476_v17  ;;  %v361_v20 = vpop.f32.mrf.mxu0 }
  0xaf   : > { %v385_v21 = vpop.f32.mrf.mxu1  ;;  %v453_v22 = vmul.f32 %v789_v34, %v361_v20 }
  0xb0   : > { %v461_v23 = vmul.f32 %v789_v34, %v385_v21  ;;  %537 = vst.msk [vmem:[%s803_s6 + $0x98] sm:$0xff] %vm517_vm1, %v504_v18 }
  0xb1   : > { %545 = vst.msk [vmem:[%s803_s6 + $0xd8] sm:$0xff] %vm517_vm1, %v512_v19  ;;  %v489_v24 = vadd.f32 %v794_v35, %v453_v22 }
  0xb2   : > { %v497_v25 = vadd.f32 %v794_v35, %v461_v23 }
  0xb3   : > { %522 = vst.msk [vmem:[%s803_s6 + $0x20] sm:$0xff] %vm517_vm1, %v489_v24  ;;  %v409_v26 = vpop.f32.mrf.mxu2  ;;  %v433_v27 = vpop.f32.mrf.mxu3 }
  0xb4   : > { %530 = vst.msk [vmem:[%s803_s6 + $0x60] sm:$0xff] %vm517_vm1, %v497_v25  ;;  %v469_v28 = vmul.f32 %v789_v34, %v409_v26  ;;  %v477_v29 = vmul.f32 %v789_v34, %v433_v27 }
  0xb6   : > { %v505_v30 = vadd.f32 %v794_v35, %v469_v28  ;;  %v513_v31 = vadd.f32 %v794_v35, %v477_v29  ;;  %v364_v32 = vpop.f32.mrf.mxu0 }
  0xb7   : > { %v388_v33 = vpop.f32.mrf.mxu1  ;;  %v454_v36 = vmul.f32 %v789_v34, %v364_v32 }
  0xb8   : > { %v462_v37 = vmul.f32 %v789_v34, %v388_v33  ;;  %538 = vst.msk [vmem:[%s803_s6 + $0xa0] sm:$0xff] %vm517_vm1, %v505_v30 }
  0xb9   : > { %546 = vst.msk [vmem:[%s803_s6 + $0xe0] sm:$0xff] %vm517_vm1, %v513_v31  ;;  %v490_v38 = vadd.f32 %v794_v35, %v454_v36 }
  0xba   : > { %v498_v39 = vadd.f32 %v794_v35, %v462_v37 }
  0xbb   : > { %523 = vst.msk [vmem:[%s803_s6 + $0x28] sm:$0xff] %vm517_vm1, %v490_v38  ;;  %v412_v40 = vpop.f32.mrf.mxu2  ;;  %v436_v41 = vpop.f32.mrf.mxu3 }
  0xbc   : > { %531 = vst.msk [vmem:[%s803_s6 + $0x68] sm:$0xff] %vm517_vm1, %v498_v39  ;;  %v470_v42 = vmul.f32 %v789_v34, %v412_v40  ;;  %v478_v43 = vmul.f32 %v789_v34, %v436_v41 }
  0xbe   : > { %v506_v44 = vadd.f32 %v794_v35, %v470_v42  ;;  %v514_v45 = vadd.f32 %v794_v35, %v478_v43  ;;  %v367_v46 = vpop.f32.mrf.mxu0 }
  0xbf   : > { %v391_v47 = vpop.f32.mrf.mxu1  ;;  %v455_v48 = vmul.f32 %v789_v34, %v367_v46 }
  0xc0   : > { %v463_v49 = vmul.f32 %v789_v34, %v391_v47  ;;  %539 = vst.msk [vmem:[%s803_s6 + $0xa8] sm:$0xff] %vm517_vm1, %v506_v44 }
  0xc1   : > { %547 = vst.msk [vmem:[%s803_s6 + $0xe8] sm:$0xff] %vm517_vm1, %v514_v45  ;;  %v491_v50 = vadd.f32 %v794_v35, %v455_v48 }
  0xc2   : > { %v499_v51 = vadd.f32 %v794_v35, %v463_v49 }
  0xc3   : > { %524 = vst.msk [vmem:[%s803_s6 + $0x30] sm:$0xff] %vm517_vm1, %v491_v50  ;;  %v415_v52 = vpop.f32.mrf.mxu2  ;;  %v439_v53 = vpop.f32.mrf.mxu3 }
  0xc4   : > { %532 = vst.msk [vmem:[%s803_s6 + $0x70] sm:$0xff] %vm517_vm1, %v499_v51  ;;  %v471_v54 = vmul.f32 %v789_v34, %v415_v52  ;;  %v479_v55 = vmul.f32 %v789_v34, %v439_v53 }
  0xc6   : > { %v507_v56 = vadd.f32 %v794_v35, %v471_v54  ;;  %v515_v57 = vadd.f32 %v794_v35, %v479_v55  ;;  %v370_v58 = vpop.f32.mrf.mxu0 }
  0xc7   : > { %v394_v59 = vpop.f32.mrf.mxu1  ;;  %v456_v60 = vmul.f32 %v789_v34, %v370_v58 }
  0xc8   : > { %v464_v61 = vmul.f32 %v789_v34, %v394_v59  ;;  %540 = vst.msk [vmem:[%s803_s6 + $0xb0] sm:$0xff] %vm517_vm1, %v507_v56 }
  0xc9   : > { %548 = vst.msk [vmem:[%s803_s6 + $0xf0] sm:$0xff] %vm517_vm1, %v515_v57  ;;  %v492_v62 = vadd.f32 %v794_v35, %v456_v60 }
  0xca   : > { %v500_v63 = vadd.f32 %v794_v35, %v464_v61 }
  0xcb   : > { %525 = vst.msk [vmem:[%s803_s6 + $0x38] sm:$0xff] %vm517_vm1, %v492_v62  ;;  %v418_v0 = vpop.f32.mrf.mxu2  ;;  %v442_v1 = vpop.f32.mrf.mxu3 }
  0xcc   : > { %533 = vst.msk [vmem:[%s803_s6 + $0x78] sm:$0xff] %vm517_vm1, %v500_v63  ;;  %v472_v2 = vmul.f32 %v789_v34, %v418_v0  ;;  %v480_v3 = vmul.f32 %v789_v34, %v442_v1 }
  0xce   : > { %v508_v4 = vadd.f32 %v794_v35, %v472_v2  ;;  %v516_v5 = vadd.f32 %v794_v35, %v480_v3 }
  0xd0   : > { %541 = vst.msk [vmem:[%s803_s6 + $0xb8] sm:$0xff] %vm517_vm1, %v508_v4 }
  0xd1   : > { %549 = vst.msk [vmem:[%s803_s6 + $0xf8] sm:$0xff] %vm517_vm1, %v516_v5 }
  0xd2 PF: > { %s14_s15 = sadd.s32 1, %s671_s15  }
  0xd3   : > { %p11_p4 = scmp.ge.s32.totalorder %s14_s15, 4  }
  0xd5   :  { %13 = sbr.rel (!%p11_p4) target bundleno = 1 (0x1), region = 66 }

// kernel: resblock_forward.7
= control target key start
LH: loop header
LB: loop body
LE: loop exit
PB: predicated region body
PF: predicated region fallthrough
CT: control target
= control target key end

     0   :  { %s1040_s12 = smov 0   ;;  %s1042_s13 = smov 0   ;;  %s1446_s0 = inlined_call_operand.vmem [shape: f32[2,256,32], index: 0, kind: input, shape index: {}, may-alias: {0,3}]   ;;  %s1447_s1 = inlined_call_operand.vmem [shape: f32[2,256,32], index: 1, kind: input, shape index: {}]   ;;  %s1448_s2 = inlined_call_operand.vmem [shape: f32[2,1,32], index: 2, kind: input, shape index: {}]   ;;  %s1449_s3 = inlined_call_operand.vmem [shape: f32[2,256,32], index: 3, kind: output, shape index: {}, may-alias: {0,3}]  }
   0x1   :  { %s1044_s14 = smov 0  }
   0x2 LB: > { %s25_s15 = sadd.s32 1, %s1014_s13  ;;  %p831_p0 = scmp.ge.s32.totalorder %s1018_s14, 1  ;;  %s1018_s14 = sphi %s1044_s14, %s13_s14   ;;  %s1014_s13 = sphi %s1042_s13, %s1451_s13   ;;  %s1010_s12 = sphi %s1040_s12, %s1450_s12  }
   0x3   : > { %p27_p1 = scmp.ge.s32.totalorder %s25_s15, 2  ;;  %p183_p2 = scmp.lt.s32.totalorder %s1018_s14, 3 }
   0x5   : > { %s1453_s15 = smov (%p27_p1, %s25_s15), 0  ;;  %p184_p3 = pnand %p831_p0, %p183_p2 }
   0x6   : > { %p228_p4 = scmp.lt.s32.totalorder (!%p184_p3), %s1010_s12, 1 }
   0x7   : > { %187 = sbr.rel (%p184_p3) target bundleno = 123 (0x7b), region = 32 }
   0xc   : > { %s1455_s12 = smov (!%p228_p4, %s1010_s12), 1  ;;  %vm680_vm0 = vcmask 261120  }
   0xd   : > { %s1058_s16 = sshll.u32 %s1455_s12, 8  ;;  %s249_s19 = scalar_lea.vmem %s1448_s2, %s1455_s12 }
   0xe   : > { %s1067_s22 = scalar_lea.vmem %s1446_s0, %s1058_s16  ;;  %v1070_v1 = vld [vmem:[%s249_s19] ss:$0 sm:$0xff]  ;;  %s1088_s25 = scalar_lea.vmem %s1447_s1, %s1058_s16 }
   0xf   : > { %v260_v0 = vld [vmem:[%s1067_s22] sm:$0xff]  ;;  %v261_v2 = vld [vmem:[%s1067_s22 + $0x8] sm:$0xff]  ;;  %v262_v3 = vld [vmem:[%s1067_s22 + $0x10] sm:$0xff]  ;;  %s1220_s28 = scalar_lea.vmem %s1449_s3, %s1058_s16 }
  0x10   : > { %v263_v4 = vld [vmem:[%s1067_s22 + $0x18] sm:$0xff]  ;;  %v264_v5 = vld [vmem:[%s1067_s22 + $0x20] sm:$0xff]  ;;  %v265_v6 = vld [vmem:[%s1067_s22 + $0x28] sm:$0xff]  ;;  %v296_v17 = vmul.f32 %v1070_v1, %v260_v0  ;;  %v297_v18 = vmul.f32 %v1070_v1, %v261_v2  ;;  %v298_v19 = vmul.f32 %v1070_v1, %v262_v3 }
  0x11   : > { %v266_v7 = vld [vmem:[%s1067_s22 + $0x30] sm:$0xff]  ;;  %v267_v8 = vld [vmem:[%s1067_s22 + $0x38] sm:$0xff]  ;;  %v268_v9 = vld [vmem:[%s1067_s22 + $0x40] sm:$0xff]  ;;  %v299_v20 = vmul.f32 %v1070_v1, %v263_v4  ;;  %v300_v24 = vmul.f32 %v1070_v1, %v264_v5  ;;  %v301_v25 = vmul.f32 %v1070_v1, %v265_v6 }
  0x12   : > { %v269_v10 = vld [vmem:[%s1067_s22 + $0x48] sm:$0xff]  ;;  %v270_v11 = vld [vmem:[%s1067_s22 + $0x50] sm:$0xff]  ;;  %v271_v12 = vld [vmem:[%s1067_s22 + $0x58] sm:$0xff]  ;;  %v302_v26 = vmul.f32 %v1070_v1, %v266_v7  ;;  %v303_v27 = vmul.f32 %v1070_v1, %v267_v8  ;;  %v304_v29 = vmul.f32 %v1070_v1, %v268_v9 }
  0x13   : > { %v272_v13 = vld [vmem:[%s1067_s22 + $0x60] sm:$0xff]  ;;  %v273_v14 = vld [vmem:[%s1067_s22 + $0x68] sm:$0xff]  ;;  %v274_v15 = vld [vmem:[%s1067_s22 + $0x70] sm:$0xff]  ;;  %v305_v30 = vmul.f32 %v1070_v1, %v269_v10  ;;  %v306_v31 = vmul.f32 %v1070_v1, %v270_v11  ;;  %v307_v32 = vmul.f32 %v1070_v1, %v271_v12 }
  0x14   : > { %v275_v16 = vld [vmem:[%s1067_s22 + $0x78] sm:$0xff]  ;;  %v276_v21 = vld [vmem:[%s1067_s22 + $0x80] sm:$0xff]  ;;  %v277_v22 = vld [vmem:[%s1067_s22 + $0x88] sm:$0xff]  ;;  %v308_v34 = vmul.f32 %v1070_v1, %v272_v13  ;;  %v1112_v35 = vmul.f32 %v1070_v1, %v273_v14  ;;  %v1115_v36 = vmul.f32 %v1070_v1, %v274_v15 }
  0x15   : > { %v278_v23 = vld [vmem:[%s1067_s22 + $0x90] sm:$0xff]  ;;  %v279_v28 = vld [vmem:[%s1067_s22 + $0x98] sm:$0xff]  ;;  %v328_v33 = vld [vmem:[%s1088_s25] sm:$0xff]  ;;  %v1118_v37 = vmul.f32 %v1070_v1, %v275_v16  ;;  %v1126_v42 = vmul.f32 %v1070_v1, %v276_v21  ;;  %v1129_v43 = vmul.f32 %v1070_v1, %v277_v22 }
  0x16   : > { %v1120_v38 = vadd.f32 %v328_v33, %v296_v17  ;;  %v329_v39 = vld [vmem:[%s1088_s25 + $0x8] sm:$0xff]  ;;  %v330_v40 = vld [vmem:[%s1088_s25 + $0x10] sm:$0xff]  ;;  %v331_v41 = vld [vmem:[%s1088_s25 + $0x18] sm:$0xff]  ;;  %v1132_v44 = vmul.f32 %v1070_v1, %v278_v23  ;;  %v1144_v51 = vmul.f32 %v1070_v1, %v279_v28 }
  0x17   : > { %v1134_v45 = vadd.f32 %v329_v39, %v297_v18  ;;  %v1136_v46 = vadd.f32 %v330_v40, %v298_v19  ;;  %v1138_v47 = vadd.f32 %v331_v41, %v299_v20  ;;  %v332_v48 = vld [vmem:[%s1088_s25 + $0x20] sm:$0xff]  ;;  %v333_v49 = vld [vmem:[%s1088_s25 + $0x28] sm:$0xff]  ;;  %v334_v50 = vld [vmem:[%s1088_s25 + $0x30] sm:$0xff] }
  0x18   : > { %v392_v52 = vmin.f32 %v1120_v38, 20.0  ;;  %v1147_v53 = vadd.f32 %v332_v48, %v300_v24  ;;  %v1149_v54 = vadd.f32 %v333_v49, %v301_v25  ;;  %v1151_v55 = vadd.f32 %v334_v50, %v302_v26  ;;  %v335_v56 = vld [vmem:[%s1088_s25 + $0x38] sm:$0xff]  ;;  %v336_v57 = vld [vmem:[%s1088_s25 + $0x40] sm:$0xff]  ;;  %v337_v62 = vld [vmem:[%s1088_s25 + $0x48] sm:$0xff] }
  0x19   : > { %v393_v58 = vmin.f32 %v1134_v45, 20.0  ;;  %v394_v59 = vmin.f32 %v1136_v46, 20.0  ;;  %v395_v60 = vmin.f32 %v1138_v47, 20.0  ;;  %v1158_v61 = vadd.f32 %v335_v56, %v303_v27  ;;  %v338_v63 = vld [vmem:[%s1088_s25 + $0x50] sm:$0xff]  ;;  %v339_v0 = vld [vmem:[%s1088_s25 + $0x58] sm:$0xff]  ;;  %v340_v6 = vld [vmem:[%s1088_s25 + $0x60] sm:$0xff] }
  0x1a   : > { %v424_v2 = vmul.f32 1.442695, %v392_v52  ;;  %v396_v3 = vmin.f32 %v1147_v53, 20.0  ;;  %v397_v4 = vmin.f32 %v1149_v54, 20.0  ;;  %v398_v5 = vmin.f32 %v1151_v55, 20.0  ;;  %v341_v20 = vld [vmem:[%s1088_s25 + $0x68] sm:$0xff] }
  0x1b   : > { %v426_v7 = vmul.f32 1.442695, %v393_v58  ;;  %v428_v8 = vmul.f32 1.442695, %v394_v59  ;;  %v430_v9 = vmul.f32 1.442695, %v395_v60  ;;  %v1167_v10 = vadd.f32 %v336_v57, %v304_v29 }
  0x1c   : > { %868 = vpow2.f32 %v424_v2  ;;  %v432_v11 = vmul.f32 1.442695, %v396_v3  ;;  %v434_v12 = vmul.f32 1.442695, %v397_v4  ;;  %v436_v13 = vmul.f32 1.442695, %v398_v5 }
  0x1d   : > { %870 = vpow2.f32 %v426_v7  ;;  %v399_v14 = vmin.f32 %v1158_v61, 20.0  ;;  %v400_v15 = vmin.f32 %v1167_v10, 20.0  ;;  %v1171_v16 = vadd.f32 %v337_v62, %v305_v30  ;;  %v342_v21 = vld [vmem:[%s1088_s25 + $0x70] sm:$0xff] }
  0x1e   : > { %872 = vpow2.f32 %v428_v8  ;;  %v1173_v17 = vadd.f32 %v338_v63, %v306_v31  ;;  %v1175_v18 = vadd.f32 %v339_v0, %v307_v32  ;;  %v1177_v19 = vadd.f32 %v340_v6, %v308_v34  ;;  %v343_v31 = vld [vmem:[%s1088_s25 + $0x78] sm:$0xff]  ;;  %v344_v32 = vld [vmem:[%s1088_s25 + $0x80] sm:$0xff] }
  0x1f   : > { %874 = vpow2.f32 %v430_v9  ;;  %v438_v22 = vmul.f32 1.442695, %v399_v14  ;;  %v440_v23 = vmul.f32 1.442695, %v400_v15  ;;  %v401_v24 = vmin.f32 %v1171_v16, 20.0 }
  0x20   : > { %876 = vpow2.f32 %v432_v11  ;;  %v402_v25 = vmin.f32 %v1173_v17, 20.0  ;;  %v403_v26 = vmin.f32 %v1175_v18, 20.0  ;;  %v404_v27 = vmin.f32 %v1177_v19, 20.0 }
  0x21   : > { %878 = vpow2.f32 %v434_v12  ;;  %v442_v28 = vmul.f32 1.442695, %v401_v24  ;;  %v1186_v29 = vadd.f32 %v341_v20, %v1112_v35  ;;  %v1189_v30 = vadd.f32 %v342_v21, %v1115_v36 }
  0x22   : > { %v869_v33 = vpop.eup %868  ;;  %880 = vpow2.f32 %v436_v13  ;;  %v444_v34 = vmul.f32 1.442695, %v402_v25  ;;  %v1193_v39 = vmul.f32 1.442695, %v403_v26  ;;  %v1195_v40 = vmul.f32 1.442695, %v404_v27 }
  0x23   : > { %v871_v41 = vpop.eup %870  ;;  %v488_v48 = vadd.f32 2.0, %v869_v33  ;;  %882 = vpow2.f32 %v438_v22  ;;  %v405_v49 = vmin.f32 %v1186_v29, 20.0  ;;  %v406_v35 = vmin.f32 %v1189_v30, 20.0 }
  0x24   : > { %v873_v50 = vpop.eup %872  ;;  %v489_v52 = vadd.f32 2.0, %v871_v41  ;;  %884 = vpow2.f32 %v440_v23  ;;  %v1200_v36 = vadd.f32 %v343_v31, %v1118_v37  ;;  %v1203_v56 = vadd.f32 %v344_v32, %v1126_v42 }
  0x25   : > { %v875_v57 = vpop.eup %874  ;;  %v520_v58 = vmul.f32 %v869_v33, %v488_v48  ;;  %v490_v59 = vadd.f32 2.0, %v873_v50  ;;  %886 = vpow2.f32 %v442_v28  ;;  %v1205_v60 = vmul.f32 1.442695, %v405_v49  ;;  %v281_v48 = vld [vmem:[%s1067_s22 + $0xa8] sm:$0xff]  ;;  %v1225_v49 = vld [vmem:[%s1067_s22 + $0xb0] sm:$0xff] }
  0x26   : > { %v877_v62 = vpop.eup %876  ;;  %v521_v63 = vmul.f32 %v871_v41, %v489_v52  ;;  %v491_v0 = vadd.f32 2.0, %v875_v57  ;;  %888 = vpow2.f32 %v444_v34  ;;  %v1207_v2 = vmul.f32 1.442695, %v406_v35  ;;  %v1228_v35 = vld [vmem:[%s1067_s22 + $0xb8] sm:$0xff]  ;;  %v1234_v52 = vld [vmem:[%s1067_s22 + $0xc8] sm:$0xff] }
  0x27   : > { %v879_v3 = vpop.eup %878  ;;  %v552_v4 = vmul.f32 %v520_v58, %v1120_v38  ;;  %v584_v37 = vadd.f32 2.0, %v520_v58  ;;  %v522_v5 = vmul.f32 %v873_v50, %v490_v59  ;;  %v492_v42 = vadd.f32 2.0, %v877_v62  ;;  %v1231_v50 = vld [vmem:[%s1067_s22 + $0xc0] sm:$0xff] }
  0x28   : > { %v881_v6 = vpop.eup %880  ;;  %v553_v7 = vmul.f32 %v521_v63, %v1134_v45  ;;  %v585_v8 = vadd.f32 2.0, %v521_v63  ;;  %v523_v9 = vmul.f32 %v875_v57, %v491_v0  ;;  %v493_v11 = vadd.f32 2.0, %v879_v3  ;;  %v1238_v0 = vld [vmem:[%s1067_s22 + $0xd0] sm:$0xff] }
  0x29   : > { %v883_v12 = vpop.eup %882  ;;  %890 = vrcp.f32 %v584_v37  ;;  %v554_v13 = vmul.f32 %v522_v5, %v1136_v46  ;;  %v586_v14 = vadd.f32 2.0, %v522_v5  ;;  %v524_v15 = vmul.f32 %v877_v62, %v492_v42  ;;  %v1244_v37 = vld [vmem:[%s1067_s22 + $0xe0] sm:$0xff] }
  0x2a   : > { %v885_v20 = vpop.eup %884  ;;  %892 = vrcp.f32 %v585_v8  ;;  %v555_v38 = vmul.f32 %v523_v9, %v1138_v47  ;;  %v587_v21 = vadd.f32 2.0, %v523_v9  ;;  %v525_v22 = vmul.f32 %v879_v3, %v493_v11  ;;  %v1241_v3 = vld [vmem:[%s1067_s22 + $0xd8] sm:$0xff]  ;;  %v1251_v11 = vld [vmem:[%s1067_s22 + $0xf0] sm:$0xff] }
  0x2b   : > { %v887_v23 = vpop.eup %886  ;;  %894 = vrcp.f32 %v586_v14  ;;  %v556_v24 = vmul.f32 %v524_v15, %v1147_v53  ;;  %v588_v45 = vadd.f32 2.0, %v524_v15  ;;  %v494_v25 = vadd.f32 2.0, %v881_v6 }
  0x2c   : > { %v889_v26 = vpop.eup %888  ;;  %896 = vrcp.f32 %v587_v21  ;;  %v557_v46 = vmul.f32 %v525_v22, %v1149_v54  ;;  %v589_v27 = vadd.f32 2.0, %v525_v22  ;;  %v495_v47 = vadd.f32 2.0, %v883_v12  ;;  %v280_v54 = vld [vmem:[%s1067_s22 + $0xa0] sm:$0xff] }
  0x2d   : > { %898 = vrcp.f32 %v588_v45  ;;  %v526_v28 = vmul.f32 %v881_v6, %v494_v25  ;;  %v496_v31 = vadd.f32 2.0, %v885_v20  ;;  %v497_v32 = vadd.f32 2.0, %v887_v23  ;;  %v346_v45 = vld [vmem:[%s1088_s25 + $0x90] sm:$0xff] }
  0x2e   : > { %900 = vrcp.f32 %v589_v27  ;;  %v527_v53 = vmul.f32 %v883_v12, %v495_v47  ;;  %v498_v33 = vadd.f32 2.0, %v889_v26  ;;  %v407_v34 = vmin.f32 %v1200_v36, 20.0  ;;  %v1254_v12 = vld [vmem:[%s1067_s22 + $0xf8] sm:$0xff] }
  0x2f   : > { %v891_v41 = vpop.eup %890  ;;  %v558_v57 = vmul.f32 %v526_v28, %v1151_v55  ;;  %v590_v58 = vadd.f32 2.0, %v526_v28  ;;  %v528_v59 = vmul.f32 %v885_v20, %v496_v31  ;;  %v529_v62 = vmul.f32 %v887_v23, %v497_v32  ;;  %v1248_v55 = vld [vmem:[%s1067_s22 + $0xe8] sm:$0xff]  ;;  %v347_v27 = vld [vmem:[%s1088_s25 + $0x98] sm:$0xff]  ;;  %v348_v32 = vld [vmem:[%s1088_s25 + $0xa0] sm:$0xff] }
  0x30   : > { %v893_v63 = vpop.eup %892  ;;  %v648_v5 = vmul.f32 %v891_v41, %v552_v4  ;;  %v559_v42 = vmul.f32 %v527_v53, %v1158_v61  ;;  %v591_v6 = vadd.f32 2.0, %v527_v53  ;;  %v530_v8 = vmul.f32 %v889_v26, %v498_v33  ;;  %v345_v23 = vld [vmem:[%s1088_s25 + $0x88] sm:$0xff] }
  0x31   : > { %v895_v9 = vpop.eup %894  ;;  %v649_v14 = vmul.f32 %v893_v63, %v553_v7  ;;  %902 = vrcp.f32 %v590_v58  ;;  %v560_v15 = vmul.f32 %v528_v59, %v1167_v10  ;;  %v592_v4 = vadd.f32 2.0, %v528_v59  ;;  %v349_v58 = vld [vmem:[%s1088_s25 + $0xa8] sm:$0xff] }
  0x32   : > { %v897_v20 = vpop.eup %896  ;;  %681 = vst.msk [vmem:[%s1220_s28] sm:$0xff] %vm680_vm0, %v648_v5  ;;  %v650_v61 = vmul.f32 %v895_v9, %v554_v13  ;;  %904 = vrcp.f32 %v591_v6  ;;  %v561_v21 = vmul.f32 %v529_v62, %v1171_v16  ;;  %v593_v22 = vadd.f32 2.0, %v529_v62  ;;  %v350_v6 = vld [vmem:[%s1088_s25 + $0xb0] sm:$0xff] }
  0x33   : > { %v899_v25 = vpop.eup %898  ;;  %682 = vst.msk [vmem:[%s1220_s28 + $0x8] sm:$0xff] %vm680_vm0, %v649_v14  ;;  %v651_v7 = vmul.f32 %v897_v20, %v555_v38  ;;  %906 = vrcp.f32 %v592_v4  ;;  %v562_v10 = vmul.f32 %v530_v8, %v1173_v17  ;;  %v594_v26 = vadd.f32 2.0, %v530_v8  ;;  %v351_v14 = vld [vmem:[%s1088_s25 + $0xb8] sm:$0xff] }
  0x34   : > { %v901_v47 = vpop.eup %900  ;;  %683 = vst.msk [vmem:[%s1220_s28 + $0x10] sm:$0xff] %vm680_vm0, %v650_v61  ;;  %v652_v13 = vmul.f32 %v899_v25, %v556_v24  ;;  %908 = vrcp.f32 %v593_v22  ;;  %v454_v16 = vmul.f32 1.442695, %v407_v34  ;;  %v408_v28 = vmin.f32 %v1203_v56, 20.0 }
  0x35   : > { %684 = vst.msk [vmem:[%s1220_s28 + $0x18] sm:$0xff] %vm680_vm0, %v651_v7  ;;  %v653_v31 = vmul.f32 %v901_v47, %v557_v46  ;;  %910 = vrcp.f32 %v594_v26  ;;  %v1272_v38 = vadd.f32 %v345_v23, %v1129_v43  ;;  %v1275_v17 = vadd.f32 %v346_v45, %v1132_v44 }
  0x36   : > { %685 = vst.msk [vmem:[%s1220_s28 + $0x20] sm:$0xff] %vm680_vm0, %v652_v13  ;;  %912 = vpow2.f32 %v1193_v39  ;;  %v456_v24 = vmul.f32 1.442695, %v408_v28  ;;  %v1282_v53 = vadd.f32 %v347_v27, %v1144_v51  ;;  %v316_v33 = vmul.f32 %v1070_v1, %v280_v54 }
  0x37   : > { %v903_v46 = vpop.eup %902  ;;  %686 = vst.msk [vmem:[%s1220_s28 + $0x28] sm:$0xff] %vm680_vm0, %v653_v31  ;;  %914 = vpow2.f32 %v1195_v40  ;;  %v409_v43 = vmin.f32 %v1272_v38, 20.0  ;;  %v410_v44 = vmin.f32 %v1275_v17, 20.0  ;;  %v317_v34 = vmul.f32 %v1070_v1, %v281_v48 }
  0x38   : > { %v905_v41 = vpop.eup %904  ;;  %v654_v39 = vmul.f32 %v903_v46, %v558_v57  ;;  %916 = vpow2.f32 %v1205_v60  ;;  %v411_v51 = vmin.f32 %v1282_v53, 20.0  ;;  %v1293_v54 = vadd.f32 %v348_v32, %v316_v33 }
  0x39   : > { %v907_v59 = vpop.eup %906  ;;  %v655_v40 = vmul.f32 %v905_v41, %v559_v42  ;;  %918 = vpow2.f32 %v1207_v2  ;;  %v458_v62 = vmul.f32 1.442695, %v409_v43  ;;  %v460_v63 = vmul.f32 1.442695, %v410_v44 }
  0x3a   : > { %v909_v48 = vpop.eup %908  ;;  %687 = vst.msk [vmem:[%s1220_s28 + $0x30] sm:$0xff] %vm680_vm0, %v654_v39  ;;  %v656_v57 = vmul.f32 %v907_v59, %v560_v15  ;;  %920 = vpow2.f32 %v454_v16  ;;  %v462_v60 = vmul.f32 1.442695, %v411_v51  ;;  %v412_v5 = vmin.f32 %v1293_v54, 20.0 }
  0x3b   : > { %v911_v8 = vpop.eup %910  ;;  %688 = vst.msk [vmem:[%s1220_s28 + $0x38] sm:$0xff] %vm680_vm0, %v655_v40  ;;  %v657_v42 = vmul.f32 %v909_v48, %v561_v21  ;;  %922 = vpow2.f32 %v456_v24  ;;  %v1303_v2 = vadd.f32 %v349_v58, %v317_v34  ;;  %v318_v9 = vmul.f32 %v1070_v1, %v1225_v49 }
  0x3c   : > { %v913_v4 = vpop.eup %912  ;;  %689 = vst.msk [vmem:[%s1220_s28 + $0x40] sm:$0xff] %vm680_vm0, %v656_v57  ;;  %v658_v15 = vmul.f32 %v911_v8, %v562_v10  ;;  %924 = vpow2.f32 %v458_v62  ;;  %v464_v20 = vmul.f32 1.442695, %v412_v5  ;;  %v319_v61 = vmul.f32 %v1070_v1, %v1228_v35 }
  0x3d   : > { %v915_v22 = vpop.eup %914  ;;  %690 = vst.msk [vmem:[%s1220_s28 + $0x48] sm:$0xff] %vm680_vm0, %v657_v42  ;;  %v499_v21 = vadd.f32 2.0, %v913_v4  ;;  %926 = vpow2.f32 %v460_v63  ;;  %v413_v23 = vmin.f32 %v1303_v2, 20.0  ;;  %v1315_v45 = vadd.f32 %v350_v6, %v318_v9 }
  0x3e   : > { %v917_v49 = vpop.eup %916  ;;  %691 = vst.msk [vmem:[%s1220_s28 + $0x50] sm:$0xff] %vm680_vm0, %v658_v15  ;;  %v500_v25 = vadd.f32 2.0, %v915_v22  ;;  %928 = vpow2.f32 %v462_v60  ;;  %v1319_v7 = vadd.f32 %v351_v14, %v319_v61  ;;  %v1323_v10 = vmul.f32 %v1070_v1, %v1231_v50 }
  0x3f   : > { %v919_v35 = vpop.eup %918  ;;  %v531_v26 = vmul.f32 %v913_v4, %v499_v21  ;;  %v501_v27 = vadd.f32 2.0, %v917_v49  ;;  %930 = vpow2.f32 %v464_v20  ;;  %v466_v47 = vmul.f32 1.442695, %v413_v23 }
  0x40   : > { %v921_v13 = vpop.eup %920  ;;  %v532_v16 = vmul.f32 %v915_v22, %v500_v25  ;;  %v502_v28 = vadd.f32 2.0, %v919_v35  ;;  %v414_v31 = vmin.f32 %v1315_v45, 20.0  ;;  %v415_v32 = vmin.f32 %v1319_v7, 20.0 }
  0x41   : > { %v923_v24 = vpop.eup %922  ;;  %v563_v33 = vmul.f32 %v531_v26, %v1175_v18  ;;  %v595_v46 = vadd.f32 2.0, %v531_v26  ;;  %v533_v43 = vmul.f32 %v917_v49, %v501_v27  ;;  %v503_v44 = vadd.f32 2.0, %v921_v13  ;;  %v352_v26 = vld [vmem:[%s1088_s25 + $0xc0] sm:$0xff] }
  0x42   : > { %v925_v50 = vpop.eup %924  ;;  %v564_v34 = vmul.f32 %v532_v16, %v1177_v19  ;;  %v596_v41 = vadd.f32 2.0, %v532_v16  ;;  %v534_v39 = vmul.f32 %v919_v35, %v502_v28  ;;  %v504_v51 = vadd.f32 2.0, %v923_v24 }
  0x43   : > { %v927_v58 = vpop.eup %926  ;;  %932 = vrcp.f32 %v595_v46  ;;  %v565_v59 = vmul.f32 %v533_v43, %v1186_v29  ;;  %v597_v40 = vadd.f32 2.0, %v533_v43  ;;  %v535_v62 = vmul.f32 %v921_v13, %v503_v44  ;;  %v354_v43 = vld [vmem:[%s1088_s25 + $0xd0] sm:$0xff]  ;;  %v355_v44 = vld [vmem:[%s1088_s25 + $0xd8] sm:$0xff] }
  0x44   : > { %v929_v63 = vpop.eup %928  ;;  %934 = vrcp.f32 %v596_v41  ;;  %v566_v48 = vmul.f32 %v534_v39, %v1189_v30  ;;  %v598_v18 = vadd.f32 2.0, %v534_v39  ;;  %v536_v57 = vmul.f32 %v923_v24, %v504_v51  ;;  %v356_v51 = vld [vmem:[%s1088_s25 + $0xe0] sm:$0xff] }
  0x45   : > { %v931_v60 = vpop.eup %930  ;;  %936 = vrcp.f32 %v597_v40  ;;  %v567_v5 = vmul.f32 %v535_v62, %v1200_v36  ;;  %v599_v19 = vadd.f32 2.0, %v535_v62  ;;  %v505_v6 = vadd.f32 2.0, %v925_v50 }
  0x46   : > { %938 = vrcp.f32 %v598_v18  ;;  %v568_v8 = vmul.f32 %v536_v57, %v1203_v56  ;;  %v600_v42 = vadd.f32 2.0, %v536_v57  ;;  %v506_v9 = vadd.f32 2.0, %v927_v58 }
  0x47   : > { %940 = vrcp.f32 %v599_v19  ;;  %v537_v29 = vmul.f32 %v925_v50, %v505_v6  ;;  %v507_v14 = vadd.f32 2.0, %v929_v63  ;;  %v508_v4 = vadd.f32 2.0, %v931_v60 }
  0x48   : > { %942 = vrcp.f32 %v600_v42  ;;  %v538_v30 = vmul.f32 %v927_v58, %v506_v9  ;;  %v468_v15 = vmul.f32 1.442695, %v414_v31  ;;  %v470_v20 = vmul.f32 1.442695, %v415_v32 }
  0x49   : > { %v933_v61 = vpop.eup %932  ;;  %v569_v22 = vmul.f32 %v537_v29, %v1272_v38  ;;  %v601_v36 = vadd.f32 2.0, %v537_v29  ;;  %v539_v21 = vmul.f32 %v929_v63, %v507_v14  ;;  %v540_v23 = vmul.f32 %v931_v60, %v508_v4  ;;  %v357_v29 = vld [vmem:[%s1088_s25 + $0xe8] sm:$0xff] }
  0x4a   : > { %v935_v49 = vpop.eup %934  ;;  %v659_v56 = vmul.f32 %v933_v61, %v563_v33  ;;  %v570_v25 = vmul.f32 %v538_v30, %v1275_v17  ;;  %v602_v35 = vadd.f32 2.0, %v538_v30  ;;  %944 = vpow2.f32 %v466_v47  ;;  %v353_v47 = vld [vmem:[%s1088_s25 + $0xc8] sm:$0xff] }
  0x4b   : > { %v937_v27 = vpop.eup %936  ;;  %v660_v13 = vmul.f32 %v935_v49, %v564_v34  ;;  %946 = vrcp.f32 %v601_v36  ;;  %v571_v16 = vmul.f32 %v539_v21, %v1282_v53  ;;  %v603_v38 = vadd.f32 2.0, %v539_v21 }
  0x4c   : > { %v939_v28 = vpop.eup %938  ;;  %692 = vst.msk [vmem:[%s1220_s28 + $0x58] sm:$0xff] %vm680_vm0, %v659_v56  ;;  %v661_v31 = vmul.f32 %v937_v27, %v565_v59  ;;  %948 = vrcp.f32 %v602_v35  ;;  %v572_v17 = vmul.f32 %v540_v23, %v1293_v54  ;;  %v604_v32 = vadd.f32 2.0, %v540_v23  ;;  %v358_v56 = vld [vmem:[%s1088_s25 + $0xf0] sm:$0xff] }
  0x4d   : > { %v941_v24 = vpop.eup %940  ;;  %693 = vst.msk [vmem:[%s1220_s28 + $0x60] sm:$0xff] %vm680_vm0, %v660_v13  ;;  %v662_v33 = vmul.f32 %v939_v28, %v566_v48  ;;  %950 = vrcp.f32 %v603_v38  ;;  %v1344_v53 = vadd.f32 %v352_v26, %v1323_v10  ;;  %v321_v46 = vmul.f32 %v1070_v1, %v1234_v52 }
  0x4e   : > { %v943_v50 = vpop.eup %942  ;;  %694 = vst.msk [vmem:[%s1220_s28 + $0x68] sm:$0xff] %vm680_vm0, %v661_v31  ;;  %v663_v54 = vmul.f32 %v941_v24, %v567_v5  ;;  %952 = vrcp.f32 %v604_v32  ;;  %v322_v34 = vmul.f32 %v1070_v1, %v1238_v0  ;;  %v323_v41 = vmul.f32 %v1070_v1, %v1241_v3 }
  0x4f   : > { %695 = vst.msk [vmem:[%s1220_s28 + $0x70] sm:$0xff] %vm680_vm0, %v662_v33  ;;  %v664_v10 = vmul.f32 %v943_v50, %v568_v8  ;;  %954 = vpow2.f32 %v468_v15  ;;  %v416_v52 = vmin.f32 %v1344_v53, 20.0  ;;  %v1359_v39 = vadd.f32 %v353_v47, %v321_v46 }
  0x50   : > { %v945_v58 = vpop.eup %944  ;;  %696 = vst.msk [vmem:[%s1220_s28 + $0x78] sm:$0xff] %vm680_vm0, %v663_v54  ;;  %956 = vpow2.f32 %v470_v20  ;;  %v1364_v59 = vadd.f32 %v354_v43, %v322_v34  ;;  %v1366_v40 = vadd.f32 %v355_v44, %v323_v41  ;;  %v324_v0 = vmul.f32 %v1070_v1, %v1244_v37 }
  0x51   : > { %v947_v3 = vpop.eup %946  ;;  %697 = vst.msk [vmem:[%s1220_s28 + $0x80] sm:$0xff] %vm680_vm0, %v664_v10  ;;  %v509_v62 = vadd.f32 2.0, %v945_v58  ;;  %v472_v63 = vmul.f32 1.442695, %v416_v52  ;;  %v417_v48 = vmin.f32 %v1359_v39, 20.0  ;;  %v325_v18 = vmul.f32 %v1070_v1, %v1248_v55 }
  0x52   : > { %v949_v57 = vpop.eup %948  ;;  %v665_v60 = vmul.f32 %v947_v3, %v569_v22  ;;  %v418_v5 = vmin.f32 %v1364_v59, 20.0  ;;  %v419_v19 = vmin.f32 %v1366_v40, 20.0  ;;  %v1377_v37 = vadd.f32 %v356_v51, %v324_v0 }
  0x53   : > { %v951_v6 = vpop.eup %950  ;;  %v666_v8 = vmul.f32 %v949_v57, %v570_v25  ;;  %v541_v42 = vmul.f32 %v945_v58, %v509_v62  ;;  %958 = vpow2.f32 %v472_v63  ;;  %v474_v9 = vmul.f32 1.442695, %v417_v48  ;;  %v359_v25 = vld [vmem:[%s1088_s25 + $0xf8] sm:$0xff] }
  0x54   : > { %v953_v14 = vpop.eup %952  ;;  %698 = vst.msk [vmem:[%s1220_s28 + $0x88] sm:$0xff] %vm680_vm0, %v665_v60  ;;  %v667_v55 = vmul.f32 %v951_v6, %v571_v16  ;;  %v476_v4 = vmul.f32 1.442695, %v418_v5  ;;  %v478_v30 = vmul.f32 1.442695, %v419_v19  ;;  %v420_v15 = vmin.f32 %v1377_v37, 20.0 }
  0x55   : > { %v955_v20 = vpop.eup %954  ;;  %699 = vst.msk [vmem:[%s1220_s28 + $0x90] sm:$0xff] %vm680_vm0, %v666_v8  ;;  %v668_v61 = vmul.f32 %v953_v14, %v572_v17  ;;  %v605_v22 = vadd.f32 2.0, %v541_v42  ;;  %960 = vpow2.f32 %v474_v9  ;;  %v1387_v49 = vadd.f32 %v357_v29, %v325_v18 }
  0x56   : > { %v957_v36 = vpop.eup %956  ;;  %700 = vst.msk [vmem:[%s1220_s28 + $0x98] sm:$0xff] %vm680_vm0, %v667_v55  ;;  %v510_v21 = vadd.f32 2.0, %v955_v20  ;;  %962 = vpow2.f32 %v476_v4  ;;  %v480_v23 = vmul.f32 1.442695, %v420_v15  ;;  %v326_v26 = vmul.f32 %v1070_v1, %v1251_v11 }
  0x57   : > { %701 = vst.msk [vmem:[%s1220_s28 + $0xa0] sm:$0xff] %vm680_vm0, %v668_v61  ;;  %964 = vrcp.f32 %v605_v22  ;;  %v511_v35 = vadd.f32 2.0, %v957_v36  ;;  %v327_v27 = vmul.f32 %v1070_v1, %v1254_v12  ;;  %v421_v16 = vmin.f32 %v1387_v49, 20.0 }
  0x58   : > { %v542_v13 = vmul.f32 %v955_v20, %v510_v21  ;;  %966 = vpow2.f32 %v478_v30  ;;  %v1398_v31 = vadd.f32 %v358_v56, %v326_v26  ;;  %v573_v32 = vmul.f32 %v541_v42, %v1303_v2 }
  0x59   : > { %v959_v38 = vpop.eup %958  ;;  %v543_v28 = vmul.f32 %v957_v36, %v511_v35  ;;  %968 = vpow2.f32 %v480_v23  ;;  %v1400_v17 = vadd.f32 %v359_v25, %v327_v27  ;;  %v482_v46 = vmul.f32 1.442695, %v421_v16 }
  0x5a   : > { %v606_v47 = vadd.f32 2.0, %v542_v13  ;;  %v512_v24 = vadd.f32 2.0, %v959_v38  ;;  %v422_v1 = vmin.f32 %v1398_v31, 20.0  ;;  %v574_v52 = vmul.f32 %v542_v13, %v1315_v45 }
  0x5b   : > { %v961_v33 = vpop.eup %960  ;;  %v607_v11 = vadd.f32 2.0, %v543_v28  ;;  %v423_v50 = vmin.f32 %v1400_v17, 20.0  ;;  %v575_v3 = vmul.f32 %v543_v28, %v1319_v7 }
  0x5c   : > { %v963_v12 = vpop.eup %962  ;;  %970 = vrcp.f32 %v606_v47  ;;  %v544_v43 = vmul.f32 %v959_v38, %v512_v24  ;;  %v513_v44 = vadd.f32 2.0, %v961_v33  ;;  %v484_v41 = vmul.f32 1.442695, %v422_v1 }
  0x5d   : > { %v965_v54 = vpop.eup %964  ;;  %972 = vrcp.f32 %v607_v11  ;;  %v514_v34 = vadd.f32 2.0, %v963_v12  ;;  %v486_v57 = vmul.f32 1.442695, %v423_v50 }
  0x5e   : > { %v967_v10 = vpop.eup %966  ;;  %v669_v2 = vmul.f32 %v965_v54, %v573_v32  ;;  %v608_v51 = vadd.f32 2.0, %v544_v43  ;;  %v545_v58 = vmul.f32 %v961_v33, %v513_v44  ;;  %974 = vpow2.f32 %v482_v46 }
  0x5f   : > { %v969_v0 = vpop.eup %968  ;;  %v546_v62 = vmul.f32 %v963_v12, %v514_v34  ;;  %v515_v63 = vadd.f32 2.0, %v967_v10  ;;  %v576_v7 = vmul.f32 %v544_v43, %v1344_v53 }
  0x60   : > { %702 = vst.msk [vmem:[%s1220_s28 + $0xa8] sm:$0xff] %vm680_vm0, %v669_v2  ;;  %976 = vrcp.f32 %v608_v51  ;;  %v609_v48 = vadd.f32 2.0, %v545_v58  ;;  %v516_v18 = vadd.f32 2.0, %v969_v0  ;;  %v577_v55 = vmul.f32 %v545_v58, %v1359_v39 }
  0x61   : > { %v610_v60 = vadd.f32 2.0, %v546_v62  ;;  %v547_v5 = vmul.f32 %v967_v10, %v515_v63  ;;  %978 = vpow2.f32 %v484_v41  ;;  %v578_v30 = vmul.f32 %v546_v62, %v1364_v59 }
  0x62   : > { %v971_v19 = vpop.eup %970  ;;  %980 = vrcp.f32 %v609_v48  ;;  %v548_v45 = vmul.f32 %v969_v0, %v516_v18 }
  0x63   : > { %v973_v6 = vpop.eup %972  ;;  %v670_v8 = vmul.f32 %v971_v19, %v574_v52  ;;  %982 = vrcp.f32 %v610_v60  ;;  %v611_v42 = vadd.f32 2.0, %v547_v5  ;;  %v579_v22 = vmul.f32 %v547_v5, %v1366_v40 }
  0x64   : > { %v671_v9 = vmul.f32 %v973_v6, %v575_v3  ;;  %v612_v29 = vadd.f32 2.0, %v548_v45  ;;  %984 = vpow2.f32 %v486_v57  ;;  %v975_v14 = vpop.eup %974  ;;  %v580_v56 = vmul.f32 %v548_v45, %v1377_v37 }
  0x65   : > { %703 = vst.msk [vmem:[%s1220_s28 + $0xb0] sm:$0xff] %vm680_vm0, %v670_v8  ;;  %986 = vrcp.f32 %v611_v42  ;;  %v517_v15 = vadd.f32 2.0, %v975_v14 }
  0x66   : > { %v977_v4 = vpop.eup %976  ;;  %704 = vst.msk [vmem:[%s1220_s28 + $0xb8] sm:$0xff] %vm680_vm0, %v671_v9  ;;  %988 = vrcp.f32 %v612_v29 }
  0x67   : > { %v979_v53 = vpop.eup %978  ;;  %v672_v20 = vmul.f32 %v977_v4, %v576_v7  ;;  %v549_v36 = vmul.f32 %v975_v14, %v517_v15 }
  0x68   : > { %v981_v61 = vpop.eup %980  ;;  %v518_v21 = vadd.f32 2.0, %v979_v53 }
  0x69   : > { %v983_v23 = vpop.eup %982  ;;  %705 = vst.msk [vmem:[%s1220_s28 + $0xc0] sm:$0xff] %vm680_vm0, %v672_v20  ;;  %v673_v39 = vmul.f32 %v981_v61, %v577_v55  ;;  %v613_v35 = vadd.f32 2.0, %v549_v36  ;;  %v581_v37 = vmul.f32 %v549_v36, %v1387_v49 }
  0x6a   : > { %v985_v25 = vpop.eup %984  ;;  %v674_v59 = vmul.f32 %v983_v23, %v578_v30  ;;  %v550_v26 = vmul.f32 %v979_v53, %v518_v21 }
  0x6b   : > { %v987_v27 = vpop.eup %986  ;;  %706 = vst.msk [vmem:[%s1220_s28 + $0xc8] sm:$0xff] %vm680_vm0, %v673_v39  ;;  %v519_v13 = vadd.f32 2.0, %v985_v25  ;;  %990 = vrcp.f32 %v613_v35 }
  0x6c   : > { %v989_v16 = vpop.eup %988  ;;  %707 = vst.msk [vmem:[%s1220_s28 + $0xd0] sm:$0xff] %vm680_vm0, %v674_v59  ;;  %v675_v40 = vmul.f32 %v987_v27, %v579_v22  ;;  %v614_v38 = vadd.f32 2.0, %v550_v26  ;;  %v582_v24 = vmul.f32 %v550_v26, %v1398_v31 }
  0x6d   : > { %v676_v28 = vmul.f32 %v989_v16, %v580_v56  ;;  %v551_v32 = vmul.f32 %v985_v25, %v519_v13 }
  0x6e   : > { %708 = vst.msk [vmem:[%s1220_s28 + $0xd8] sm:$0xff] %vm680_vm0, %v675_v40  ;;  %992 = vrcp.f32 %v614_v38 }
  0x6f   : > { %709 = vst.msk [vmem:[%s1220_s28 + $0xe0] sm:$0xff] %vm680_vm0, %v676_v28  ;;  %v615_v47 = vadd.f32 2.0, %v551_v32  ;;  %v583_v1 = vmul.f32 %v551_v32, %v1400_v17 }
  0x71   : > { %994 = vrcp.f32 %v615_v47  ;;  %v991_v33 = vpop.eup %990 }
  0x72   : > { %v677_v11 = vmul.f32 %v991_v33, %v581_v37 }
  0x74   : > { %v993_v46 = vpop.eup %992  ;;  %710 = vst.msk [vmem:[%s1220_s28 + $0xe8] sm:$0xff] %vm680_vm0, %v677_v11 }
  0x75   : > { %v678_v12 = vmul.f32 %v993_v46, %v582_v24 }
  0x77   : > { %v995_v43 = vpop.eup %994  ;;  %711 = vst.msk [vmem:[%s1220_s28 + $0xf0] sm:$0xff] %vm680_vm0, %v678_v12 }
  0x78   : > { %v679_v44 = vmul.f32 %v995_v43, %v583_v1 }
  0x7a   : > { %712 = vst.msk [vmem:[%s1220_s28 + $0xf8] sm:$0xff] %vm680_vm0, %v679_v44 }
  0x7b PF: > { %s13_s14 = sadd.s32 1, %s1018_s14   ;;  %s1450_s12 = smov %s1014_s13 }
  0x7c   : > { %p10_p5 = scmp.ge.s32.totalorder %s13_s14, 4   ;;  %s1451_s13 = smov %s1453_s15 }
  0x7e   :  { %12 = sbr.rel (!%p10_p5) target bundleno = 2 (0x2), region = 68 }

</bundles_post_ra>
